<compile_context>
chip_gen: v6e
topology: v6e:2x2x1
jax: 0.10.0
libtpu: 0.0.40
codegen_flags: <defaults>
</compile_context>

<pallas_src>
import functools

import numpy as np
import jax
import jax.numpy as jnp
from jax.experimental import pallas as pl
from jax.experimental.pallas import tpu as pltpu


# ----------------------------------------------------------------------------
# Kernel
# ----------------------------------------------------------------------------
def make_fourier2d_kernel(hidden_size, num_hidden_layers, fourier_order):
    H, L, F = hidden_size, num_hidden_layers, fourier_order
    assert L >= 1
    NF = 4 * F * F                      # fourier feature count (raw x adds 2 more)

    def leaky(z):                       # nn.LeakyReLU default slope
        return jnp.where(z > 0, z, 0.01 * z)

    def dotf(a, b):
        return jnp.dot(a, b, preferred_element_type=jnp.float32)

    def kernel(*refs):
        x_ref = refs[0]
        o_ref = refs[-1]
        it = iter(refs[1:-1])

        nvec = next(it)[...]            # (F, 1)   harmonics 0..F-1
        e0 = next(it)[...]              # (NF, 4F) constant 0/1 expansion (coord 0)
        e1 = next(it)[...]              # (NF, 4F) constant 0/1 expansion (coord 1)
        wraw = next(it)[...]            # (T, 2)   stacked raw-x weights, T=(L+1)H+1
        wfour = next(it)[...]           # (T, NF)  stacked fourier weights
        ball = next(it)[...]            # (T, 1)   stacked biases

        x = x_ref[...]                  # (2, TB)  batch on lanes
        x0 = x[0:1, :]                  # (1, TB)
        x1 = x[1:2, :]

        # Transcendentals only on the 2F distinct arguments per coordinate.
        a0 = nvec * x0                                   # (F, TB)  n*x0
        a1 = nvec * x1                                   # (F, TB)  n*x1
        args = jnp.concatenate([a0, a1], axis=0)         # (2F, TB)
        c = jnp.cos(args)                                # (2F, TB)
        s = jnp.sin(args)                                # (2F, TB)
        cs = jnp.concatenate([c, s], axis=0)             # (4F, TB)

        # Expand to the full (NF, TB) fourier feature set with two constant 0/1
        # matmuls (MXU) and one elementwise product:
        #   column order j = n*4F + m*4 + k, k in [cc, cs, sc, ss].
        pa = dotf(e0, cs)                                # cos/sin of n*x0, (NF, TB)
        pb = dotf(e1, cs)                                # cos/sin of m*x1, (NF, TB)
        ff = pa * pb                                     # (NF, TB)

        # ONE wide matmul gives the feature (+bias) contribution of every layer;
        # raw x rides on the VPU as two broadcast mul-adds.
        feat = dotf(wfour, ff) + wraw[:, 0:1] * x0 + wraw[:, 1:2] * x1 + ball
        # feat: (T, TB) rows [0:H)=inLayer, [(i+1)H:(i+2)H)=hidden_i, last=outLayer

        # ---- SkipConn ----
        cur = leaky(feat[0:H, :])                                   # inLayer
        wc0 = next(it)[...]                                         # (H, H)
        z = dotf(wc0, cur) + feat[H:2 * H, :]                       # hidden 0
        prev, cur = cur, leaky(z)
        for i in range(1, L):
            wcp = next(it)[...]                                     # (H, 2H)
            comb = jnp.concatenate([cur, prev], axis=0)             # (2H, TB)
            z = dotf(wcp, comb) + feat[(i + 1) * H:(i + 2) * H, :]
            prev, cur = cur, leaky(z)
        wout = next(it)[...]                                        # (1, 2H)
        comb = jnp.concatenate([cur, prev], axis=0)
        y = dotf(wout, comb) + feat[(L + 1) * H:(L + 1) * H + 1, :]  # (1, TB)

        o_ref[...] = (jnp.tanh(y) + 1.0) * 0.5                      # lane-dense store

    return kernel


# ----------------------------------------------------------------------------
# Wrapper
# ----------------------------------------------------------------------------
def fourier2d_pallas(x, packed_params, *, hidden_size, num_hidden_layers,
                     fourier_order, batch_tile=512):
    B = x.shape[0]
    Bp = ((B + batch_tile - 1) // batch_tile) * batch_tile
    if Bp != B:                                   # pad batch to a tile multiple
        x = jnp.concatenate(
            [x, jnp.zeros((Bp - B, x.shape[1]), x.dtype)], axis=0)

    kernel = make_fourier2d_kernel(hidden_size, num_hidden_layers, fourier_order)

    x_t = x.T                                     # (2, Bp): batch on the lane axis
    weight_specs = [pl.BlockSpec(p.shape, lambda i: (0, 0)) for p in packed_params]

    out = pl.pallas_call(
        kernel,
        out_shape=jax.ShapeDtypeStruct((1, Bp), jnp.float32),
        grid_spec=pltpu.PrefetchScalarGridSpec(
            num_scalar_prefetch=0,
            grid=(Bp // batch_tile,),
            in_specs=[pl.BlockSpec((2, batch_tile), lambda i: (0, i))] + weight_specs,
            out_specs=pl.BlockSpec((1, batch_tile), lambda i: (0, i)),
        ),
        compiler_params=pltpu.CompilerParams(dimension_semantics=("parallel",)),
    )(x_t, *packed_params)
    return out.reshape(Bp, 1)[:B]                 # (1,Bp) -> (B,1)


# ----------------------------------------------------------------------------
# Deterministic parameter initialization (synthetic; matches module shapes)
# ----------------------------------------------------------------------------
def init_params(key, hidden_size, num_hidden_layers, fourier_order):
    H, L, F = hidden_size, num_hidden_layers, fourier_order
    init_size = 4 * F * F + 2

    def linear(k, fan_in, fan_out):
        k1, k2 = jax.random.split(k)
        W = jax.random.normal(k1, (fan_in, fan_out), jnp.float32) / jnp.sqrt(
            jnp.float32(fan_in))
        b = 0.01 * jax.random.normal(k2, (fan_out,), jnp.float32)
        return W, b

    keys = jax.random.split(key, L + 2)
    W_in, b_in = linear(keys[0], init_size, H)
    hidden = []
    for i in range(L):
        fan_in = H + init_size if i == 0 else 2 * H + init_size
        hidden.append(linear(keys[1 + i], fan_in, H))
    W_out, b_out = linear(keys[L + 1], 2 * H + init_size, 1)
    return (W_in, b_in), hidden, (W_out, b_out)


def pack_for_kernel(params, hidden_size, fourier_order):
    """Repack concat-layout weights into the kernel's transposed/stacked form."""
    H, F = hidden_size, fourier_order
    NF = 4 * F * F
    (W_in, b_in), hidden, (W_out, b_out) = params
    L = len(hidden)

    # Constant expansion matrices over the stacked [cos(args); sin(args)] slab,
    # where args = [n*x0 (F rows); m*x1 (F rows)]:
    #   cos(n*x0) -> row n        cos(m*x1) -> row F + m
    #   sin(n*x0) -> row 2F + n   sin(m*x1) -> row 3F + m
    # feature order j = n*4F + m*4 + k with k in [cc, cs, sc, ss].
    e0 = np.zeros((NF, 4 * F), np.float32)
    e1 = np.zeros((NF, 4 * F), np.float32)
    for j in range(NF):
        n = j // (4 * F)
        m = (j // 4) % F
        k = j % 4
        e0[j, n if k < 2 else 2 * F + n] = 1.0
        e1[j, F + m if k % 2 == 0 else 3 * F + m] = 1.0
    nvec = jnp.arange(F, dtype=jnp.float32).reshape(F, 1)

    # Stack every layer's feature-consuming rows (fourier + raw-x) and biases.
    raw_rows = [W_in[0:2]]        # feature vector f = [x(2), fourier(NF)]
    four_rows = [W_in[2:]]
    biases = [b_in]
    for i, (W, b) in enumerate(hidden):
        off = H if i == 0 else 2 * H
        raw_rows.append(W[off:off + 2])
        four_rows.append(W[off + 2:])
        biases.append(b)
    raw_rows.append(W_out[2 * H:2 * H + 2])
    four_rows.append(W_out[2 * H + 2:])
    biases.append(b_out)

    wraw_t = jnp.concatenate([r.T for r in raw_rows], axis=0)      # (T, 2)
    wfour_t = jnp.concatenate([f.T for f in four_rows], axis=0)    # (T, NF)
    bias_all = jnp.concatenate(biases)[:, None]                    # (T, 1)

    packed = [nvec, jnp.asarray(e0), jnp.asarray(e1), wraw_t, wfour_t, bias_all]

    # Skip-connection weights, transposed (merged [cur|prev] for i >= 1 and out).
    W0, _ = hidden[0]
    packed.append(W0[0:H].T)                                       # (H, H)
    for i in range(1, L):
        Wi, _ = hidden[i]
        packed.append(Wi[0:2 * H].T)                               # (H, 2H)
    packed.append(W_out[0:2 * H].T)                                # (1, 2H)
    return packed


# ----------------------------------------------------------------------------
# Pure-JAX reference (mirrors the PyTorch forward exactly)
# ----------------------------------------------------------------------------
def reference_forward(x, params, fourier_order):
    (W_in, b_in), hidden, (W_out, b_out) = params
    feats = [x]
    for n in range(fourier_order):
        for m in range(fourier_order):
            c0, s0 = jnp.cos(n * x[:, 0]), jnp.sin(n * x[:, 0])
            c1, s1 = jnp.cos(m * x[:, 1]), jnp.sin(m * x[:, 1])
            feats += [(c0 * c1)[:, None], (c0 * s1)[:, None],
                      (s0 * c1)[:, None], (s0 * s1)[:, None]]
    f = jnp.concatenate(feats, axis=1)

    def leaky(z):
        return jnp.where(z > 0, z, 0.01 * z)

    cur = leaky(f @ W_in + b_in)
    prev = jnp.zeros((x.shape[0], 0), jnp.float32)
    for (W, b) in hidden:
        combined = jnp.concatenate([cur, prev, f], axis=1)
        prev = cur
        cur = leaky(combined @ W + b)
    y = jnp.concatenate([cur, prev, f], axis=1) @ W_out + b_out
    return (jnp.tanh(y) + 1.0) / 2.0


# ----------------------------------------------------------------------------
if __name__ == "__main__":
    # TODO(synk): the optional `linmap` input remap (None by default) is omitted.
    FOURIER_ORDER = 4
    HIDDEN_SIZE = 32
    NUM_HIDDEN_LAYERS = 3
    B = 2048
    BATCH_TILE = 512                    # >=2 grid steps so v7x can use both TCs

    key = jax.random.PRNGKey(0)
    k_x, k_p = jax.random.split(key)
    x = jax.random.uniform(k_x, (B, 2), jnp.float32, minval=-1.0, maxval=1.0)

    params = init_params(k_p, HIDDEN_SIZE, NUM_HIDDEN_LAYERS, FOURIER_ORDER)
    packed = pack_for_kernel(params, HIDDEN_SIZE, FOURIER_ORDER)

    run = functools.partial(fourier2d_pallas,
                            hidden_size=HIDDEN_SIZE,
                            num_hidden_layers=NUM_HIDDEN_LAYERS,
                            fourier_order=FOURIER_ORDER,
                            batch_tile=BATCH_TILE)

    out = jax.block_until_ready(run(x, packed))

    ref = reference_forward(x, params, FOURIER_ORDER)
    assert out.shape == (B, 1)
    if not jnp.allclose(out, ref, rtol=1e-4, atol=2e-5):
        err = float(jnp.max(jnp.abs(out - ref)))
        raise AssertionError(f"Pallas kernel mismatch vs reference (max abs err {err})")
    print("KERNEL_OK")
</pallas_src>

<mosaic_0001>
module attributes {stable_mosaic.version = 11 : i64} {
  func.func @kernel(%arg0: i32, %arg1: memref<2x512xf32, #tpu.memory_space<vmem>>, %arg2: memref<4x1xf32, #tpu.memory_space<vmem>>, %arg3: memref<64x16xf32, #tpu.memory_space<vmem>>, %arg4: memref<64x16xf32, #tpu.memory_space<vmem>>, %arg5: memref<129x2xf32, #tpu.memory_space<vmem>>, %arg6: memref<129x64xf32, #tpu.memory_space<vmem>>, %arg7: memref<129x1xf32, #tpu.memory_space<vmem>>, %arg8: memref<32x32xf32, #tpu.memory_space<vmem>>, %arg9: memref<32x64xf32, #tpu.memory_space<vmem>>, %arg10: memref<32x64xf32, #tpu.memory_space<vmem>>, %arg11: memref<1x64xf32, #tpu.memory_space<vmem>>, %arg12: memref<1x512xf32, #tpu.memory_space<vmem>>) attributes {dimension_semantics = [#tpu.dimension_semantics<parallel>], iteration_bounds = array<i64: 4>, scalar_prefetch = 0 : i64, scratch_operands = 0 : i64, tpu.core_type = #tpu.core_type<tc>, window_params = [{transform_indices = @transform_0, window_bounds = array<i64: 2, 512>}, {pipeline_mode = #tpu.pipeline_mode<synchronous>, transform_indices = @transform_1, window_bounds = array<i64: 4, 1>}, {pipeline_mode = #tpu.pipeline_mode<synchronous>, transform_indices = @transform_2, window_bounds = array<i64: 64, 16>}, {pipeline_mode = #tpu.pipeline_mode<synchronous>, transform_indices = @transform_3, window_bounds = array<i64: 64, 16>}, {pipeline_mode = #tpu.pipeline_mode<synchronous>, transform_indices = @transform_4, window_bounds = array<i64: 129, 2>}, {pipeline_mode = #tpu.pipeline_mode<synchronous>, transform_indices = @transform_5, window_bounds = array<i64: 129, 64>}, {pipeline_mode = #tpu.pipeline_mode<synchronous>, transform_indices = @transform_6, window_bounds = array<i64: 129, 1>}, {pipeline_mode = #tpu.pipeline_mode<synchronous>, transform_indices = @transform_7, window_bounds = array<i64: 32, 32>}, {pipeline_mode = #tpu.pipeline_mode<synchronous>, transform_indices = @transform_8, window_bounds = array<i64: 32, 64>}, {pipeline_mode = #tpu.pipeline_mode<synchronous>, transform_indices = @transform_9, window_bounds = array<i64: 32, 64>}, {pipeline_mode = #tpu.pipeline_mode<synchronous>, transform_indices = @transform_10, window_bounds = array<i64: 1, 64>}, {transform_indices = @transform_11, window_bounds = array<i64: 1, 512>}]} {
    %c0 = arith.constant 0 : index
    %c0_0 = arith.constant 0 : index
    %0 = vector.load %arg2[%c0, %c0_0] : memref<4x1xf32, #tpu.memory_space<vmem>>, vector<4x1xf32>
    %c0_1 = arith.constant 0 : index
    %c0_2 = arith.constant 0 : index
    %1 = vector.load %arg3[%c0_1, %c0_2] : memref<64x16xf32, #tpu.memory_space<vmem>>, vector<64x16xf32>
    %c0_3 = arith.constant 0 : index
    %c0_4 = arith.constant 0 : index
    %2 = vector.load %arg4[%c0_3, %c0_4] : memref<64x16xf32, #tpu.memory_space<vmem>>, vector<64x16xf32>
    %c0_5 = arith.constant 0 : index
    %c0_6 = arith.constant 0 : index
    %3 = vector.load %arg5[%c0_5, %c0_6] : memref<129x2xf32, #tpu.memory_space<vmem>>, vector<129x2xf32>
    %c0_7 = arith.constant 0 : index
    %c0_8 = arith.constant 0 : index
    %4 = vector.load %arg6[%c0_7, %c0_8] : memref<129x64xf32, #tpu.memory_space<vmem>>, vector<129x64xf32>
    %c0_9 = arith.constant 0 : index
    %c0_10 = arith.constant 0 : index
    %5 = vector.load %arg7[%c0_9, %c0_10] : memref<129x1xf32, #tpu.memory_space<vmem>>, vector<129x1xf32>
    %c0_11 = arith.constant 0 : index
    %c0_12 = arith.constant 0 : index
    %6 = vector.load %arg1[%c0_11, %c0_12] : memref<2x512xf32, #tpu.memory_space<vmem>>, vector<2x512xf32>
    %7 = vector.extract_strided_slice %6 {offsets = [0, 0], sizes = [1, 512], strides = [1, 1]} : vector<2x512xf32> to vector<1x512xf32>
    %8 = vector.extract_strided_slice %6 {offsets = [1, 0], sizes = [1, 512], strides = [1, 1]} : vector<2x512xf32> to vector<1x512xf32>
    %9 = vector.broadcast %0 : vector<4x1xf32> to vector<4x512xf32>
    %10 = vector.broadcast %7 : vector<1x512xf32> to vector<4x512xf32>
    %11 = arith.mulf %9, %10 : vector<4x512xf32>
    %12 = vector.broadcast %0 : vector<4x1xf32> to vector<4x512xf32>
    %13 = vector.broadcast %8 : vector<1x512xf32> to vector<4x512xf32>
    %14 = arith.mulf %12, %13 : vector<4x512xf32>
    %15 = tpu.concatenate %11, %14 in 0 : vector<4x512xf32>, vector<4x512xf32> -> vector<8x512xf32>
    %16 = math.cos %15 : vector<8x512xf32>
    %17 = math.sin %15 : vector<8x512xf32>
    %18 = tpu.concatenate %16, %17 in 0 : vector<8x512xf32>, vector<8x512xf32> -> vector<16x512xf32>
    %cst = arith.constant dense<0.000000e+00> : vector<64x512xf32>
    %19 = tpu.matmul %1, %18, %cst {dimension_numbers = #tpu.dot_dimension_numbers<[1], [0], [0], [1], [0, 0, 1, 1], [], []>} : vector<64x16xf32>, vector<16x512xf32>, vector<64x512xf32> -> vector<64x512xf32>
    %cst_13 = arith.constant dense<0.000000e+00> : vector<64x512xf32>
    %20 = tpu.matmul %2, %18, %cst_13 {dimension_numbers = #tpu.dot_dimension_numbers<[1], [0], [0], [1], [0, 0, 1, 1], [], []>} : vector<64x16xf32>, vector<16x512xf32>, vector<64x512xf32> -> vector<64x512xf32>
    %21 = arith.mulf %19, %20 : vector<64x512xf32>
    %cst_14 = arith.constant dense<0.000000e+00> : vector<129x512xf32>
    %22 = tpu.matmul %4, %21, %cst_14 {dimension_numbers = #tpu.dot_dimension_numbers<[1], [0], [0], [1], [0, 0, 1, 1], [], []>} : vector<129x64xf32>, vector<64x512xf32>, vector<129x512xf32> -> vector<129x512xf32>
    %23 = vector.extract_strided_slice %3 {offsets = [0, 0], sizes = [129, 1], strides = [1, 1]} : vector<129x2xf32> to vector<129x1xf32>
    %24 = vector.broadcast %23 : vector<129x1xf32> to vector<129x512xf32>
    %25 = vector.broadcast %7 : vector<1x512xf32> to vector<129x512xf32>
    %26 = arith.mulf %24, %25 : vector<129x512xf32>
    %27 = arith.addf %22, %26 : vector<129x512xf32>
    %28 = vector.extract_strided_slice %3 {offsets = [0, 1], sizes = [129, 1], strides = [1, 1]} : vector<129x2xf32> to vector<129x1xf32>
    %29 = vector.broadcast %28 : vector<129x1xf32> to vector<129x512xf32>
    %30 = vector.broadcast %8 : vector<1x512xf32> to vector<129x512xf32>
    %31 = arith.mulf %29, %30 : vector<129x512xf32>
    %32 = arith.addf %27, %31 : vector<129x512xf32>
    %33 = vector.broadcast %5 : vector<129x1xf32> to vector<129x512xf32>
    %34 = arith.addf %32, %33 : vector<129x512xf32>
    %35 = vector.extract_strided_slice %34 {offsets = [0, 0], sizes = [32, 512], strides = [1, 1]} : vector<129x512xf32> to vector<32x512xf32>
    %cst_15 = arith.constant 0.000000e+00 : f32
    %36 = vector.broadcast %cst_15 : f32 to vector<32x512xf32>
    %37 = arith.cmpf ogt, %35, %36 : vector<32x512xf32>
    %cst_16 = arith.constant 0.00999999977 : f32
    %38 = vector.broadcast %cst_16 : f32 to vector<32x512xf32>
    %39 = arith.mulf %38, %35 : vector<32x512xf32>
    %40 = arith.select %37, %35, %39 : vector<32x512xi1>, vector<32x512xf32>
    %c0_17 = arith.constant 0 : index
    %c0_18 = arith.constant 0 : index
    %41 = vector.load %arg8[%c0_17, %c0_18] : memref<32x32xf32, #tpu.memory_space<vmem>>, vector<32x32xf32>
    %cst_19 = arith.constant dense<0.000000e+00> : vector<32x512xf32>
    %42 = tpu.matmul %41, %40, %cst_19 {dimension_numbers = #tpu.dot_dimension_numbers<[1], [0], [0], [1], [0, 0, 1, 1], [], []>} : vector<32x32xf32>, vector<32x512xf32>, vector<32x512xf32> -> vector<32x512xf32>
    %43 = vector.extract_strided_slice %34 {offsets = [32, 0], sizes = [32, 512], strides = [1, 1]} : vector<129x512xf32> to vector<32x512xf32>
    %44 = arith.addf %42, %43 : vector<32x512xf32>
    %cst_20 = arith.constant 0.000000e+00 : f32
    %45 = vector.broadcast %cst_20 : f32 to vector<32x512xf32>
    %46 = arith.cmpf ogt, %44, %45 : vector<32x512xf32>
    %cst_21 = arith.constant 0.00999999977 : f32
    %47 = vector.broadcast %cst_21 : f32 to vector<32x512xf32>
    %48 = arith.mulf %47, %44 : vector<32x512xf32>
    %49 = arith.select %46, %44, %48 : vector<32x512xi1>, vector<32x512xf32>
    %c0_22 = arith.constant 0 : index
    %c0_23 = arith.constant 0 : index
    %50 = vector.load %arg9[%c0_22, %c0_23] : memref<32x64xf32, #tpu.memory_space<vmem>>, vector<32x64xf32>
    %51 = tpu.concatenate %49, %40 in 0 : vector<32x512xf32>, vector<32x512xf32> -> vector<64x512xf32>
    %cst_24 = arith.constant dense<0.000000e+00> : vector<32x512xf32>
    %52 = tpu.matmul %50, %51, %cst_24 {dimension_numbers = #tpu.dot_dimension_numbers<[1], [0], [0], [1], [0, 0, 1, 1], [], []>} : vector<32x64xf32>, vector<64x512xf32>, vector<32x512xf32> -> vector<32x512xf32>
    %53 = vector.extract_strided_slice %34 {offsets = [64, 0], sizes = [32, 512], strides = [1, 1]} : vector<129x512xf32> to vector<32x512xf32>
    %54 = arith.addf %52, %53 : vector<32x512xf32>
    %cst_25 = arith.constant 0.000000e+00 : f32
    %55 = vector.broadcast %cst_25 : f32 to vector<32x512xf32>
    %56 = arith.cmpf ogt, %54, %55 : vector<32x512xf32>
    %cst_26 = arith.constant 0.00999999977 : f32
    %57 = vector.broadcast %cst_26 : f32 to vector<32x512xf32>
    %58 = arith.mulf %57, %54 : vector<32x512xf32>
    %59 = arith.select %56, %54, %58 : vector<32x512xi1>, vector<32x512xf32>
    %c0_27 = arith.constant 0 : index
    %c0_28 = arith.constant 0 : index
    %60 = vector.load %arg10[%c0_27, %c0_28] : memref<32x64xf32, #tpu.memory_space<vmem>>, vector<32x64xf32>
    %61 = tpu.concatenate %59, %49 in 0 : vector<32x512xf32>, vector<32x512xf32> -> vector<64x512xf32>
    %cst_29 = arith.constant dense<0.000000e+00> : vector<32x512xf32>
    %62 = tpu.matmul %60, %61, %cst_29 {dimension_numbers = #tpu.dot_dimension_numbers<[1], [0], [0], [1], [0, 0, 1, 1], [], []>} : vector<32x64xf32>, vector<64x512xf32>, vector<32x512xf32> -> vector<32x512xf32>
    %63 = vector.extract_strided_slice %34 {offsets = [96, 0], sizes = [32, 512], strides = [1, 1]} : vector<129x512xf32> to vector<32x512xf32>
    %64 = arith.addf %62, %63 : vector<32x512xf32>
    %cst_30 = arith.constant 0.000000e+00 : f32
    %65 = vector.broadcast %cst_30 : f32 to vector<32x512xf32>
    %66 = arith.cmpf ogt, %64, %65 : vector<32x512xf32>
    %cst_31 = arith.constant 0.00999999977 : f32
    %67 = vector.broadcast %cst_31 : f32 to vector<32x512xf32>
    %68 = arith.mulf %67, %64 : vector<32x512xf32>
    %69 = arith.select %66, %64, %68 : vector<32x512xi1>, vector<32x512xf32>
    %c0_32 = arith.constant 0 : index
    %c0_33 = arith.constant 0 : index
    %70 = vector.load %arg11[%c0_32, %c0_33] : memref<1x64xf32, #tpu.memory_space<vmem>>, vector<1x64xf32>
    %71 = tpu.concatenate %69, %59 in 0 : vector<32x512xf32>, vector<32x512xf32> -> vector<64x512xf32>
    %cst_34 = arith.constant dense<0.000000e+00> : vector<1x512xf32>
    %72 = tpu.matmul %70, %71, %cst_34 {dimension_numbers = #tpu.dot_dimension_numbers<[1], [0], [0], [1], [0, 0, 1, 1], [], []>} : vector<1x64xf32>, vector<64x512xf32>, vector<1x512xf32> -> vector<1x512xf32>
    %73 = vector.extract_strided_slice %34 {offsets = [128, 0], sizes = [1, 512], strides = [1, 1]} : vector<129x512xf32> to vector<1x512xf32>
    %74 = arith.addf %72, %73 : vector<1x512xf32>
    %75 = math.tanh %74 : vector<1x512xf32>
    %cst_35 = arith.constant 1.000000e+00 : f32
    %76 = vector.broadcast %cst_35 : f32 to vector<1x512xf32>
    %77 = arith.addf %75, %76 : vector<1x512xf32>
    %cst_36 = arith.constant 5.000000e-01 : f32
    %78 = vector.broadcast %cst_36 : f32 to vector<1x512xf32>
    %79 = arith.mulf %77, %78 : vector<1x512xf32>
    %c0_37 = arith.constant 0 : index
    %c0_38 = arith.constant 0 : index
    %80 = vector.load %arg12[%c0_37, %c0_38] : memref<1x512xf32, #tpu.memory_space<vmem>>, vector<1x512xf32>
    tpu.vector_store %arg12[%c0_37, %c0_38], %79 {strides = array<i32>} : memref<1x512xf32, #tpu.memory_space<vmem>>, vector<1x512xf32>,
    return
  }
  func.func @transform_0(%arg0: i32) -> (i32, i32) {
    %c0_i32 = arith.constant 0 : i32
    %c0_i32_0 = arith.constant 0 : i32
    return %c0_i32, %arg0 : i32, i32
  }
  func.func @transform_1(%arg0: i32) -> (i32, i32) {
    %c0_i32 = arith.constant 0 : i32
    %c0_i32_0 = arith.constant 0 : i32
    %c0_i32_1 = arith.constant 0 : i32
    return %c0_i32, %c0_i32_0 : i32, i32
  }
  func.func @transform_2(%arg0: i32) -> (i32, i32) {
    %c0_i32 = arith.constant 0 : i32
    %c0_i32_0 = arith.constant 0 : i32
    %c0_i32_1 = arith.constant 0 : i32
    return %c0_i32, %c0_i32_0 : i32, i32
  }
  func.func @transform_3(%arg0: i32) -> (i32, i32) {
    %c0_i32 = arith.constant 0 : i32
    %c0_i32_0 = arith.constant 0 : i32
    %c0_i32_1 = arith.constant 0 : i32
    return %c0_i32, %c0_i32_0 : i32, i32
  }
  func.func @transform_4(%arg0: i32) -> (i32, i32) {
    %c0_i32 = arith.constant 0 : i32
    %c0_i32_0 = arith.constant 0 : i32
    %c0_i32_1 = arith.constant 0 : i32
    return %c0_i32, %c0_i32_0 : i32, i32
  }
  func.func @transform_5(%arg0: i32) -> (i32, i32) {
    %c0_i32 = arith.constant 0 : i32
    %c0_i32_0 = arith.constant 0 : i32
    %c0_i32_1 = arith.constant 0 : i32
    return %c0_i32, %c0_i32_0 : i32, i32
  }
  func.func @transform_6(%arg0: i32) -> (i32, i32) {
    %c0_i32 = arith.constant 0 : i32
    %c0_i32_0 = arith.constant 0 : i32
    %c0_i32_1 = arith.constant 0 : i32
    return %c0_i32, %c0_i32_0 : i32, i32
  }
  func.func @transform_7(%arg0: i32) -> (i32, i32) {
    %c0_i32 = arith.constant 0 : i32
    %c0_i32_0 = arith.constant 0 : i32
    %c0_i32_1 = arith.constant 0 : i32
    return %c0_i32, %c0_i32_0 : i32, i32
  }
  func.func @transform_8(%arg0: i32) -> (i32, i32) {
    %c0_i32 = arith.constant 0 : i32
    %c0_i32_0 = arith.constant 0 : i32
    %c0_i32_1 = arith.constant 0 : i32
    return %c0_i32, %c0_i32_0 : i32, i32
  }
  func.func @transform_9(%arg0: i32) -> (i32, i32) {
    %c0_i32 = arith.constant 0 : i32
    %c0_i32_0 = arith.constant 0 : i32
    %c0_i32_1 = arith.constant 0 : i32
    return %c0_i32, %c0_i32_0 : i32, i32
  }
  func.func @transform_10(%arg0: i32) -> (i32, i32) {
    %c0_i32 = arith.constant 0 : i32
    %c0_i32_0 = arith.constant 0 : i32
    %c0_i32_1 = arith.constant 0 : i32
    return %c0_i32, %c0_i32_0 : i32, i32
  }
  func.func @transform_11(%arg0: i32) -> (i32, i32) {
    %c0_i32 = arith.constant 0 : i32
    %c0_i32_0 = arith.constant 0 : i32
    return %c0_i32, %arg0 : i32, i32
  }
}

</mosaic_0001>

<bundles_post_ra>
// kernel: tpu_custom_call.1
= control target key start
LH: loop header
LB: loop body
LE: loop exit
PB: predicated region body
PF: predicated region fallthrough
CT: control target
= control target key end

     0   :  { %s5965_s0 = inlined_call_operand.vmem [shape: f32[2,2048], index: 0, kind: input, shape index: {}]   ;;  %s5966_s1 = inlined_call_operand.vmem [shape: f32[4,1], index: 1, kind: input, shape index: {}]   ;;  %s5967_s2 = inlined_call_operand.vmem [shape: f32[64,16], index: 2, kind: input, shape index: {}]   ;;  %s5968_s3 = inlined_call_operand.vmem [shape: f32[64,16], index: 3, kind: input, shape index: {}]   ;;  %s5969_s4 = inlined_call_operand.vmem [shape: f32[129,2], index: 4, kind: input, shape index: {}]   ;;  %s5970_s5 = inlined_call_operand.vmem [shape: f32[129,64], index: 5, kind: input, shape index: {}]   ;;  %s5971_s6 = inlined_call_operand.vmem [shape: f32[129,1], index: 6, kind: input, shape index: {}]   ;;  %s5972_s7 = inlined_call_operand.vmem [shape: f32[32,32], index: 7, kind: input, shape index: {}]   ;;  %s5973_s8 = inlined_call_operand.vmem [shape: f32[32,64], index: 8, kind: input, shape index: {}]   ;;  %s5974_s9 = inlined_call_operand.vmem [shape: f32[32,64], index: 9, kind: input, shape index: {}]   ;;  %s5975_s10 = inlined_call_operand.vmem [shape: f32[1,64], index: 10, kind: input, shape index: {}]   ;;  %s5976_s11 = inlined_call_operand.hbm [shape: f32[1,2048], index: 11, kind: output, shape index: {}]  }
   0x1   :  { %5992 = sst [smem:[#allocation34_spill]] %s5965_s0 }
   0x2   :  { %5993 = sst [smem:[#allocation35_spill]] %s5966_s1 }
   0x3   :  { %16 = vsyncpa [#allocation3], 0 }
   0x4   :  { %18 = vsyncpa [#allocation3 + $0x1], 0  ;;  %s4241_s17 = smov 0   ;;  %s4243_s18 = smov 0  }
   0x5   :  { %s4245_s19 = smov 0   ;;  %s4247_s20 = smov 0  }
   0x6 LB: > { %s4262_s21 = sadd.s32 4294967295, %s4168_s20   ;;  %s3858_s22 = sadd.s32 4294967294, %s4168_s20   ;;  %s4168_s20 = sphi %s4247_s20, %s6077_s20   ;;  %s4164_s19 = sphi %s4245_s19, %s6076_s19   ;;  %s4160_s18 = sphi %s4243_s18, %s6075_s18   ;;  %s4156_s17 = sphi %s4241_s17, %s6074_s17  }
   0x7   : > { %s4266_s23 = sadd.s32 1, %s4168_s20   ;;  %s267_s24 = sadd.s32 1, %s4164_s19 }
   0x8   : > { %s264_s25 = ssub.s32 %s4168_s20, %s4266_s23  ;;  %p277_p0 = scmp.ne.s32.totalorder %s4164_s19, %s4160_s18 }
   0x9   : > { %p265_p1 = scmp.eq.s32.totalorder %s264_s25, 0  ;;  %p278_p2 = scmp.eq.s32.totalorder %s4262_s21, 3 }
   0xa   : > { %p283_p3 = scmp.ne.s32.totalorder %s4160_s18, %s4156_s17  ;;  %p284_p4 = scmp.eq.s32.totalorder %s3858_s22, 3 }
   0xb   : > { %s4277_s26 = scalar_select %p265_p1, %s4164_s19, %s267_s24  }
   0xc   : > { %p4279_p5 = por %p278_p2, %p277_p0  ;;  %p4283_p6 = por %p284_p4, %p283_p3 }
   0xd   : > { %p3861_p7 = scmp.ge.s32.totalorder %s4168_s20, 1  ;;  %p341_p8 = scmp.lt.s32.totalorder %s4168_s20, 5 }
   0xf   : > { %p342_p9 = pnand %p3861_p7, %p341_p8 }
  0x11   : > { %345 = sbr.rel (%p342_p9) target bundleno = 1692 (0x69c), region = 64 }
  0x16   : > { %s5996_s1 = sld [smem:[#allocation35_spill]]  ;;  %v5980_v1 = vmov 0   ;;  %v408_v2 = vld [vmem:[%s5969_s4 + $0x18] sm:$0xff]  ;;  %v406_v3 = vld [vmem:[%s5969_s4 + $0x8] sm:$0xff]  ;;  %v405_v4 = vld [vmem:[%s5969_s4] sm:$0xff]  ;;  %s3863_s29 = sshll.u32 %s4262_s21, 2  ;;  %v5977_v26 = vlaneseq }
  0x17   : > { %4060 = vset.pattern.permute.xlu0 %v5980_v1  ;;  %4061 = vset.pattern.permute.xlu1 %v5980_v1  ;;  %v442_v5 = vld [vmem:[%s5971_s6 + $0x18] sm:$0xff]  ;;  %v441_v6 = vld [vmem:[%s5971_s6 + $0x10] sm:$0xff]  ;;  %v439_v7 = vld [vmem:[%s5971_s6] sm:$0xff]  ;;  %p382_p10 = scmp.lt.s32.totalorder %s3863_s29, 15  ;;  %s5998_s0 = sld [smem:[#allocation34_spill]]  ;;  %vm555_vm0 = vcmask 1043456  }
  0x18   : > { %v411_v8 = vld [vmem:[%s5969_s4 + $0x30] sm:$0xff]  ;;  %v410_v9 = vld [vmem:[%s5969_s4 + $0x28] sm:$0xff]  ;;  %v409_v10 = vld [vmem:[%s5969_s4 + $0x20] sm:$0xff]  ;;  %v4368_v27 = vshrl.u32 %v5977_v26, 7  ;;  %s3994_s13 = sshll.u32 %s4262_s21, 6 }
  0x19   : > { %v446_v11 = vld [vmem:[%s5971_s6 + $0x38] sm:$0xff]  ;;  %v445_v12 = vld [vmem:[%s5971_s6 + $0x30] sm:$0xff]  ;;  %v443_v13 = vld [vmem:[%s5971_s6 + $0x20] sm:$0xff]  ;;  %s6079_s29 = smov (!%p382_p10, %s3863_s29), 15  ;;  %s3797_s24 = scalar_lea.hbm %s5976_s11, %s3994_s13 }
  0x1a   : > { %v415_v14 = vld [vmem:[%s5969_s4 + $0x50] sm:$0xff]  ;;  %v414_v15 = vld [vmem:[%s5969_s4 + $0x48] sm:$0xff]  ;;  %v413_v16 = vld [vmem:[%s5969_s4 + $0x40] sm:$0xff]  ;;  %s3864_s30 = sshll.u32 %s6079_s29, 1  ;;  %5997 = vst [vmem:[#allocation5_spill] sm:$0xff] %v4368_v27  ;;  %v509_v28 = vsub.s32 3, %v4368_v27 }
  0x1b   : > { %v450_v17 = vld [vmem:[%s5971_s6 + $0x58] sm:$0xff]  ;;  %v449_v18 = vld [vmem:[%s5971_s6 + $0x50] sm:$0xff]  ;;  %v447_v19 = vld [vmem:[%s5971_s6 + $0x40] sm:$0xff]  ;;  %v517_v29 = vsub.s32 7, %v4368_v27  ;;  %v505_v31 = vsub.s32 1, %v4368_v27  ;;  %v469_v32 = vsub.s32 2, %v4368_v27 }
  0x1c   : > { %v388_v0 = vld [vmem:[%s5996_s1] sm:$0xf]  ;;  %v419_v20 = vld [vmem:[%s5969_s4 + $0x70] sm:$0xff]  ;;  %v418_v21 = vld [vmem:[%s5969_s4 + $0x68] sm:$0xff]  ;;  %v477_v33 = vsub.s32 6, %v4368_v27  ;;  %v465_v36 = vsub.s32 0, %v4368_v27 }
  0x1d   : > { %459 = vperm.xlu0 %4060, %v388_v0   ;;  %v417_v22 = vld [vmem:[%s5969_s4 + $0x60] sm:$0xff]  ;;  %v454_v23 = vld [vmem:[%s5971_s6 + $0x78] sm:$0xff]  ;;  %v453_v24 = vld [vmem:[%s5971_s6 + $0x70] sm:$0xff]  ;;  %s385_s14 = scalar_lea.vmem %s5998_s0, %s3864_s30  ;;  %v513_v47 = vsub.s32 5, %v4368_v27  ;;  %v473_v52 = vsub.s32 4, %v4368_v27  ;;  %s378_s30 = sand.u32 1, %s4160_s18  }
  0x1e   : > { %v451_v25 = vld [vmem:[%s5971_s6 + $0x60] sm:$0xff]  ;;  %s3862_s12 = sshll.u32 %s378_s30, 2  ;;  %s3785_s25 = scalar_lea.sflag [#allocation3], %s378_s30 }
  0x1f   : > { %v456_v30 = vld [vmem:[%s385_s14] sm:$0xff]  ;;  %s380_s14 = scalar_lea.vmem [#allocation2], %s3862_s12  ;;  %s4180_s0 = smov [#allocation2]  }
  0x20   : > { %v510_v34 = vrot.slane %v456_v30, %v509_v28  ;;  %v518_v35 = vrot.slane %v456_v30, %v517_v29  ;;  %v506_v37 = vrot.slane %v456_v30, %v505_v31  ;;  %v470_v38 = vrot.slane %v456_v30, %v469_v32  ;;  %s3799_s15 = sshll.u32 %s380_s14, 4  ;;  %s4112_s21 = sshll.u32 %s4180_s0, 4  ;;  %s3800_s15 = int_to_ptr.vmem [resolvable:$true] %s3799_s15  ;;  %s4113_s21 = int_to_ptr.vmem [resolvable:$false] %s4112_s21 }
  0x21   : > { %1938 = vperm.xlu0 %4060, %v408_v2   ;;  %v478_v39 = vrot.slane %v456_v30, %v477_v33  ;;  %v466_v42 = vrot.slane %v456_v30, %v465_v36  ;;  %v514_v58 = vrot.slane %v456_v30, %v513_v47  ;;  %s4108_s29 = scalar_lea.vmem %s3800_s15, 64  ;;  %s4114_s12 = scalar_lea.vmem %s4113_s21, 128 }
  0x22   : > { %v4379_v40 = vrot.slane %v510_v34, %v505_v31  ;;  %v4381_v41 = vrot.slane %v518_v35, %v505_v31  ;;  %v4383_v43 = vrot.slane %v506_v37, %v505_v31  ;;  %v4385_v44 = vrot.slane %v470_v38, %v465_v36  ;;  %p4109_p11 = scmp.ne.s32.totalorder %s3800_s15, %s4108_s29  ;;  %p4115_p0 = scmp.lt.s32.totalorder %s3800_s15, %s4113_s21 }
  0x23   : > { %v4387_v45 = vrot.slane %v478_v39, %v465_v36  ;;  %v4392_v50 = vrot.slane %v466_v42, %v465_v36  ;;  %v4171_v35 = vmov 683565275   ;;  %v4172_v39 = vmov 2475754826   ;;  %p4116_p1 = scmp.lt.s32.totalorder %s4114_s12, %s4108_s29 }
  0x24   : > { %5999 = vst [vmem:[#allocation6_spill] sm:$0xff] %v4381_v41  ;;  %p4110_p12 = pnand %p4109_p11, %p4279_p5 }
  0x25   : > { %1928 = vperm.xlu0 %4060, %v406_v3   ;;  %6000 = vst [vmem:[#allocation7_spill] sm:$0xff] %v4387_v45  ;;  %v474_v3 = vrot.slane %v456_v30, %v473_v52  ;;  %p4117_p2 = por %p4116_p1, %p4115_p0 }
  0x26   : > { %p4111_p13 = pneg %p4110_p12 }
  0x28   : > { %p4118_p3 = pnand %p4117_p2, %p4111_p13 }
  0x29   : > { %1923 = vperm.xlu0 %4060, %v405_v4  }
  0x2d   : > { %2681 = vperm.xlu0 %4060, %v442_v5  }
  0x31   : > { %2676 = vperm.xlu0 %4060, %v441_v6   ;;  %v4412_v6 = vrot.slane %v514_v58, %v505_v31  ;;  %v4176_v58 = vmov 1326507024  }
  0x33   : > { %6001 = vst [vmem:[#allocation8_spill] sm:$0xff] %v4412_v6 }
  0x35   : > { %2666 = vperm.xlu0 %4060, %v439_v7  }
  0x39   : > { %1953 = vperm.xlu0 %4060, %v411_v8  }
  0x3d   : > { %1948 = vperm.xlu0 %4060, %v410_v9  }
  0x41   : > { %1943 = vperm.xlu0 %4060, %v409_v10  }
  0x45   : > { %2701 = vperm.xlu0 %4060, %v446_v11  }
  0x49   : > { %2696 = vperm.xlu0 %4060, %v445_v12  }
  0x4d   : > { %2686 = vperm.xlu0 %4060, %v443_v13   ;;  %v4419_v13 = vrot.slane %v474_v3, %v465_v36 }
  0x4f   : > { %6002 = vst [vmem:[#allocation9_spill] sm:$0xff] %v4419_v13 }
  0x51   : > { %1973 = vperm.xlu0 %4060, %v415_v14  }
  0x55   : > { %1968 = vperm.xlu0 %4060, %v414_v15  }
  0x59   : > { %1963 = vperm.xlu0 %4060, %v413_v16  }
  0x5d   : > { %2721 = vperm.xlu0 %4060, %v450_v17  }
  0x61   : > { %2716 = vperm.xlu0 %4060, %v449_v18  }
  0x65   : > { %2706 = vperm.xlu0 %4060, %v447_v19  }
  0x69   : > { %1993 = vperm.xlu0 %4060, %v419_v20  }
  0x6d   : > { %1988 = vperm.xlu0 %4060, %v418_v21  }
  0x71   : > { %1983 = vperm.xlu0 %4060, %v417_v22  }
  0x75   : > { %2741 = vperm.xlu0 %4060, %v454_v23  }
  0x79   : > { %2736 = vperm.xlu0 %4060, %v453_v24  }
  0x7d   : > { %2726 = vperm.xlu0 %4060, %v451_v25  }
  0x98   : > { %v460_v46 = vpop.permute.xlu0 %459 }
  0x99   : > { %v540_v48 = vmul.f32 %v4379_v40, %v460_v46  ;;  %v542_v49 = vmul.f32 %v4381_v41, %v460_v46  ;;  %v539_v51 = vmul.f32 %v4383_v43, %v460_v46  ;;  %v500_v53 = vmul.f32 %v4385_v44, %v460_v46 }
  0x9a   : > { %v502_v55 = vmul.f32 %v4387_v45, %v460_v46  ;;  %v499_v63 = vmul.f32 %v4392_v50, %v460_v46  ;;  %v4422_v16 = vmul.f32 %v4412_v6, %v460_v46  ;;  %v4426_v23 = vmul.f32 %v4419_v13, %v460_v46 }
  0x9b   : > { %v548_v54 = vrot.slane %v540_v48, 4  ;;  %v550_v56 = vrot.slane %v542_v49, 4  ;;  %v547_v57 = vrot.slane %v539_v51, 4  ;;  %v4173_v46 = vmov 2131351028  }
  0x9c   : > { %v549_v29 = vrot.slane %v4422_v16, 4  ;;  %v4174_v48 = vmov 2102212464   ;;  %v4175_v51 = vmov 920167782  }
  0x9d   : > { %v4399_v59 = vsel %vm555_vm0, %v500_v53, %v548_v54  ;;  %v4402_v60 = vsel %vm555_vm0, %v502_v55, %v550_v56  ;;  %v4410_v5 = vsel %vm555_vm0, %v499_v63, %v547_v57 }
  0x9e   : > { %v663_v61 = vand.u32 2147483647, %v4399_v59  ;;  %v666_v62 = vand.u32 2139095040, %v4399_v59  ;;  %v869_v0 = vand.u32 2147483647, %v4402_v60  ;;  %v872_v2 = vand.u32 2139095040, %v4402_v60 }
  0x9f   : > { %v563_v11 = vand.u32 2139095040, %v4410_v5  ;;  %v560_v20 = vand.u32 2147483647, %v4410_v5  ;;  %vm665_vm14 = vcmp.lt.s32.totalorder %v4399_v59, 0 }
  0xa0   : > { %v667_v4 = vshrl.u32 %v666_v62, 23  ;;  %v670_v7 = vand.u32 8388607, %v663_v61  ;;  %v873_v8 = vshrl.u32 %v872_v2, 23  ;;  %v876_v9 = vand.u32 8388607, %v869_v0 }
  0xa1   : > { %v564_v15 = vshrl.u32 %v563_v11, 23  ;;  %v4435_v32 = vand.u32 8388607, %v560_v20  ;;  %vm4535_vm15 = vcmp.le.f32.partialorder %v663_v61, 0.7853982 }
  0xa2   : > { %v3869_v10 = vadd.s32 4294967169, %v667_v4  ;;  %v3877_v12 = vadd.s32 4294967169, %v873_v8  ;;  %v671_v17 = vor.u32 8388608, %v670_v7  ;;  %v877_v18 = vor.u32 8388608, %v876_v9 }
  0xa3   : > { %v3865_v21 = vadd.s32 4294967169, %v564_v15 }
  0xa4   : > { %v673_v14 = vadd.s32 1, %v3869_v10  ;;  %v879_v19 = vadd.s32 1, %v3877_v12  ;;  %v4429_v30 = vshll.u32 %v671_v17, 8  ;;  %v4431_v31 = vshll.u32 %v877_v18, 8 }
  0xa5   : > { %v4437_v33 = vadd.s32 1, %v3865_v21 }
  0xa6   : > { %vm674_vm1 = vcmp.gt.s32.totalorder %v673_v14, 0  ;;  %vm880_vm2 = vcmp.gt.s32.totalorder %v879_v19, 0 }
  0xa7   : > { %v675_v22 = vsel %vm674_vm1, %v673_v14, 0  ;;  %v881_v28 = vsel %vm880_vm2, %v879_v19, 0  ;;  %vm571_vm12 = vcmp.gt.s32.totalorder %v4437_v33, 0 }
  0xa8   : > { %v676_v24 = vshrl.u32 %v675_v22, 5  ;;  %v677_v25 = vand.u32 31, %v675_v22  ;;  %v4440_v37 = vshrl.u32 %v881_v28, 5  ;;  %v883_v38 = vand.u32 31, %v881_v28 }
  0xaa   : > { %v678_v34 = vsub.s32 32, %v677_v25  ;;  %v680_v36 = vshll.u32 %v4171_v35, %v677_v25  ;;  %v683_v42 = vshll.u32 %v4172_v39, %v677_v25  ;;  %v686_v47 = vshll.u32 %v4173_v46, %v677_v25 }
  0xab   : > { %v689_v49 = vshll.u32 %v4174_v48, %v677_v25  ;;  %v692_v52 = vshll.u32 %v4175_v51, %v677_v25  ;;  %vm695_vm3 = vcmp.lt.s32.totalorder %v676_v24, 1  ;;  %vm696_vm4 = vcmp.lt.s32.totalorder %v676_v24, 2 }
  0xac   : > { %v681_v53 = vshrl.u32 %v4172_v39, %v678_v34  ;;  %v684_v54 = vshrl.u32 %v4173_v46, %v678_v34  ;;  %v687_v55 = vshrl.u32 %v4174_v48, %v678_v34  ;;  %v679_v56 = vshrl.u32 %v4171_v35, %v678_v34 }
  0xad   : > { %v690_v57 = vshrl.u32 %v4175_v51, %v678_v34  ;;  %v693_v62 = vshrl.u32 %v4176_v58, %v678_v34  ;;  %v884_v4 = vsub.s32 32, %v883_v38  ;;  %vm697_vm5 = vcmp.lt.s32.totalorder %v676_v24, 3 }
  0xae   : > { %v682_v63 = vor.u32 %v681_v53, %v680_v36  ;;  %v685_v2 = vor.u32 %v684_v54, %v683_v42  ;;  %v688_v3 = vor.u32 %v687_v55, %v686_v47  ;;  %vm698_vm6 = vcmp.lt.s32.totalorder %v676_v24, 4 }
  0xaf   : > { %v691_v7 = vor.u32 %v690_v57, %v689_v49  ;;  %v694_v8 = vor.u32 %v693_v62, %v692_v52  ;;  %v886_v18 = vshll.u32 %v4171_v35, %v883_v38  ;;  %v887_v22 = vshrl.u32 %v4172_v39, %v884_v4 }
  0xb0   : > { %v699_v9 = vsel %vm695_vm3, %v679_v56, %v682_v63  ;;  %v700_v10 = vsel %vm698_vm6, %v688_v3, 2102212464  ;;  %v703_v11 = vsel %vm695_vm3, %v682_v63, %v685_v2  ;;  %v707_v12 = vsel %vm695_vm3, %v685_v2, %v688_v3 }
  0xb1   : > { %v701_v14 = vsel %vm697_vm5, %v685_v2, %v700_v10  ;;  %v704_v15 = vsel %vm698_vm6, %v691_v7, 920167782  ;;  %v708_v17 = vsel %vm698_vm6, %v694_v8, 1326507024  ;;  %v889_v25 = vshll.u32 %v4172_v39, %v883_v38 }
  0xb2   : > { %v705_v19 = vsel %vm697_vm5, %v688_v3, %v704_v15  ;;  %v709_v21 = vsel %vm697_vm5, %v691_v7, %v708_v17  ;;  %v702_v28 = vsel %vm696_vm4, %v699_v9, %v701_v14  ;;  %v890_v42 = vshrl.u32 %v4173_v46, %v884_v4 }
  0xb3   : > { %v706_v34 = vsel %vm696_vm4, %v703_v11, %v705_v19  ;;  %v710_v36 = vsel %vm696_vm4, %v707_v12, %v709_v21  ;;  %v888_v54 = vor.u32 %v887_v22, %v886_v18  ;;  %v892_v56 = vshll.u32 %v4173_v46, %v883_v38 }
  0xb4   : > { %v4463_v47 = vmul.u32.u64.low %v4429_v30, %v710_v36  ;;  %v4464_v49 = vmul.u32.u64.high %v4429_v30, %v710_v36, %v4463_v47  ;;  %v4467_v52 = vmul.u32.u64.low %v4429_v30, %v706_v34  ;;  %v4468_v53 = vmul.u32.u64.high %v4429_v30, %v706_v34, %v4467_v52 }
  0xb5   : > { %v891_v55 = vor.u32 %v890_v42, %v889_v25  ;;  %v893_v57 = vshrl.u32 %v4174_v48, %v884_v4  ;;  %v885_v24 = vshrl.u32 %v4171_v35, %v884_v4  ;;  %v895_v62 = vshll.u32 %v4174_v48, %v883_v38 }
  0xb6   : > { %v896_v63 = vshrl.u32 %v4175_v51, %v884_v4  ;;  %v899_v2 = vshrl.u32 %v4176_v58, %v884_v4  ;;  %v718_v3 = vmul.u32 %v4429_v30, %v702_v28  ;;  %v898_v8 = vshll.u32 %v4175_v51, %v883_v38 }
  0xb7   : > { %v894_v7 = vor.u32 %v893_v57, %v892_v56  ;;  %vm901_vm7 = vcmp.lt.s32.totalorder %v4440_v37, 1  ;;  %vm720_vm8 = vc.u32 %v4464_v49, %v4467_v52  ;;  %v721_v9 = vadd.s32 1, %v4468_v53 }
  0xb8   : > { %v897_v10 = vor.u32 %v896_v63, %v895_v62  ;;  %vm902_vm9 = vcmp.lt.s32.totalorder %v4440_v37, 2  ;;  %v900_v11 = vor.u32 %v899_v2, %v898_v8  ;;  %vm903_vm10 = vcmp.lt.s32.totalorder %v4440_v37, 3 }
  0xb9   : > { %vm904_vm11 = vcmp.lt.s32.totalorder %v4440_v37, 4  ;;  %v909_v4 = vsel %vm901_vm7, %v888_v54, %v891_v55  ;;  %v722_v30 = vsel %vm720_vm8, %v721_v9, %v4468_v53  ;;  %v913_v14 = vsel %vm901_vm7, %v891_v55, %v894_v7 }
  0xba   : > { %v906_v12 = vsel %vm904_vm11, %v894_v7, 2102212464  ;;  %v910_v38 = vsel %vm904_vm11, %v897_v10, 920167782  ;;  %v723_v15 = vadd.s32 %v722_v30, %v718_v3  ;;  %v905_v17 = vsel %vm901_vm7, %v885_v24, %v888_v54 }
  0xbb   : > { %v911_v18 = vsel %vm903_vm10, %v894_v7, %v910_v38  ;;  %v914_v19 = vsel %vm904_vm11, %v900_v11, 1326507024  ;;  %v907_v21 = vsel %vm903_vm10, %v891_v55, %v906_v12  ;;  %v572_v54 = vsel %vm571_vm12, %v4437_v33, 0 }
  0xbc   : > { %v912_v22 = vsel %vm902_vm9, %v909_v4, %v911_v18  ;;  %v915_v25 = vsel %vm903_vm10, %v897_v10, %v914_v19  ;;  %v724_v28 = vadd.s32 536870912, %v723_v15  ;;  %v908_v56 = vsel %vm902_vm9, %v905_v17, %v907_v21 }
  0xbd   : > { %v916_v34 = vsel %vm902_vm9, %v913_v14, %v915_v25  ;;  %v4493_v36 = vmul.u32.u64.low %v4431_v31, %v912_v22  ;;  %v4494_v42 = vmul.u32.u64.high %v4431_v31, %v912_v22, %v4493_v36  ;;  %v574_v57 = vand.u32 31, %v572_v54 }
  0xbe   : > { %v4498_v47 = vmul.u32.u64.low %v4431_v31, %v916_v34  ;;  %v4499_v53 = vmul.u32.u64.high %v4431_v31, %v916_v34, %v4498_v47  ;;  %v725_v55 = vshrl.u32 %v724_v28, 30  ;;  %v4508_v24 = vsel %vm555_vm0, %v4426_v23, %v549_v29 }
  0xbf   : > { %v927_v63 = vadd.s32 1, %v4494_v42  ;;  %v568_v2 = vor.u32 8388608, %v4435_v32  ;;  %v5978_v3 = vmov 0.0   ;;  %v924_v33 = vmul.u32 %v4431_v31, %v908_v56 }
  0xc0   : > { %v726_v62 = vshll.u32 %v725_v55, 30  ;;  %1477 = vmatprep.mubr.f32.mxu0 %v5978_v3  ;;  %1590 = vmatprep.mubr.f32.mxu1 %v5978_v3  ;;  %vm926_vm13 = vc.u32 %v4499_v53, %v4493_v36  ;;  %v575_v16 = vsub.s32 32, %v574_v57  ;;  %v769_v37 = vand.u32 2139095040, %v4508_v24 }
  0xc1   : > { %v928_v29 = vsel %vm926_vm13, %v927_v63, %v4494_v42  ;;  %v4520_v8 = vshll.u32 %v568_v2, 8  ;;  %v573_v30 = vshrl.u32 %v572_v54, 5  ;;  %v749_v14 = vsub.s32 4, %v725_v55 }
  0xc2   : > { %v727_v23 = vsub.s32 %v723_v15, %v726_v62  ;;  %v929_v7 = vadd.s32 %v928_v29, %v924_v33  ;;  %v578_v10 = vshrl.u32 %v4172_v39, %v575_v16  ;;  %v581_v31 = vshrl.u32 %v4173_v46, %v575_v16 }
  0xc3   : > { %v770_v11 = vshrl.u32 %v769_v37, 23  ;;  %v584_v12 = vshrl.u32 %v4174_v48, %v575_v16  ;;  %v587_v38 = vshrl.u32 %v4175_v51, %v575_v16  ;;  %v577_v17 = vshll.u32 %v4171_v35, %v574_v57 }
  0xc4   : > { %v729_v32 = vsub.s32 0, %v727_v23  ;;  %v930_v9 = vadd.s32 536870912, %v929_v7  ;;  %v580_v18 = vshll.u32 %v4172_v39, %v574_v57  ;;  %v583_v21 = vshll.u32 %v4173_v46, %v574_v57 }
  0xc5   : > { %v586_v22 = vshll.u32 %v4174_v48, %v574_v57  ;;  %v590_v25 = vshrl.u32 %v4176_v58, %v575_v16  ;;  %v719_v34 = vadd.s32 %v4467_v52, %v4464_v49  ;;  %v579_v47 = vor.u32 %v578_v10, %v577_v17 }
  0xc6   : > { %v3870_v4 = vmin.u32 %v729_v32, %v727_v23  ;;  %v4526_v15 = vshrl.u32 %v930_v9, 30  ;;  %v582_v54 = vor.u32 %v581_v31, %v580_v18  ;;  %v585_v62 = vor.u32 %v584_v12, %v583_v21 }
  0xc7   : > { %v588_v63 = vor.u32 %v587_v38, %v586_v22  ;;  %v589_v2 = vshll.u32 %v4175_v51, %v574_v57  ;;  %v750_v33 = vsel %vm665_vm14, %v749_v14, %v725_v55  ;;  %v576_v61 = vshrl.u32 %v4171_v35, %v575_v16 }
  0xc8   : > { %v731_v19 = vclz %v3870_v4  ;;  %v932_v42 = vshll.u32 %v4526_v15, 30  ;;  %vm592_vm0 = vcmp.lt.s32.totalorder %v573_v30, 1  ;;  %vm593_vm2 = vcmp.lt.s32.totalorder %v573_v30, 2 }
  0xc9   : > { %v591_v29 = vor.u32 %v590_v25, %v589_v2  ;;  %vm594_vm3 = vcmp.lt.s32.totalorder %v573_v30, 3  ;;  %vm595_vm4 = vcmp.lt.s32.totalorder %v573_v30, 4  ;;  %v600_v32 = vsel %vm592_vm0, %v579_v47, %v582_v54 }
  0xca   : > { %v3871_v56 = vadd.s32 4294967294, %v731_v19  ;;  %v4545_v37 = vsub.s32 %v929_v7, %v932_v42  ;;  %v597_v10 = vsel %vm595_vm4, %v585_v62, 2102212464  ;;  %v601_v31 = vsel %vm595_vm4, %v588_v63, 920167782 }
  0xcb   : > { %v602_v16 = vsel %vm594_vm3, %v585_v62, %v601_v31  ;;  %v604_v4 = vsel %vm592_vm0, %v582_v54, %v585_v62  ;;  %v605_v17 = vsel %vm595_vm4, %v591_v29, 1326507024  ;;  %v596_v19 = vsel %vm592_vm0, %v576_v61, %v579_v47 }
  0xcc   : > { %vm3872_vm1 = vcmp.lt.s32.totalorder %v3871_v56, 0  ;;  %v935_v52 = vsub.s32 0, %v4545_v37  ;;  %v603_v14 = vsel %vm593_vm2, %v600_v32, %v602_v16  ;;  %v598_v21 = vsel %vm594_vm3, %v582_v54, %v597_v10 }
  0xcd   : > { %v734_v49 = vsel %vm3872_vm1, 0, %v3871_v56  ;;  %v3873_v22 = vadd.s32 4294967169, %v770_v11  ;;  %v606_v56 = vsel %vm594_vm3, %v588_v63, %v605_v17  ;;  %v599_v54 = vsel %vm593_vm2, %v596_v19, %v598_v21 }
  0xce   : > { %v735_v9 = vsub.s32 32, %v734_v49  ;;  %v739_v57 = vsub.s32 4294967266, %v734_v49  ;;  %v736_v55 = vshll.u32 %v727_v23, %v734_v49  ;;  %v3878_v7 = vmin.u32 %v935_v52, %v4545_v37 }
  0xcf   : > { %v4558_v23 = vsel %vm4535_vm15, 0, %v750_v33  ;;  %v4563_v2 = vmul.u32.u64.low %v4520_v8, %v603_v14  ;;  %v4564_v29 = vmul.u32.u64.high %v4520_v8, %v603_v14, %v4563_v2  ;;  %v925_v33 = vadd.s32 %v4493_v36, %v4499_v53 }
  0xd0   : > { %v737_v12 = vshrl.u32 %v719_v34, %v735_v9  ;;  %v740_v38 = vadd.s32 127, %v739_v57  ;;  %v937_v18 = vclz %v3878_v7  ;;  %v607_v34 = vsel %vm593_vm2, %v604_v4, %v606_v56 }
  0xd1   : > { %v4569_v11 = vmul.u32.u64.low %v4520_v8, %v607_v34  ;;  %v4570_v61 = vmul.u32.u64.high %v4520_v8, %v607_v34, %v4569_v11  ;;  %v766_v63 = vand.u32 2147483647, %v4508_v24  ;;  %v776_v49 = vadd.s32 1, %v3873_v22 }
  0xd2   : > { %v738_v25 = vor.u32 %v737_v12, %v736_v55  ;;  %v741_v42 = vshll.u32 %v740_v38, 23  ;;  %v3879_v62 = vadd.s32 4294967294, %v937_v18  ;;  %v1169_v9 = vadd.s32 3, %v4558_v23 }
  0xd3   : > { %v615_v30 = vmul.u32 %v4520_v8, %v599_v54  ;;  %v618_v55 = vadd.s32 1, %v4564_v29  ;;  %vm617_vm6 = vc.u32 %v4570_v61, %v4563_v2  ;;  %vm777_vm7 = vcmp.gt.s32.totalorder %v776_v49, 0 }
  0xd4   : > { %v742_v47 = vor.u32 4788187, %v741_v42  ;;  %vm3880_vm5 = vcmp.lt.s32.totalorder %v3879_v62, 0  ;;  %v745_v32 = vcvt.s32.f32 %v738_v25  ;;  %v778_v12 = vsel %vm777_vm7, %v776_v49, 0 }
  0xd5   : > { %v940_v57 = vsel %vm3880_vm5, 0, %v3879_v62  ;;  %v619_v4 = vsel %vm617_vm6, %v618_v55, %v4564_v29  ;;  %v955_v14 = vsub.s32 4, %v4526_v15  ;;  %v780_v18 = vand.u32 31, %v778_v12 }
  0xd6   : > { %v743_v52 = vand.u32 2147483647, %v742_v47  ;;  %v941_v10 = vsub.s32 32, %v940_v57  ;;  %v945_v31 = vsub.s32 4294967266, %v940_v57  ;;  %v942_v16 = vshll.u32 %v4545_v37, %v940_v57 }
  0xd7   : > { %v620_v17 = vadd.s32 %v619_v4, %v615_v30  ;;  %vm871_vm8 = vcmp.lt.s32.totalorder %v4402_v60, 0  ;;  %vm4588_vm9 = vcmp.le.f32.partialorder %v869_v0, 0.7853982  ;;  %v781_v25 = vsub.s32 32, %v780_v18 }
  0xd8   : > { %v746_v7 = vmul.f32 %v745_v32, %v743_v52  ;;  %v943_v36 = vshrl.u32 %v925_v33, %v941_v10  ;;  %v946_v53 = vadd.s32 127, %v945_v31  ;;  %v4595_v56 = vand.u32 3, %v1169_v9 }
  0xd9   : > { %v621_v22 = vadd.s32 536870912, %v620_v17  ;;  %v773_v34 = vand.u32 8388607, %v766_v63  ;;  %v956_v0 = vsel %vm871_vm8, %v955_v14, %v4526_v15  ;;  %v784_v47 = vshrl.u32 %v4172_v39, %v781_v25 }
  0xda   : > { %v747_v38 = vxor.u32 2147483648, %v746_v7  ;;  %v944_v8 = vor.u32 %v943_v36, %v942_v16  ;;  %v947_v19 = vshll.u32 %v946_v53, 23  ;;  %v787_v28 = vshrl.u32 %v4173_v46, %v781_v25 }
  0xdb   : > { %v4602_v29 = vshrl.u32 %v621_v22, 30  ;;  %v4607_v49 = vshrl.u32 %v778_v12, 5  ;;  %v783_v52 = vshll.u32 %v4171_v35, %v780_v18  ;;  %v790_v32 = vshrl.u32 %v4174_v48, %v781_v25 }
  0xdc   : > { %v748_v37 = vsel %vm665_vm14, %v747_v38, %v746_v7  ;;  %v948_v62 = vor.u32 4788187, %v947_v19  ;;  %v951_v11 = vcvt.s32.f32 %v944_v8  ;;  %v786_v15 = vshll.u32 %v4172_v39, %v780_v18 }
  0xdd   : > { %v751_v42 = vsel %vm4535_vm15, %v4399_v59, %v748_v37  ;;  %v623_v33 = vshll.u32 %v4602_v29, 30  ;;  %v792_v57 = vshll.u32 %v4174_v48, %v780_v18  ;;  %v793_v10 = vshrl.u32 %v4175_v51, %v781_v25 }
  0xde   : > { %4072 = vcosq.f32 %v751_v42  ;;  %v949_v54 = vand.u32 2147483647, %v948_v62  ;;  %v4616_v31 = vsel %vm4588_vm9, 0, %v956_v0  ;;  %v785_v55 = vor.u32 %v784_v47, %v783_v52 }
  0xdf   : > { %4074 = vsinq.f32 %v751_v42  ;;  %v4618_v30 = vsub.s32 %v620_v17, %v623_v33  ;;  %v789_v7 = vshll.u32 %v4173_v46, %v780_v18  ;;  %v788_v36 = vor.u32 %v787_v28, %v786_v15 }
  0xe0   : > { %v952_v9 = vmul.f32 %v951_v11, %v949_v54  ;;  %v794_v53 = vor.u32 %v793_v10, %v792_v57  ;;  %v796_v4 = vshrl.u32 %v4176_v58, %v781_v25  ;;  %v795_v48 = vshll.u32 %v4175_v51, %v780_v18 }
  0xe1   : > { %v626_v39 = vsub.s32 0, %v4618_v30  ;;  %v791_v12 = vor.u32 %v790_v32, %v789_v7  ;;  %vm1175_vm10 = vcmp.eq.s32.totalorder %v4595_v56, 2  ;;  %v1377_v14 = vadd.s32 3, %v4616_v31 }
  0xe2   : > { %v953_v16 = vxor.u32 2147483648, %v952_v9  ;;  %v774_v17 = vor.u32 8388608, %v773_v34  ;;  %vm798_vm11 = vcmp.lt.s32.totalorder %v4607_v49, 1  ;;  %vm1172_vm12 = vcmp.eq.s32.totalorder %v4595_v56, 0 }
  0xe3   : > { %v3866_v58 = vmin.u32 %v626_v39, %v4618_v30  ;;  %v797_v8 = vor.u32 %v796_v4, %v795_v48  ;;  %vm801_vm13 = vcmp.lt.s32.totalorder %v4607_v49, 4  ;;  %v782_v51 = vshrl.u32 %v4171_v35, %v781_v25 }
  0xe4   : > { %v954_v38 = vsel %vm871_vm8, %v953_v16, %v952_v9  ;;  %v806_v18 = vsel %vm798_vm11, %v785_v55, %v788_v36  ;;  %v807_v19 = vsel %vm801_vm13, %v794_v53, 920167782  ;;  %vm755_vm14 = vweird.f32 %v4399_v59 }
  0xe5   : > { %v957_v46 = vsel %vm4588_vm9, %v4402_v60, %v954_v38  ;;  %v628_v37 = vclz %v3866_v58  ;;  %vm800_vm15 = vcmp.lt.s32.totalorder %v4607_v49, 3  ;;  %v803_v21 = vsel %vm801_vm13, %v791_v12, 2102212464 }
  0xe6   : > { %4076 = vcosq.f32 %v957_v46  ;;  %vm799_vm0 = vcmp.lt.s32.totalorder %v4607_v49, 2  ;;  %v808_v22 = vsel %vm800_vm15, %v791_v12, %v807_v19  ;;  %v810_v35 = vsel %vm798_vm11, %v788_v36, %v791_v12 }
  0xe7   : > { %4078 = vsinq.f32 %v957_v46  ;;  %v814_v25 = vshll.u32 %v774_v17, 8  ;;  %v3867_v42 = vadd.s32 4294967294, %v628_v37  ;;  %v802_v62 = vsel %vm798_vm11, %v782_v51, %v785_v55 }
  0xe8   : > { %v809_v34 = vsel %vm799_vm0, %v806_v18, %v808_v22  ;;  %v811_v0 = vsel %vm801_vm13, %v797_v8, 1326507024  ;;  %v804_v54 = vsel %vm800_vm15, %v788_v36, %v803_v21  ;;  %v616_v9 = vadd.s32 %v4563_v2, %v4570_v61 }
  0xe9   : > { %v812_v11 = vsel %vm800_vm15, %v794_v53, %v811_v0  ;;  %v4655_v28 = vmul.u32.u64.low %v814_v25, %v809_v34  ;;  %v4656_v33 = vmul.u32.u64.high %v814_v25, %v809_v34, %v4655_v28  ;;  %vm3868_vm1 = vcmp.lt.s32.totalorder %v3867_v42, 0 }
  0xea   : > { %v813_v15 = vsel %vm799_vm0, %v810_v35, %v812_v11  ;;  %v631_v10 = vsel %vm3868_vm1, 0, %v3867_v42  ;;  %v805_v2 = vsel %vm799_vm0, %v802_v62, %v804_v54  ;;  %vm1171_vm2 = vcmp.lt.s32.totalorder %v4595_v56, 2 }
  0xeb   : > { %v4653_v47 = vpop.eup %4072  ;;  %v4667_v55 = vmul.u32.u64.low %v814_v25, %v813_v15  ;;  %v4668_v7 = vmul.u32.u64.high %v814_v25, %v813_v15, %v4667_v55  ;;  %v632_v36 = vsub.s32 32, %v631_v10  ;;  %v636_v53 = vsub.s32 4294967266, %v631_v10 }
  0xec   : > { %v4659_v52 = vpop.eup %4074  ;;  %v762_v32 = vxor.u32 2147483648, %v4653_v47  ;;  %v1378_v4 = vand.u32 3, %v1377_v14  ;;  %v824_v39 = vadd.s32 1, %v4656_v33  ;;  %v633_v48 = vshll.u32 %v4618_v30, %v631_v10 }
  0xed   : > { %v759_v57 = vxor.u32 2147483648, %v4659_v52  ;;  %v634_v38 = vshrl.u32 %v616_v9, %v632_v36  ;;  %v637_v17 = vadd.s32 127, %v636_v53  ;;  %v821_v46 = vmul.u32 %v814_v25, %v805_v2 }
  0xee   : > { %v1177_v16 = vsel %vm1175_vm10, %v762_v32, %v4659_v52  ;;  %vm823_vm3 = vc.u32 %v4668_v7, %v4655_v28  ;;  %v962_v8 = vand.u32 3, %v4616_v31  ;;  %vm1379_vm4 = vcmp.lt.s32.totalorder %v1378_v4, 2 }
  0xef   : > { %v1174_v61 = vsel %vm1172_vm12, %v4653_v47, %v759_v57  ;;  %v635_v56 = vor.u32 %v634_v38, %v633_v48  ;;  %v638_v58 = vshll.u32 %v637_v17, 23  ;;  %v825_v14 = vsel %vm823_vm3, %v824_v39, %v4656_v33 }
  0xf0   : > { %v1178_v12 = vsel %vm1171_vm2, %v1174_v61, %v1177_v16  ;;  %v826_v51 = vadd.s32 %v825_v14, %v821_v46  ;;  %vm1380_vm5 = vcmp.eq.s32.totalorder %v1378_v4, 0  ;;  %vm1383_vm6 = vcmp.eq.s32.totalorder %v1378_v4, 2 }
  0xf1   : > { %v4687_v49 = vsel %vm755_vm14, nan, %v1178_v12  ;;  %v639_v18 = vor.u32 4788187, %v638_v58  ;;  %v642_v25 = vcvt.s32.f32 %v635_v56  ;;  %vm967_vm7 = vcmp.eq.s32.totalorder %v962_v8, 2 }
  0xf2   : > { %1441 = vmatprep.subr.mxu0 %v4687_v49  ;;  %v827_v21 = vadd.s32 536870912, %v826_v51  ;;  %vm964_vm8 = vcmp.eq.s32.totalorder %v962_v8, 0  ;;  %vm963_vm9 = vcmp.lt.s32.totalorder %v962_v8, 2  ;;  %vm961_vm10 = vweird.f32 %v4402_v60  ;;  %v397_v60 = vld [vmem:[%s5968_s3] sm:$0xff] }
  0xf3   : > { %v4077_v30 = vpop.eup %4076  ;;  %v640_v35 = vand.u32 2147483647, %v639_v18  ;;  %v646_v55 = vsub.s32 4, %v4602_v29  ;;  %vm562_vm11 = vcmp.lt.s32.totalorder %v4410_v5, 0  ;;  %vm561_vm12 = vcmp.le.f32.partialorder %v560_v20, 0.7853982 }
  0xf4   : > { %v4079_v19 = vpop.eup %4078  ;;  %v968_v37 = vxor.u32 2147483648, %v4077_v30  ;;  %v4694_v62 = vshrl.u32 %v827_v21, 30  ;;  %v756_v17 = vand.u32 3, %v4558_v23  ;;  %v822_v20 = vadd.s32 %v4655_v28, %v4668_v7 }
  0xf5   : > { %v965_v22 = vxor.u32 2147483648, %v4079_v19  ;;  %v643_v31 = vmul.f32 %v642_v25, %v640_v35  ;;  %v647_v61 = vsel %vm562_vm11, %v646_v55, %v4602_v29 }
  0xf6   : > { %v1385_v42 = vsel %vm1383_vm6, %v968_v37, %v4079_v19  ;;  %v969_v34 = vsel %vm967_vm7, %v968_v37, %v4079_v19  ;;  %v829_v33 = vshll.u32 %v4694_v62, 30  ;;  %v649_v39 = vsel %vm561_vm12, 0, %v647_v61 }
  0xf7   : > { %v1382_v0 = vsel %vm1380_vm5, %v4077_v30, %v965_v22  ;;  %v966_v54 = vsel %vm964_vm8, %v4077_v30, %v965_v22  ;;  %v644_v10 = vxor.u32 2147483648, %v643_v31  ;;  %v1065_v38 = vadd.s32 3, %v649_v39 }
  0xf8   : > { %v1386_v11 = vsel %vm1379_vm4, %v1382_v0, %v1385_v42  ;;  %v4699_v9 = vsel %vm963_vm9, %v966_v54, %v969_v34  ;;  %v830_v16 = vsub.s32 %v826_v51, %v829_v33  ;;  %vm758_vm15 = vcmp.eq.s32.totalorder %v756_v17, 0 }
  0xf9   : > { %v4703_v15 = vsel %vm961_vm10, nan, %v1386_v11  ;;  %v645_v36 = vsel %vm562_vm11, %v644_v10, %v643_v31  ;;  %v1066_v14 = vand.u32 3, %v1065_v38  ;;  %vm761_vm0 = vcmp.eq.s32.totalorder %v756_v17, 2  ;;  %v4728_v10 = vld [vmem:[%s5967_s2] sm:$0xff] }
  0xfa   : > { %1554 = vmatprep.subr.mxu1 %v4703_v15  ;;  %v648_v53 = vsel %vm561_vm12, %v4410_v5, %v645_v36  ;;  %v832_v2 = vsub.s32 0, %v830_v16  ;;  %v653_v30 = vand.u32 3, %v649_v39  ;;  %v760_v18 = vsel %vm758_vm15, %v4653_v47, %v759_v57 }
  0xfb   : > { %4080 = vcosq.f32 %v648_v53  ;;  %v763_v23 = vsel %vm761_vm0, %v762_v32, %v4659_v52  ;;  %vm757_vm1 = vcmp.lt.s32.totalorder %v756_v17, 2  ;;  %vm1067_vm2 = vcmp.lt.s32.totalorder %v1066_v14, 2 }
  0xfc   : > { %4082 = vsinq.f32 %v648_v53  ;;  %v3874_v4 = vmin.u32 %v832_v2, %v830_v16  ;;  %vm1068_vm3 = vcmp.eq.s32.totalorder %v1066_v14, 0  ;;  %vm1071_vm4 = vcmp.eq.s32.totalorder %v1066_v14, 2 }
  0xfd   : > { %v764_v25 = vsel %vm757_vm1, %v760_v18, %v763_v23  ;;  %vm658_vm5 = vcmp.eq.s32.totalorder %v653_v30, 2  ;;  %vm654_vm6 = vcmp.lt.s32.totalorder %v653_v30, 2  ;;  %vm655_vm7 = vcmp.eq.s32.totalorder %v653_v30, 0  ;;  %v395_v23 = vld [vmem:[%s5967_s2 + $0x30] sm:$0xff] }
  0xfe   : > { %v834_v12 = vclz %v3874_v4  ;;  %vm652_vm8 = vweird.f32 %v4410_v5  ;;  %v765_v33 = vsel %vm755_vm14, nan, %v764_v25  ;;  %vm1388_vm9 = vcmask 130048   ;;  %v407_v25 = vld [vmem:[%s5969_s4 + $0x10] sm:$0xff] }
  0xff   : > { %vm768_vm11 = vcmp.lt.s32.totalorder %v4508_v24, 0  ;;  %v852_v5 = vsub.s32 4, %v4694_v62  ;;  %vm4734_vm12 = vcmp.le.f32.partialorder %v766_v63, 0.7853982  ;;  %v390_v63 = vld [vmem:[%s5967_s2 + $0x8] sm:$0xff]  ;;  %1933 = vperm.xlu1 %4061, %v407_v25  }
 0x100   : > { %v3875_v48 = vadd.s32 4294967294, %v834_v12 }
 0x101   : > { %v853_v2 = vsel %vm768_vm11, %v852_v5, %v4694_v62  ;;  %v392_v62 = vld [vmem:[%s5967_s2 + $0x18] sm:$0xff]  ;;  %v440_v5 = vld [vmem:[%s5971_s6 + $0x8] sm:$0xff] }
 0x102   : > { %vm3876_vm13 = vcmp.lt.s32.totalorder %v3875_v48, 0  ;;  %v855_v61 = vsel %vm4734_vm12, 0, %v853_v2 }
 0x103   : > { %v837_v46 = vsel %vm3876_vm13, 0, %v3875_v48  ;;  %v1273_v4 = vadd.s32 3, %v855_v61  ;;  %v859_v12 = vand.u32 3, %v855_v61  ;;  %v393_v48 = vld [vmem:[%s5967_s2 + $0x20] sm:$0xff] }
 0x104   : > { %v838_v56 = vsub.s32 32, %v837_v46  ;;  %v842_v58 = vsub.s32 4294967266, %v837_v46  ;;  %v839_v29 = vshll.u32 %v830_v16, %v837_v46 }
 0x105   : > { %v1274_v39 = vand.u32 3, %v1273_v4  ;;  %vm864_vm13 = vcmp.eq.s32.totalorder %v859_v12, 2  ;;  %vm861_vm0 = vcmp.eq.s32.totalorder %v859_v12, 0 }
 0x106   : > { %v840_v8 = vshrl.u32 %v822_v20, %v838_v56  ;;  %v843_v51 = vadd.s32 127, %v842_v58  ;;  %v394_v56 = vld [vmem:[%s5967_s2 + $0x28] sm:$0xff] }
 0x107   : > { %vm1279_vm14 = vcmp.eq.s32.totalorder %v1274_v39, 2  ;;  %vm1276_vm15 = vcmp.eq.s32.totalorder %v1274_v39, 0  ;;  %vm1275_vm1 = vcmp.lt.s32.totalorder %v1274_v39, 2 }
 0x108   : > { %v4081_v19 = vpop.eup %4080  ;;  %v841_v37 = vor.u32 %v840_v8, %v839_v29  ;;  %v844_v28 = vshll.u32 %v843_v51, 23 }
 0x109   : > { %v4083_v7 = vpop.eup %4082  ;;  %v659_v21 = vxor.u32 2147483648, %v4081_v19 }
 0x10a   : > { %v656_v22 = vxor.u32 2147483648, %v4083_v7  ;;  %v845_v35 = vor.u32 4788187, %v844_v28  ;;  %v848_v52 = vcvt.s32.f32 %v841_v37  ;;  %v400_v28 = vld [vmem:[%s5968_s3 + $0x18] sm:$0xff] }
 0x10b   : > { %v1073_v42 = vsel %vm1071_vm4, %v659_v21, %v4083_v7  ;;  %v660_v57 = vsel %vm658_vm5, %v659_v21, %v4083_v7  ;;  %v401_v7 = vld [vmem:[%s5968_s3 + $0x20] sm:$0xff]  ;;  %v402_v21 = vld [vmem:[%s5968_s3 + $0x28] sm:$0xff] }
 0x10c   : > { %v1070_v34 = vsel %vm1068_vm3, %v4081_v19, %v656_v22  ;;  %v846_v47 = vand.u32 2147483647, %v845_v35  ;;  %v657_v32 = vsel %vm655_vm7, %v4081_v19, %v656_v22  ;;  %vm858_vm3 = vweird.f32 %v4508_v24  ;;  %v403_v22 = vld [vmem:[%s5968_s3 + $0x30] sm:$0xff]  ;;  %v404_v35 = vld [vmem:[%s5968_s3 + $0x38] sm:$0xff] }
 0x10d   : > { %v1074_v0 = vsel %vm1067_vm2, %v1070_v34, %v1073_v42  ;;  %v661_v31 = vsel %vm654_vm6, %v657_v32, %v660_v57  ;;  %vm860_vm2 = vcmp.lt.s32.totalorder %v859_v12, 2  ;;  %v971_v19 = vsel %vm961_vm10, nan, %v4699_v9  ;;  %v398_v9 = vld [vmem:[%s5968_s3 + $0x8] sm:$0xff] }
 0x10e   : > { %v1075_v54 = vsel %vm652_vm8, nan, %v1074_v0  ;;  %v849_v11 = vmul.f32 %v848_v52, %v846_v47  ;;  %v662_v16 = vsel %vm652_vm8, nan, %v661_v31  ;;  %v5983_v34 = vmov 1   ;;  %v4096_v52 = vld [vmem:[%s5969_s4 + $0x18] sm:$0xff] }
 0x10f   : > { %1442 = vmatpush1.msra.mxu0 %v1075_v54  ;;  %4062 = vset.pattern.permute.xlu1 %v5983_v34  ;;  %vm2074_vm10 = vcmask 523264  }
 0x110   : > { %v850_v55 = vxor.u32 2147483648, %v849_v11  ;;  %1443 = vmatprep.subr.mxu0 %v765_v33  ;;  %4070 = vset.pattern.permute.xlu0 %v5983_v34 }
 0x111   : > { %1444 = vmatpush1.msra.mxu0 %v662_v16  ;;  %2473 = vperm.xlu1 %4062, %v4096_v52  }
 0x112   : > { %v851_v59 = vsel %vm768_vm11, %v850_v55, %v849_v11  ;;  %3897 = vmatmul.mubr.msk.f32.vlgmr.msra.gmra.mxu0 %vm1388_vm9, %v4728_v10  ;;  %1691 = vmatprep.subr.mxu0 %v4687_v49  ;;  %v391_v49 = vld [vmem:[%s5967_s2 + $0x10] sm:$0xff]  ;;  %v4097_v11 = vld [vmem:[%s5969_s4 + $0x8] sm:$0xff]  ;;  %v4098_v55 = vld [vmem:[%s5969_s4] sm:$0xff] }
 0x113   : > { %v854_v53 = vsel %vm4734_vm12, %v4508_v24, %v851_v59  ;;  %1692 = vmatpush1.msra.mxu0 %v1075_v54  ;;  %1483 = vmatprep.mubr.f32.mxu0 %v5978_v3  ;;  %v396_v24 = vld [vmem:[%s5967_s2 + $0x38] sm:$0xff] }
 0x114   : > { %4084 = vcosq.f32 %v854_v53  ;;  %1693 = vmatprep.subr.mxu0 %v765_v33 }
 0x115   : > { %4086 = vsinq.f32 %v854_v53  ;;  %1694 = vmatpush1.msra.mxu0 %v662_v16  ;;  %2469 = vperm.xlu1 %4062, %v407_v25   ;;  %v412_v53 = vld [vmem:[%s5969_s4 + $0x38] sm:$0xff] }
 0x116   : > { %3898 = vmatmul.mubr.msk.f32.gmra.mxu0 %vm1388_vm9, %v390_v63 }
 0x117   : > { %1489 = vmatprep.mubr.f32.mxu0 %v5978_v3 }
 0x119   : > { %2465 = vperm.xlu1 %4062, %v4097_v11  }
 0x11a   : > { %3899 = vmatmul.mubr.msk.f32.gmra.mxu0 %vm1388_vm9, %v391_v49 }
 0x11b   : > { %1495 = vmatprep.mubr.f32.mxu0 %v5978_v3 }
 0x11d   : > { %2461 = vperm.xlu1 %4062, %v4098_v55  }
 0x11e   : > { %3900 = vmatmul.mubr.msk.f32.gmra.mxu0 %vm1388_vm9, %v392_v62 }
 0x11f   : > { %1501 = vmatprep.mubr.f32.mxu0 %v5978_v3 }
 0x121   : > { %v4085_v38 = vpop.eup %4084  ;;  %4063 = vset.pattern.permute.xlu1 %v5980_v1 }
 0x122   : > { %v4087_v17 = vpop.eup %4086  ;;  %v865_v46 = vxor.u32 2147483648, %v4085_v38  ;;  %3901 = vmatmul.mubr.msk.f32.gmra.mxu0 %vm1388_vm9, %v393_v48  ;;  %2671 = vperm.xlu1 %4063, %v440_v5  }
 0x123   : > { %v862_v20 = vxor.u32 2147483648, %v4087_v17  ;;  %1507 = vmatprep.mubr.f32.mxu0 %v5978_v3 }
 0x124   : > { %v1281_v58 = vsel %vm1279_vm14, %v865_v46, %v4087_v17  ;;  %v866_v14 = vsel %vm864_vm13, %v865_v46, %v4087_v17  ;;  %v4099_v46 = vld [vmem:[%s5969_s4 + $0x30] sm:$0xff]  ;;  %vm2869_vm14 = vcmask 261120  }
 0x125   : > { %v1278_v29 = vsel %vm1276_vm15, %v4085_v38, %v862_v20  ;;  %v863_v8 = vsel %vm861_vm0, %v4085_v38, %v862_v20 }
 0x126   : > { %v1282_v51 = vsel %vm1275_vm1, %v1278_v29, %v1281_v58  ;;  %v867_v30 = vsel %vm860_vm2, %v863_v8, %v866_v14  ;;  %3902 = vmatmul.mubr.msk.f32.gmra.mxu0 %vm1388_vm9, %v394_v56  ;;  %1958 = vperm.xlu1 %4063, %v412_v53   ;;  %v4100_v29 = vld [vmem:[%s5969_s4 + $0x28] sm:$0xff] }
 0x127   : > { %v1283_v18 = vsel %vm858_vm3, nan, %v1282_v51  ;;  %1513 = vmatprep.mubr.f32.mxu0 %v5978_v3  ;;  %v868_v37 = vsel %vm858_vm3, nan, %v867_v30 }
 0x128   : > { %1555 = vmatpush1.msra.mxu1 %v1283_v18 }
 0x129   : > { %1556 = vmatprep.subr.mxu1 %v971_v19 }
 0x12a   : > { %1557 = vmatpush1.msra.mxu1 %v868_v37  ;;  %3903 = vmatmul.mubr.msk.f32.gmra.mxu0 %vm1388_vm9, %v395_v23 }
 0x12b   : > { %3905 = vmatmul.mubr.msk.f32.vlgmr.msra.gmra.mxu1 %vm1388_vm9, %v4728_v10  ;;  %1804 = vmatprep.subr.mxu1 %v4703_v15  ;;  %v399_v15 = vld [vmem:[%s5968_s3 + $0x10] sm:$0xff] }
 0x12c   : > { %1805 = vmatpush1.msra.mxu1 %v1283_v18  ;;  %1596 = vmatprep.mubr.f32.mxu1 %v5978_v3 }
 0x12d   : > { %1806 = vmatprep.subr.mxu1 %v971_v19  ;;  %1519 = vmatprep.mubr.f32.mxu0 %v5978_v3 }
 0x12e   : > { %1807 = vmatpush1.msra.mxu1 %v868_v37  ;;  %3904 = vmatmul.mubr.msk.f32.gmra.mxu0 %vm1388_vm9, %v396_v24 }
 0x12f   : > { %3906 = vmatmul.mubr.msk.f32.gmra.mxu1 %vm1388_vm9, %v390_v63  ;;  %1727 = vmatprep.mubr.f32.mxu0 %v5978_v3 }
 0x130   : > { %1602 = vmatprep.mubr.f32.mxu1 %v5978_v3  ;;  %4064 = vset.pattern.permute.xlu1 %v5983_v34 }
 0x131   : > { %2489 = vperm.xlu1 %4064, %v412_v53  }
 0x132   : > { %3913 = vmatmul.mubr.msk.f32.vlgmr.msra.gmra.mxu0 %vm1388_vm9, %v397_v60 }
 0x133   : > { %3907 = vmatmul.mubr.msk.f32.gmra.mxu1 %vm1388_vm9, %v391_v49  ;;  %1733 = vmatprep.mubr.f32.mxu0 %v5978_v3 }
 0x134   : > { %1608 = vmatprep.mubr.f32.mxu1 %v5978_v3 }
 0x135   : > { %2485 = vperm.xlu1 %4064, %v4099_v46  }
 0x136   : > { %3914 = vmatmul.mubr.msk.f32.gmra.mxu0 %vm1388_vm9, %v398_v9 }
 0x137   : > { %3908 = vmatmul.mubr.msk.f32.gmra.mxu1 %vm1388_vm9, %v392_v62  ;;  %1739 = vmatprep.mubr.f32.mxu0 %v5978_v3 }
 0x138   : > { %1614 = vmatprep.mubr.f32.mxu1 %v5978_v3 }
 0x139   : > { %2481 = vperm.xlu1 %4064, %v4100_v29  }
 0x13a   : > { %3915 = vmatmul.mubr.msk.f32.gmra.mxu0 %vm1388_vm9, %v399_v15 }
 0x13b   : > { %3909 = vmatmul.mubr.msk.f32.gmra.mxu1 %vm1388_vm9, %v393_v48  ;;  %1745 = vmatprep.mubr.f32.mxu0 %v5978_v3 }
 0x13c   : > { %1620 = vmatprep.mubr.f32.mxu1 %v5978_v3 }
 0x13e   : > { %3916 = vmatmul.mubr.msk.f32.gmra.mxu0 %vm1388_vm9, %v400_v28 }
 0x13f   : > { %3910 = vmatmul.mubr.msk.f32.gmra.mxu1 %vm1388_vm9, %v394_v56  ;;  %1751 = vmatprep.mubr.f32.mxu0 %v5978_v3 }
 0x140   : > { %1626 = vmatprep.mubr.f32.mxu1 %v5978_v3 }
 0x142   : > { %3917 = vmatmul.mubr.msk.f32.gmra.mxu0 %vm1388_vm9, %v401_v7 }
 0x143   : > { %3911 = vmatmul.mubr.msk.f32.gmra.mxu1 %vm1388_vm9, %v395_v23  ;;  %1757 = vmatprep.mubr.f32.mxu0 %v5978_v3  ;;  %v4101_v23 = vld [vmem:[%s5969_s4 + $0x20] sm:$0xff] }
 0x144   : > { %1632 = vmatprep.mubr.f32.mxu1 %v5978_v3  ;;  %2477 = vperm.xlu1 %4064, %v4101_v23  }
 0x146   : > { %3918 = vmatmul.mubr.msk.f32.gmra.mxu0 %vm1388_vm9, %v402_v21 }
 0x147   : > { %3912 = vmatmul.mubr.msk.f32.gmra.mxu1 %vm1388_vm9, %v396_v24  ;;  %1763 = vmatprep.mubr.f32.mxu0 %v5978_v3  ;;  %v444_v24 = vld [vmem:[%s5971_s6 + $0x28] sm:$0xff] }
 0x148   : > { %1840 = vmatprep.mubr.f32.mxu1 %v5978_v3  ;;  %4065 = vset.pattern.permute.xlu1 %v5980_v1 }
 0x149   : > { %2691 = vperm.xlu1 %4065, %v444_v24   ;;  %v4102_v24 = vld [vmem:[%s5969_s4 + $0x50] sm:$0xff] }
 0x14a   : > { %3919 = vmatmul.mubr.msk.f32.gmra.mxu0 %vm1388_vm9, %v403_v22 }
 0x14b   : > { %3921 = vmatmul.mubr.msk.f32.vlgmr.msra.gmra.mxu1 %vm1388_vm9, %v397_v60  ;;  %1769 = vmatprep.mubr.f32.mxu0 %v5978_v3 }
 0x14c   : > { %1846 = vmatprep.mubr.f32.mxu1 %v5978_v3 }
 0x14e   : > { %3920 = vmatmul.mubr.msk.f32.gmra.mxu0 %vm1388_vm9, %v404_v35 }
 0x14f   : > { %3922 = vmatmul.mubr.msk.f32.gmra.mxu1 %vm1388_vm9, %v398_v9  ;;  %2190 = vmatprep.mubr.f32.mxu0 %v5978_v3 }
 0x150   : > { %1852 = vmatprep.mubr.f32.mxu1 %v5978_v3 }
 0x153   : > { %3923 = vmatmul.mubr.msk.f32.gmra.mxu1 %vm1388_vm9, %v399_v15 }
 0x154   : > { %1858 = vmatprep.mubr.f32.mxu1 %v5978_v3 }
 0x157   : > { %3924 = vmatmul.mubr.msk.f32.gmra.mxu1 %vm1388_vm9, %v400_v28 }
 0x158   : > { %1864 = vmatprep.mubr.f32.mxu1 %v5978_v3 }
 0x15b   : > { %3925 = vmatmul.mubr.msk.f32.gmra.mxu1 %vm1388_vm9, %v401_v7  ;;  %v416_v7 = vld [vmem:[%s5969_s4 + $0x58] sm:$0xff] }
 0x15c   : > { %1870 = vmatprep.mubr.f32.mxu1 %v5978_v3  ;;  %1978 = vperm.xlu1 %4065, %v416_v7  }
 0x15f   : > { %3926 = vmatmul.mubr.msk.f32.gmra.mxu1 %vm1388_vm9, %v402_v21 }
 0x160   : > { %1876 = vmatprep.mubr.f32.mxu1 %v5978_v3  ;;  %4066 = vset.pattern.permute.xlu1 %v5983_v34 }
 0x161   : > { %2505 = vperm.xlu1 %4066, %v416_v7   ;;  %v4103_v7 = vld [vmem:[%s5969_s4 + $0x48] sm:$0xff] }
 0x163   : > { %3927 = vmatmul.mubr.msk.f32.gmra.mxu1 %vm1388_vm9, %v403_v22 }
 0x164   : > { %1882 = vmatprep.mubr.f32.mxu1 %v5978_v3 }
 0x165   : > { %2501 = vperm.xlu1 %4066, %v4102_v24  }
 0x167   : > { %3928 = vmatmul.mubr.msk.f32.gmra.mxu1 %vm1388_vm9, %v404_v35 }
 0x168   : > { %2357 = vmatprep.mubr.f32.mxu1 %v5978_v3 }
 0x169   : > { %2497 = vperm.xlu1 %4066, %v4103_v7  }
 0x1d2   : > { %v4864_v42 = vpop.f32.mrf.mxu0 }
 0x1d4   : > { %v4866_v57 = vpop.f32.mrf.mxu0 }
 0x1d6   : > { %v4870_v47 = vpop.f32.mrf.mxu0 }
 0x1d8   : > { %v4875_v32 = vpop.f32.mrf.mxu0 }
 0x1da   : > { %v4877_v0 = vpop.f32.mrf.mxu0 }
 0x1dc   : > { %v4879_v31 = vpop.f32.mrf.mxu0 }
 0x1de   : > { %v4881_v54 = vpop.f32.mrf.mxu0 }
 0x1e0   : > { %v4886_v33 = vpop.f32.mrf.mxu0 }
 0x1e2   : > { %v4888_v10 = vpop.f32.mrf.mxu0 }
 0x1e4   : > { %v4893_v16 = vpop.f32.mrf.mxu0 }
 0x1e6   : > { %v4898_v36 = vpop.f32.mrf.mxu0 }
 0x1e8   : > { %v4901_v59 = vpop.f32.mrf.mxu0 }
 0x1ea   : > { %v4906_v63 = vpop.f32.mrf.mxu0 }
 0x1eb   : > { %v4908_v2 = vpop.f32.mrf.mxu1 }
 0x1ec   : > { %v1517_v49 = vpop.f32.mrf.mxu0 }
 0x1ed   : > { %v4910_v61 = vpop.f32.mrf.mxu1 }
 0x1ee   : > { %v1521_v4 = vpop.f32.mrf.mxu0 }
 0x1ef   : > { %v4912_v62 = vpop.f32.mrf.mxu1 }
 0x1f0   : > { %v1523_v39 = vpop.f32.mrf.mxu0 }
 0x1f1   : > { %v4915_v12 = vpop.f32.mrf.mxu1 }
 0x1f2   : > { %v4917_v48 = vpop.f32.mrf.mxu0 }
 0x1f3   : > { %v4919_v38 = vpop.f32.mrf.mxu1 }
 0x1f4   : > { %v4921_v17 = vpop.f32.mrf.mxu0 }
 0x1f5   : > { %v4926_v20 = vpop.f32.mrf.mxu1 }
 0x1f6   : > { %v4928_v56 = vpop.f32.mrf.mxu0 }
 0x1f7   : > { %v4930_v58 = vpop.f32.mrf.mxu1 }
 0x1f8   : > { %v4932_v14 = vpop.f32.mrf.mxu0 }
 0x1f9   : > { %v4937_v8 = vpop.f32.mrf.mxu1 }
 0x1fa   : > { %v4939_v51 = vpop.f32.mrf.mxu0 }
 0x1fb   : > { %v4941_v30 = vpop.f32.mrf.mxu1 }
 0x1fc   : > { %v1743_v18 = vpop.f32.mrf.mxu0 }
 0x1fd   : > { %v4946_v19 = vpop.f32.mrf.mxu1 }
 0x1fe   : > { %v1747_v37 = vpop.f32.mrf.mxu0 }
 0x1ff   : > { %v4951_v60 = vpop.f32.mrf.mxu1 }
 0x200   : > { %v1749_v9 = vpop.f32.mrf.mxu0 }
 0x201   : > { %v4954_v15 = vpop.f32.mrf.mxu1 }
 0x202   : > { %v1753_v28 = vpop.f32.mrf.mxu0 }
 0x203   : > { %v4959_v21 = vpop.f32.mrf.mxu1 }
 0x204   : > { %v1755_v22 = vpop.f32.mrf.mxu0 }
 0x205   : > { %v4961_v35 = vpop.f32.mrf.mxu1 }
 0x206   : > { %v1759_v25 = vpop.f32.mrf.mxu0 }
 0x207   : > { %v4963_v52 = vpop.f32.mrf.mxu1 }
 0x208   : > { %v1761_v11 = vpop.f32.mrf.mxu0 }
 0x209   : > { %v4965_v55 = vpop.f32.mrf.mxu1  ;;  %v1910_v13 = vmul.f32 %v1761_v11, %v4901_v59  ;;  %v1901_v59 = vmul.f32 %v1747_v37, %v4881_v54  ;;  %v1893_v37 = vmul.f32 %v4928_v56, %v4870_v47 }
 0x20a   : > { %v1765_v5 = vpop.f32.mrf.mxu0 }
 0x20b   : > { %v4968_v53 = vpop.f32.mrf.mxu1  ;;  %v1913_v45 = vmul.f32 %v1765_v5, %v4906_v63  ;;  %v6009_v63 = vmov 0   ;;  %v425_v5 = vld [vmem:[%s5970_s5 + $0x18] sm:$0xff] }
 0x20c   : > { %v1767_v46 = vpop.f32.mrf.mxu0 }
 0x20d   : > { %v4970_v29 = vpop.f32.mrf.mxu1  ;;  %v1914_v41 = vmul.f32 %v1767_v46, %v1517_v49  ;;  %v1894_v49 = vmul.f32 %v4932_v14, %v4875_v32  ;;  %v5021_v32 = vld [vmem:[%s5970_s5] sm:$0xff] }
 0x20e   : > { %v1771_v23 = vpop.f32.mrf.mxu0 }
 0x20f   : > { %v4975_v26 = vpop.f32.mrf.mxu1  ;;  %v1917_v34 = vmul.f32 %v1771_v23, %v1521_v4  ;;  %v4104_v4 = vld [vmem:[%s5969_s4 + $0x40] sm:$0xff] }
 0x210   : > { %v1773_v3 = vpop.f32.mrf.mxu0  ;;  %2493 = vperm.xlu1 %4066, %v4104_v4  }
 0x211   : > { %v4977_v1 = vpop.f32.mrf.mxu1  ;;  %v1918_v27 = vmul.f32 %v1773_v3, %v1523_v39  ;;  %v1909_v3 = vmul.f32 %v1759_v25, %v4898_v36  ;;  %v1902_v36 = vmul.f32 %v1749_v9, %v4886_v33  ;;  %v420_v33 = vld [vmem:[%s5969_s4 + $0x78] sm:$0xff]  ;;  %v4105_v9 = vld [vmem:[%s5969_s4 + $0x70] sm:$0xff] }
 0x212   : > { %v1896_v4 = vmul.f32 %v4977_v1, %v4915_v12  ;;  %v1891_v1 = vmul.f32 %v4968_v53, %v4908_v2  ;;  %v430_v2 = vld [vmem:[%s5970_s5 + $0x40] sm:$0xff]  ;;  %v433_v12 = vld [vmem:[%s5970_s5 + $0x58] sm:$0xff]  ;;  %v435_v53 = vld [vmem:[%s5970_s5 + $0x68] sm:$0xff] }
 0x213   : > { %v4982_v6 = vpop.f32.mrf.mxu1  ;;  %2142 = vmatprep.subr.mxu0 %v1918_v27  ;;  %v1906_v27 = vmul.f32 %v1755_v22, %v4893_v16  ;;  %v1898_v16 = vmul.f32 %v1743_v18, %v4879_v31  ;;  %v1890_v31 = vmul.f32 %v4921_v17, %v4866_v57  ;;  %v6010_v57 = vmov 1  }
 0x214   : > { %2143 = vmatpush1.msra.mxu0 %v1917_v34  ;;  %v1905_v34 = vmul.f32 %v1753_v28, %v4888_v10  ;;  %4067 = vset.pattern.permute.xlu1 %v6009_v63  ;;  %v1897_v10 = vmul.f32 %v4939_v51, %v4877_v0  ;;  %v1889_v0 = vmul.f32 %v4917_v48, %v4864_v42  ;;  %v6011_v17 = vmov 0.0   ;;  %v5030_v42 = vld [vmem:[%s5970_s5 + $0x8] sm:$0xff]  ;;  %v5038_v51 = vld [vmem:[%s5970_s5 + $0x10] sm:$0xff] }
 0x215   : > { %v4985_v24 = vpop.f32.mrf.mxu1  ;;  %2144 = vmatprep.subr.mxu0 %v1914_v41  ;;  %v448_v41 = vld [vmem:[%s5971_s6 + $0x48] sm:$0xff] }
 0x216   : > { %2145 = vmatpush1.msra.mxu0 %v1913_v45  ;;  %2711 = vperm.xlu1 %4067, %v448_v41   ;;  %v455_v41 = vld [vmem:[%s5971_s6 + $0x80] sm:$0x1] }
 0x217   : > { %v4992_v39 = vpop.f32.mrf.mxu1  ;;  %2146 = vmatprep.subr.mxu0 %v1910_v13 }
 0x218   : > { %2147 = vmatpush1.msra.mxu0 %v1909_v3  ;;  %v1900_v3 = vmul.f32 %v4985_v24, %v4926_v20  ;;  %v1895_v20 = vmul.f32 %v4975_v26, %v4912_v62  ;;  %v1892_v24 = vmul.f32 %v4970_v29, %v4910_v61  ;;  %v429_v26 = vld [vmem:[%s5970_s5 + $0x38] sm:$0xff]  ;;  %v431_v61 = vld [vmem:[%s5970_s5 + $0x48] sm:$0xff]  ;;  %v432_v62 = vld [vmem:[%s5970_s5 + $0x50] sm:$0xff] }
 0x219   : > { %v5000_v45 = vpop.f32.mrf.mxu1  ;;  %2148 = vmatprep.subr.mxu0 %v1906_v27  ;;  %v436_v29 = vld [vmem:[%s5970_s5 + $0x70] sm:$0xff]  ;;  %v438_v27 = vld [vmem:[%s5970_s5 + $0x80] sm:$0x1] }
 0x21a   : > { %2149 = vmatpush1.msra.mxu0 %v1905_v34  ;;  %1998 = vperm.xlu1 %4067, %v420_v33   ;;  %v421_v34 = vld [vmem:[%s5969_s4 + $0x80] sm:$0x1] }
 0x21b   : > { %v1866_v13 = vpop.f32.mrf.mxu1  ;;  %2150 = vmatprep.subr.mxu0 %v1902_v36  ;;  %2525 = vperm.xlu0 %4070, %v421_v34   ;;  %v5194_v36 = vpop.permute.xlu1 %1933 }
 0x21c   : > { %2151 = vmatpush1.msra.mxu0 %v1901_v59  ;;  %v1907_v7 = vmul.f32 %v1866_v13, %v4941_v30  ;;  %v452_v30 = vld [vmem:[%s5971_s6 + $0x68] sm:$0xff] }
 0x21d   : > { %v1868_v54 = vpop.f32.mrf.mxu1  ;;  %2152 = vmatprep.subr.mxu0 %v1898_v16 }
 0x21e   : > { %2153 = vmatpush1.msra.mxu0 %v1897_v10  ;;  %4068 = vset.pattern.permute.xlu1 %v6010_v57  ;;  %v1908_v23 = vmul.f32 %v1868_v54, %v4946_v19  ;;  %v1903_v19 = vmul.f32 %v4992_v39, %v4930_v58  ;;  %v1899_v58 = vmul.f32 %v4982_v6, %v4919_v38  ;;  %v428_v6 = vld [vmem:[%s5970_s5 + $0x30] sm:$0xff]  ;;  %v434_v38 = vld [vmem:[%s5970_s5 + $0x60] sm:$0xff]  ;;  %v437_v39 = vld [vmem:[%s5970_s5 + $0x78] sm:$0xff] }
 0x21f   : > { %v1872_v18 = vpop.f32.mrf.mxu1  ;;  %2154 = vmatprep.subr.mxu0 %v1894_v49  ;;  %2521 = vperm.xlu1 %4068, %v420_v33   ;;  %v5198_v59 = vpop.permute.xlu1 %2473  ;;  %v2015_v57 = vmul.f32 %v5194_v36, %v4385_v44 }
 0x220   : > { %2155 = vmatpush1.msra.mxu0 %v1893_v37  ;;  %4071 = vset.pattern.permute.xlu0 %v6009_v63 }
 0x221   : > { %v1874_v14 = vpop.f32.mrf.mxu1  ;;  %2156 = vmatprep.subr.mxu0 %v1890_v31 }
 0x222   : > { %2157 = vmatpush1.msra.mxu0 %v1889_v0 }
 0x223   : > { %v1878_v47 = vpop.f32.mrf.mxu1  ;;  %3929 = vmatmul.mubr.msk.f32.vlgmr.msra.gmra.mxu0 %vm2074_vm10, %v5021_v32  ;;  %2517 = vperm.xlu1 %4068, %v4105_v9   ;;  %v5202_v13 = vpop.permute.xlu1 %2469 }
 0x224   : > { %2196 = vmatprep.mubr.f32.mxu0 %v6011_v17  ;;  %v1915_v46 = vmul.f32 %v1878_v47, %v4959_v21  ;;  %v426_v21 = vld [vmem:[%s5970_s5 + $0x20] sm:$0xff] }
 0x225   : > { %v1880_v48 = vpop.f32.mrf.mxu1 }
 0x226   : > { %v1916_v11 = vmul.f32 %v1880_v48, %v4961_v35  ;;  %v1911_v35 = vmul.f32 %v1872_v18, %v4951_v60  ;;  %v1904_v60 = vmul.f32 %v5000_v45, %v4937_v8  ;;  %v427_v8 = vld [vmem:[%s5970_s5 + $0x28] sm:$0xff]  ;;  %v5196_v45 = vpop.permute.xlu0 %1938 }
 0x227   : > { %v1884_v56 = vpop.f32.mrf.mxu1  ;;  %3930 = vmatmul.mubr.msk.f32.gmra.mxu0 %vm2074_vm10, %v5030_v42  ;;  %v5206_v54 = vpop.permute.xlu1 %2465 }
 0x228   : > { %2202 = vmatprep.mubr.f32.mxu0 %v6011_v17  ;;  %v1919_v25 = vmul.f32 %v1884_v56, %v4963_v52  ;;  %v1912_v52 = vmul.f32 %v1874_v14, %v4954_v15  ;;  %v4107_v15 = vld [vmem:[%s5969_s4 + $0x60] sm:$0xff] }
 0x229   : > { %v1886_v28 = vpop.f32.mrf.mxu1 }
 0x22a   : > { %v1920_v22 = vmul.f32 %v1886_v28, %v4965_v55  ;;  %v4106_v55 = vld [vmem:[%s5969_s4 + $0x68] sm:$0xff]  ;;  %v5200_v16 = vpop.permute.xlu0 %1928 }
 0x22b   : > { %3931 = vmatmul.mubr.msk.f32.gmra.mxu0 %vm2074_vm10, %v5038_v51  ;;  %2513 = vperm.xlu1 %4068, %v4106_v55   ;;  %v2011_v47 = vmul.f32 %v5200_v16, %v4385_v44 }
 0x22c   : > { %2309 = vmatprep.subr.mxu1 %v1920_v22  ;;  %2208 = vmatprep.mubr.f32.mxu0 %v6011_v17 }
 0x22d   : > { %2310 = vmatpush1.msra.mxu1 %v1919_v25  ;;  %v2533_v25 = vmul.f32 %v5206_v54, %v4379_v40 }
 0x22e   : > { %2311 = vmatprep.subr.mxu1 %v1916_v11  ;;  %v5204_v33 = vpop.permute.xlu0 %1923 }
 0x22f   : > { %2312 = vmatpush1.msra.mxu1 %v1915_v46  ;;  %3932 = vmatmul.mubr.msk.f32.gmra.mxu0 %vm2074_vm10, %v425_v5  ;;  %v2006_v14 = vmul.f32 %v5204_v33, %v4392_v50  ;;  %v2007_v48 = vmul.f32 %v5204_v33, %v4385_v44 }
 0x230   : > { %2313 = vmatprep.subr.mxu1 %v1912_v52  ;;  %2214 = vmatprep.mubr.f32.mxu0 %v6011_v17  ;;  %v2532_v52 = vmul.f32 %v5206_v54, %v4383_v43 }
 0x231   : > { %2314 = vmatpush1.msra.mxu1 %v1911_v35  ;;  %2509 = vperm.xlu1 %4068, %v4107_v15   ;;  %v2536_v35 = vmul.f32 %v5202_v13, %v4383_v43 }
 0x232   : > { %2315 = vmatprep.subr.mxu1 %v1908_v23  ;;  %v5208_v18 = vpop.permute.xlu0 %2681 }
 0x233   : > { %2316 = vmatpush1.msra.mxu1 %v1907_v7  ;;  %3933 = vmatmul.mubr.msk.f32.gmra.mxu0 %vm2074_vm10, %v426_v21 }
 0x234   : > { %2317 = vmatprep.subr.mxu1 %v1904_v60  ;;  %2220 = vmatprep.mubr.f32.mxu0 %v6011_v17  ;;  %v2540_v60 = vmul.f32 %v5198_v59, %v4383_v43 }
 0x235   : > { %2318 = vmatpush1.msra.mxu1 %v1903_v19  ;;  %4069 = vset.pattern.permute.xlu1 %v6009_v63  ;;  %v2014_v63 = vmul.f32 %v5194_v36, %v4392_v50  ;;  %v2019_v19 = vmul.f32 %v5196_v45, %v4385_v44 }
 0x236   : > { %2319 = vmatprep.subr.mxu1 %v1900_v3  ;;  %2731 = vperm.xlu1 %4069, %v452_v30  }
 0x237   : > { %2320 = vmatpush1.msra.mxu1 %v1899_v58  ;;  %3934 = vmatmul.mubr.msk.f32.gmra.mxu0 %vm2074_vm10, %v427_v8 }
 0x238   : > { %2321 = vmatprep.subr.mxu1 %v1896_v4  ;;  %2226 = vmatprep.mubr.f32.mxu0 %v6011_v17 }
 0x239   : > { %2322 = vmatpush1.msra.mxu1 %v1895_v20 }
 0x23a   : > { %2323 = vmatprep.subr.mxu1 %v1892_v24  ;;  %2003 = vperm.xlu1 %4069, %v421_v34  }
 0x23b   : > { %2324 = vmatpush1.msra.mxu1 %v1891_v1  ;;  %3935 = vmatmul.mubr.msk.f32.gmra.mxu0 %vm2074_vm10, %v428_v6 }
 0x23c   : > { %3946 = vmatmul.mubr.msk.f32.vlgmr.msra.gmra.mxu1 %vm2074_vm10, %v5021_v32  ;;  %2232 = vmatprep.mubr.f32.mxu0 %v6011_v17  ;;  %v5212_v32 = vpop.permute.xlu1 %2461 }
 0x23d   : > { %2363 = vmatprep.mubr.f32.mxu1 %v6011_v17  ;;  %v2529_v56 = vmul.f32 %v5212_v32, %v4379_v40  ;;  %v2528_v3 = vmul.f32 %v5212_v32, %v4383_v43 }
 0x23e   : > { %2746 = vperm.xlu1 %4069, %v455_v41  }
 0x23f   : > { %3936 = vmatmul.mubr.msk.f32.gmra.mxu0 %vm2074_vm10, %v429_v26 }
 0x240   : > { %3947 = vmatmul.mubr.msk.f32.gmra.mxu1 %vm2074_vm10, %v5030_v42  ;;  %2238 = vmatprep.mubr.f32.mxu0 %v6011_v17  ;;  %v2018_v42 = vmul.f32 %v5196_v45, %v4392_v50 }
 0x241   : > { %2369 = vmatprep.mubr.f32.mxu1 %v6011_v17 }
 0x243   : > { %3937 = vmatmul.mubr.msk.f32.gmra.mxu0 %vm2074_vm10, %v430_v2 }
 0x244   : > { %3948 = vmatmul.mubr.msk.f32.gmra.mxu1 %vm2074_vm10, %v5038_v51  ;;  %2244 = vmatprep.mubr.f32.mxu0 %v6011_v17  ;;  %v2010_v51 = vmul.f32 %v5200_v16, %v4392_v50 }
 0x245   : > { %2375 = vmatprep.mubr.f32.mxu1 %v6011_v17 }
 0x247   : > { %3938 = vmatmul.mubr.msk.f32.gmra.mxu0 %vm2074_vm10, %v431_v61 }
 0x248   : > { %3949 = vmatmul.mubr.msk.f32.gmra.mxu1 %vm2074_vm10, %v425_v5  ;;  %2250 = vmatprep.mubr.f32.mxu0 %v6011_v17  ;;  %v2537_v5 = vmul.f32 %v5202_v13, %v4379_v40 }
 0x249   : > { %2381 = vmatprep.mubr.f32.mxu1 %v6011_v17 }
 0x24b   : > { %3939 = vmatmul.mubr.msk.f32.gmra.mxu0 %vm2074_vm10, %v432_v62 }
 0x24c   : > { %3950 = vmatmul.mubr.msk.f32.gmra.mxu1 %vm2074_vm10, %v426_v21  ;;  %2256 = vmatprep.mubr.f32.mxu0 %v6011_v17  ;;  %v5236_v21 = vpop.permute.xlu0 %2676 }
 0x24d   : > { %2387 = vmatprep.mubr.f32.mxu1 %v6011_v17 }
 0x24f   : > { %3940 = vmatmul.mubr.msk.f32.gmra.mxu0 %vm2074_vm10, %v433_v12 }
 0x250   : > { %3951 = vmatmul.mubr.msk.f32.gmra.mxu1 %vm2074_vm10, %v427_v8  ;;  %2262 = vmatprep.mubr.f32.mxu0 %v6011_v17 }
 0x251   : > { %2393 = vmatprep.mubr.f32.mxu1 %v6011_v17 }
 0x253   : > { %3941 = vmatmul.mubr.msk.f32.gmra.mxu0 %vm2074_vm10, %v434_v38 }
 0x254   : > { %3952 = vmatmul.mubr.msk.f32.gmra.mxu1 %vm2074_vm10, %v428_v6  ;;  %2268 = vmatprep.mubr.f32.mxu0 %v6011_v17  ;;  %v2541_v6 = vmul.f32 %v5198_v59, %v4379_v40 }
 0x255   : > { %2399 = vmatprep.mubr.f32.mxu1 %v6011_v17 }
 0x257   : > { %3942 = vmatmul.mubr.msk.f32.gmra.mxu0 %vm2074_vm10, %v435_v53 }
 0x258   : > { %3953 = vmatmul.mubr.msk.f32.gmra.mxu1 %vm2074_vm10, %v429_v26  ;;  %2274 = vmatprep.mubr.f32.mxu0 %v6011_v17 }
 0x259   : > { %2405 = vmatprep.mubr.f32.mxu1 %v6011_v17 }
 0x25b   : > { %3943 = vmatmul.mubr.msk.f32.gmra.mxu0 %vm2074_vm10, %v436_v29 }
 0x25c   : > { %3954 = vmatmul.mubr.msk.f32.gmra.mxu1 %vm2074_vm10, %v430_v2  ;;  %2280 = vmatprep.mubr.f32.mxu0 %v6011_v17 }
 0x25d   : > { %2411 = vmatprep.mubr.f32.mxu1 %v6011_v17 }
 0x25f   : > { %3944 = vmatmul.mubr.msk.f32.gmra.mxu0 %vm2074_vm10, %v437_v39 }
 0x260   : > { %3955 = vmatmul.mubr.msk.f32.gmra.mxu1 %vm2074_vm10, %v431_v61  ;;  %2286 = vmatprep.mubr.f32.mxu0 %v6011_v17 }
 0x261   : > { %2417 = vmatprep.mubr.f32.mxu1 %v6011_v17 }
 0x263   : > { %3945 = vmatmul.mubr.msk.f32.gmra.mxu0 %vm2074_vm10, %v438_v27 }
 0x264   : > { %3956 = vmatmul.mubr.msk.f32.gmra.mxu1 %vm2074_vm10, %v432_v62  ;;  %2946 = vmatprep.mubr.f32.mxu0 %v6011_v17 }
 0x265   : > { %2423 = vmatprep.mubr.f32.mxu1 %v6011_v17 }
 0x268   : > { %3957 = vmatmul.mubr.msk.f32.gmra.mxu1 %vm2074_vm10, %v433_v12  ;;  %v5248_v12 = vpop.permute.xlu1 %2671 }
 0x269   : > { %2429 = vmatprep.mubr.f32.mxu1 %v6011_v17 }
 0x26c   : > { %3958 = vmatmul.mubr.msk.f32.gmra.mxu1 %vm2074_vm10, %v434_v38 }
 0x26d   : > { %2435 = vmatprep.mubr.f32.mxu1 %v6011_v17 }
 0x270   : > { %3959 = vmatmul.mubr.msk.f32.gmra.mxu1 %vm2074_vm10, %v435_v53 }
 0x271   : > { %2441 = vmatprep.mubr.f32.mxu1 %v6011_v17 }
 0x274   : > { %3960 = vmatmul.mubr.msk.f32.gmra.mxu1 %vm2074_vm10, %v436_v29  ;;  %v5251_v29 = vpop.permute.xlu0 %2666 }
 0x275   : > { %2447 = vmatprep.mubr.f32.mxu1 %v6011_v17 }
 0x278   : > { %3961 = vmatmul.mubr.msk.f32.gmra.mxu1 %vm2074_vm10, %v437_v39 }
 0x279   : > { %2453 = vmatprep.mubr.f32.mxu1 %v6011_v17 }
 0x27c   : > { %3962 = vmatmul.mubr.msk.f32.gmra.mxu1 %vm2074_vm10, %v438_v27 }
 0x27d   : > { %3035 = vmatprep.mubr.f32.mxu1 %v6011_v17 }
 0x2e3   : > { %v2192_v10 = vpop.f32.mrf.mxu0 }
 0x2e4   : > { %v2193_v30 = vadd.f32 %v2192_v10, %v2006_v14 }
 0x2e5   : > { %v2194_v49 = vpop.f32.mrf.mxu0 }
 0x2e6   : > { %v2195_v46 = vadd.f32 %v2194_v49, %v2007_v48  ;;  %v2596_v38 = vadd.f32 %v2528_v3, %v2193_v30  ;;  %v6013_v30 = vld [vmem:[#allocation7_spill] sm:$0xff] }
 0x2e7   : > { %v2198_v37 = vpop.f32.mrf.mxu0  ;;  %v2009_v3 = vmul.f32 %v5204_v33, %v6013_v30 }
 0x2e8   : > { %v2199_v55 = vadd.f32 %v2198_v37, %v2010_v51  ;;  %v2597_v1 = vadd.f32 %v2529_v56, %v2195_v46  ;;  %v5261_v46 = vld [vmem:[%s5972_s7] sm:$0xff] }
 0x2e9   : > { %v2200_v31 = vpop.f32.mrf.mxu0 }
 0x2ea   : > { %v2201_v22 = vadd.f32 %v2200_v31, %v2011_v47  ;;  %v2600_v26 = vadd.f32 %v2532_v52, %v2199_v55  ;;  %v2750_v34 = vadd.f32 %v5251_v29, %v2597_v1  ;;  %v2749_v31 = vadd.f32 %v5251_v29, %v2596_v38 }
 0x2eb   : > { %v2204_v0 = vpop.f32.mrf.mxu0 }
 0x2ec   : > { %v2205_v9 = vadd.f32 %v2204_v0, %v2014_v63  ;;  %v2601_v4 = vadd.f32 %v2533_v25, %v2201_v22  ;;  %v2753_v41 = vadd.f32 %v5248_v12, %v2600_v26  ;;  %v2834_v56 = vmul.f32 0.01, %v2750_v34 }
 0x2ed   : > { %v2206_v28 = vpop.f32.mrf.mxu0  ;;  %vm2818_vm11 = vcmp.gt.f32.partialorder %v2750_v34, 0.0  ;;  %vm2817_vm12 = vcmp.gt.f32.partialorder %v2749_v31, 0.0 }
 0x2ee   : > { %v2207_v11 = vadd.f32 %v2206_v28, %v2015_v57  ;;  %v2604_v8 = vadd.f32 %v2536_v35, %v2205_v9  ;;  %v2754_v39 = vadd.f32 %v5248_v12, %v2601_v4  ;;  %v2837_v57 = vmul.f32 0.01, %v2753_v41  ;;  %v6012_v35 = vld [vmem:[#allocation9_spill] sm:$0xff] }
 0x2ef   : > { %v2210_v23 = vpop.f32.mrf.mxu0  ;;  %vm2821_vm9 = vcmp.gt.f32.partialorder %v2753_v41, 0.0  ;;  %v2833_v9 = vmul.f32 0.01, %v2749_v31  ;;  %v2017_v4 = vmul.f32 %v5194_v36, %v6013_v30 }
 0x2f0   : > { %v2605_v7 = vadd.f32 %v2537_v5, %v2207_v11  ;;  %v2211_v15 = vadd.f32 %v2210_v23, %v2018_v42  ;;  %v2757_v53 = vadd.f32 %v5236_v21, %v2604_v8  ;;  %v2838_v14 = vmul.f32 0.01, %v2754_v39 }
 0x2f1   : > { %v2212_v58 = vpop.f32.mrf.mxu0  ;;  %vm2822_vm8 = vcmp.gt.f32.partialorder %v2754_v39, 0.0  ;;  %v2853_v25 = vsel %vm2821_vm9, %v2753_v41, %v2837_v57  ;;  %v2850_v5 = vsel %vm2818_vm11, %v2750_v34, %v2834_v56  ;;  %v2849_v55 = vsel %vm2817_vm12, %v2749_v31, %v2833_v9 }
 0x2f2   : > { %v2608_v20 = vadd.f32 %v2540_v60, %v2211_v15  ;;  %v2213_v24 = vadd.f32 %v2212_v58, %v2019_v19  ;;  %v2758_v2 = vadd.f32 %v5236_v21, %v2605_v7  ;;  %v2841_v63 = vmul.f32 0.01, %v2757_v53  ;;  %v5275_v19 = vld [vmem:[%s5972_s7 + $0x8] sm:$0xff] }
 0x2f3   : > { %vm2825_vm7 = vcmp.gt.f32.partialorder %v2757_v53, 0.0  ;;  %v2854_v22 = vsel %vm2822_vm8, %v2754_v39, %v2838_v14  ;;  %v2008_v23 = vmul.f32 %v5204_v33, %v6012_v35  ;;  %v2016_v7 = vmul.f32 %v5194_v36, %v6012_v35 }
 0x2f4   : > { %v2761_v61 = vadd.f32 %v5208_v18, %v2608_v20  ;;  %v2609_v62 = vadd.f32 %v2541_v6, %v2213_v24  ;;  %v2842_v37 = vmul.f32 0.01, %v2758_v2  ;;  %vm2826_vm6 = vcmp.gt.f32.partialorder %v2758_v2, 0.0  ;;  %v6014_v20 = vld [vmem:[#allocation6_spill] sm:$0xff]  ;;  %v6015_v6 = vld [vmem:[#allocation8_spill] sm:$0xff] }
 0x2f5   : > { %v2857_v51 = vsel %vm2825_vm7, %v2757_v53, %v2841_v63  ;;  %v2020_v60 = vmul.f32 %v5196_v45, %v6012_v35  ;;  %v2012_v8 = vmul.f32 %v5200_v16, %v6012_v35  ;;  %v2013_v58 = vmul.f32 %v5200_v16, %v6013_v30 }
 0x2f6   : > { %v2762_v27 = vadd.f32 %v5208_v18, %v2609_v62  ;;  %v2845_v10 = vmul.f32 0.01, %v2761_v61  ;;  %vm2829_vm5 = vcmp.gt.f32.partialorder %v2761_v61, 0.0  ;;  %v2858_v48 = vsel %vm2826_vm6, %v2758_v2, %v2842_v37 }
 0x2f7   : > { %v2531_v24 = vmul.f32 %v5212_v32, %v6014_v20  ;;  %v2534_v1 = vmul.f32 %v5206_v54, %v6015_v6  ;;  %v2535_v26 = vmul.f32 %v5206_v54, %v6014_v20  ;;  %v2539_v16 = vmul.f32 %v5202_v13, %v6014_v20  ;;  %v5301_v54 = vld [vmem:[%s5972_s7 + $0x10] sm:$0xff] }
 0x2f8   : > { %vm2830_vm4 = vcmp.gt.f32.partialorder %v2762_v27, 0.0  ;;  %v2846_v49 = vmul.f32 0.01, %v2762_v27  ;;  %v2861_v47 = vsel %vm2829_vm5, %v2761_v61, %v2845_v10  ;;  %v2538_v53 = vmul.f32 %v5202_v13, %v6015_v6 }
 0x2f9   : > { %v2542_v41 = vmul.f32 %v5198_v59, %v6015_v6  ;;  %v2021_v10 = vmul.f32 %v5196_v45, %v6013_v30  ;;  %v2530_v13 = vmul.f32 %v5212_v32, %v6015_v6  ;;  %v2868_v45 = vld [vmem:[%s5972_s7 + $0x18] sm:$0xff] }
 0x2fa   : > { %v2862_v0 = vsel %vm2830_vm4, %v2762_v27, %v2846_v49 }
 0x2fb   : > { %2906 = vmatprep.subr.mxu0 %v2862_v0 }
 0x2fc   : > { %v2359_v42 = vpop.f32.mrf.mxu1  ;;  %2907 = vmatpush1.msra.mxu0 %v2861_v47 }
 0x2fd   : > { %2908 = vmatprep.subr.mxu0 %v2858_v48  ;;  %v2360_v49 = vadd.f32 %v2359_v42, %v2008_v23 }
 0x2fe   : > { %v2361_v28 = vpop.f32.mrf.mxu1  ;;  %2909 = vmatpush1.msra.mxu0 %v2857_v51 }
 0x2ff   : > { %2910 = vmatprep.subr.mxu0 %v2854_v22  ;;  %v2362_v36 = vadd.f32 %v2361_v28, %v2009_v3 }
 0x300   : > { %v2365_v11 = vpop.f32.mrf.mxu1  ;;  %2911 = vmatpush1.msra.mxu0 %v2853_v25 }
 0x301   : > { %2912 = vmatprep.subr.mxu0 %v2850_v5  ;;  %v2366_v38 = vadd.f32 %v2365_v11, %v2012_v8  ;;  %v2599_v57 = vadd.f32 %v2531_v24, %v2362_v36 }
 0x302   : > { %v2367_v52 = vpop.f32.mrf.mxu1  ;;  %2913 = vmatpush1.msra.mxu0 %v2849_v55 }
 0x303   : > { %3963 = vmatmul.mubr.msk.f32.vlgmr.msra.gmra.mxu0 %vm2869_vm14, %v5261_v46  ;;  %3140 = vmatprep.subr.mxu0 %v2862_v0  ;;  %v2368_v61 = vadd.f32 %v2367_v52, %v2013_v58 }
 0x304   : > { %v2371_v15 = vpop.f32.mrf.mxu1  ;;  %3141 = vmatpush1.msra.mxu0 %v2861_v47  ;;  %2952 = vmatprep.mubr.f32.mxu0 %v6011_v17  ;;  %v2543_v47 = vmul.f32 %v5198_v59, %v6014_v20 }
 0x305   : > { %3142 = vmatprep.subr.mxu0 %v2858_v48  ;;  %v2372_v33 = vadd.f32 %v2371_v15, %v2016_v7  ;;  %v2603_v63 = vadd.f32 %v2535_v26, %v2368_v61  ;;  %v2602_v48 = vadd.f32 %v2534_v1, %v2366_v38 }
 0x306   : > { %v2373_v2 = vpop.f32.mrf.mxu1  ;;  %3143 = vmatpush1.msra.mxu0 %v2857_v51  ;;  %v2598_v51 = vadd.f32 %v2530_v13, %v2360_v49 }
 0x307   : > { %v2374_v62 = vadd.f32 %v2373_v2, %v2017_v4  ;;  %3964 = vmatmul.mubr.msk.f32.gmra.mxu0 %vm2869_vm14, %v5275_v19  ;;  %3144 = vmatprep.subr.mxu0 %v2854_v22  ;;  %v2606_v37 = vadd.f32 %v2538_v53, %v2372_v33  ;;  %v2756_v59 = vadd.f32 %v5248_v12, %v2603_v63 }
 0x308   : > { %v2377_v39 = vpop.f32.mrf.mxu1  ;;  %3145 = vmatpush1.msra.mxu0 %v2853_v25  ;;  %2958 = vmatprep.mubr.f32.mxu0 %v6011_v17  ;;  %v2752_v22 = vadd.f32 %v5251_v29, %v2599_v57  ;;  %v2755_v25 = vadd.f32 %v5248_v12, %v2602_v48  ;;  %v2751_v52 = vadd.f32 %v5251_v29, %v2598_v51 }
 0x309   : > { %v2607_v27 = vadd.f32 %v2539_v16, %v2374_v62  ;;  %v2378_v34 = vadd.f32 %v2377_v39, %v2020_v60  ;;  %3146 = vmatprep.subr.mxu0 %v2850_v5  ;;  %v2759_v9 = vadd.f32 %v5236_v21, %v2606_v37  ;;  %vm2824_vm2 = vcmp.gt.f32.partialorder %v2756_v59, 0.0 }
 0x30a   : > { %v2379_v31 = vpop.f32.mrf.mxu1  ;;  %3147 = vmatpush1.msra.mxu0 %v2849_v55  ;;  %v2839_v15 = vmul.f32 0.01, %v2755_v25  ;;  %vm2823_vm3 = vcmp.gt.f32.partialorder %v2755_v25, 0.0  ;;  %v2836_v60 = vmul.f32 0.01, %v2752_v22  ;;  %vm2820_vm4 = vcmp.gt.f32.partialorder %v2752_v22, 0.0 }
 0x30b   : > { %v2610_v0 = vadd.f32 %v2542_v41, %v2378_v34  ;;  %v2380_v14 = vadd.f32 %v2379_v31, %v2021_v10  ;;  %3965 = vmatmul.mubr.msk.f32.gmra.mxu0 %vm2869_vm14, %v5301_v54  ;;  %v2760_v32 = vadd.f32 %v5236_v21, %v2607_v27  ;;  %v2843_v21 = vmul.f32 0.01, %v2759_v9 }
 0x30c   : > { %2964 = vmatprep.mubr.f32.mxu0 %v6011_v17  ;;  %vm2827_vm1 = vcmp.gt.f32.partialorder %v2759_v9, 0.0  ;;  %v2835_v8 = vmul.f32 0.01, %v2751_v52  ;;  %vm2819_vm5 = vcmp.gt.f32.partialorder %v2751_v52, 0.0  ;;  %v2855_v29 = vsel %vm2823_vm3, %v2755_v25, %v2839_v15  ;;  %v5348_v62 = vpop.f32.mrf.mxu1  ;;  %v5408_v25 = vpop.permute.xlu0 %1953 }
 0x30d   : > { %v2763_v42 = vadd.f32 %v5208_v18, %v2610_v0  ;;  %v2611_v56 = vadd.f32 %v2543_v47, %v2380_v14  ;;  %v2844_v55 = vmul.f32 0.01, %v2760_v32  ;;  %vm2828_vm0 = vcmp.gt.f32.partialorder %v2760_v32, 0.0 }
 0x30e   : > { %v2859_v3 = vsel %vm2827_vm1, %v2759_v9, %v2843_v21  ;;  %v2852_v4 = vsel %vm2820_vm4, %v2752_v22, %v2836_v60  ;;  %v2851_v24 = vsel %vm2819_vm5, %v2751_v52, %v2835_v8  ;;  %v5352_v36 = vpop.f32.mrf.mxu1 }
 0x30f   : > { %v2764_v28 = vadd.f32 %v5208_v18, %v2611_v56  ;;  %3966 = vmatmul.mubr.msk.f32.gmra.mxu0 %vm2869_vm14, %v2868_v45  ;;  %v2847_v11 = vmul.f32 0.01, %v2763_v42  ;;  %vm2831_vm15 = vcmp.gt.f32.partialorder %v2763_v42, 0.0  ;;  %v2840_v18 = vmul.f32 0.01, %v2756_v59 }
 0x310   : > { %3188 = vmatprep.mubr.f32.mxu0 %v6011_v17  ;;  %v2860_v12 = vsel %vm2828_vm0, %v2760_v32, %v2844_v55  ;;  %v5356_v53 = vpop.f32.mrf.mxu1  ;;  %v5418_v21 = vpop.permute.xlu0 %1948 }
 0x311   : > { %vm2832_vm13 = vcmp.gt.f32.partialorder %v2764_v28, 0.0  ;;  %v2848_v5 = vmul.f32 0.01, %v2764_v28  ;;  %v2863_v7 = vsel %vm2831_vm15, %v2763_v42, %v2847_v11  ;;  %v2856_v58 = vsel %vm2824_vm2, %v2756_v59, %v2840_v18 }
 0x313   : > { %v2864_v23 = vsel %vm2832_vm13, %v2764_v28, %v2848_v5  ;;  %v5404_v28 = vpop.permute.xlu1 %1958 }
 0x314   : > { %2995 = vmatprep.subr.mxu1 %v2864_v23  ;;  %v5430_v60 = vpop.permute.xlu0 %1943 }
 0x315   : > { %2996 = vmatpush1.msra.mxu1 %v2863_v7 }
 0x316   : > { %2997 = vmatprep.subr.mxu1 %v2860_v12 }
 0x317   : > { %2998 = vmatpush1.msra.mxu1 %v2859_v3  ;;  %v5414_v55 = vpop.permute.xlu1 %2489 }
 0x318   : > { %2999 = vmatprep.subr.mxu1 %v2856_v58 }
 0x319   : > { %3000 = vmatpush1.msra.mxu1 %v2855_v29 }
 0x31a   : > { %3001 = vmatprep.subr.mxu1 %v2852_v4 }
 0x31b   : > { %3002 = vmatpush1.msra.mxu1 %v2851_v24 }
 0x31c   : > { %3967 = vmatmul.mubr.msk.f32.vlgmr.msra.gmra.mxu1 %vm2869_vm14, %v5261_v46  ;;  %3229 = vmatprep.subr.mxu1 %v2864_v23  ;;  %v5338_v46 = vpop.f32.mrf.mxu0 }
 0x31d   : > { %3230 = vmatpush1.msra.mxu1 %v2863_v7  ;;  %3041 = vmatprep.mubr.f32.mxu1 %v6011_v17  ;;  %v5424_v7 = vpop.permute.xlu1 %2485 }
 0x31e   : > { %3231 = vmatprep.subr.mxu1 %v2860_v12  ;;  %v5340_v1 = vpop.f32.mrf.mxu0 }
 0x31f   : > { %3232 = vmatpush1.msra.mxu1 %v2859_v3 }
 0x320   : > { %3968 = vmatmul.mubr.msk.f32.gmra.mxu1 %vm2869_vm14, %v5275_v19  ;;  %3233 = vmatprep.subr.mxu1 %v2856_v58  ;;  %v5342_v19 = vpop.f32.mrf.mxu0 }
 0x321   : > { %3234 = vmatpush1.msra.mxu1 %v2855_v29  ;;  %3047 = vmatprep.mubr.f32.mxu1 %v6011_v17  ;;  %v5436_v58 = vpop.permute.xlu1 %2481 }
 0x322   : > { %3235 = vmatprep.subr.mxu1 %v2852_v4  ;;  %v5344_v26 = vpop.f32.mrf.mxu0  ;;  %v5440_v4 = vpop.permute.xlu0 %2701 }
 0x323   : > { %3236 = vmatpush1.msra.mxu1 %v2851_v24  ;;  %v2031_v24 = vmul.f32 %v5408_v25, %v4385_v44 }
 0x324   : > { %3969 = vmatmul.mubr.msk.f32.gmra.mxu1 %vm2869_vm14, %v5301_v54  ;;  %v5346_v33 = vpop.f32.mrf.mxu0  ;;  %v5360_v54 = vpop.f32.mrf.mxu1 }
 0x325   : > { %3053 = vmatprep.mubr.f32.mxu1 %v6011_v17 }
 0x326   : > { %v2230_v2 = vpop.f32.mrf.mxu0  ;;  %v5364_v34 = vpop.f32.mrf.mxu1 }
 0x328   : > { %3970 = vmatmul.mubr.msk.f32.gmra.mxu1 %vm2869_vm14, %v2868_v45  ;;  %v2234_v61 = vpop.f32.mrf.mxu0  ;;  %v5368_v10 = vpop.f32.mrf.mxu1 }
 0x329   : > { %3277 = vmatprep.mubr.f32.mxu1 %v6011_v17 }
 0x32a   : > { %v5350_v16 = vpop.f32.mrf.mxu0  ;;  %v5372_v13 = vpop.f32.mrf.mxu1 }
 0x32c   : > { %v5354_v38 = vpop.f32.mrf.mxu0  ;;  %v5376_v31 = vpop.f32.mrf.mxu1 }
 0x32d   : > { %6016 = vst [vmem:[#allocation9_spill] sm:$0xff] %v5354_v38 }
 0x32e   : > { %v5358_v39 = vpop.f32.mrf.mxu0  ;;  %v5380_v0 = vpop.f32.mrf.mxu1 }
 0x32f   : > { %6017 = vst [vmem:[#allocation7_spill] sm:$0xff] %v5358_v39  ;;  %6020 = vst [vmem:[#allocation10_spill] sm:$0xff] %v5380_v0  ;;  %v2552_v0 = vmul.f32 %v5424_v7, %v4383_v43 }
 0x330   : > { %v5362_v27 = vpop.f32.mrf.mxu0  ;;  %v5384_v47 = vpop.f32.mrf.mxu1 }
 0x331   : > { %6018 = vst [vmem:[#allocation6_spill] sm:$0xff] %v5362_v27  ;;  %6022 = vst [vmem:[#allocation12_spill] sm:$0xff] %v5384_v47  ;;  %v2557_v47 = vmul.f32 %v5414_v55, %v4379_v40 }
 0x332   : > { %v5366_v41 = vpop.f32.mrf.mxu0  ;;  %v5388_v48 = vpop.f32.mrf.mxu1 }
 0x333   : > { %6019 = vst [vmem:[#allocation8_spill] sm:$0xff] %v5366_v41  ;;  %6024 = vst [vmem:[#allocation14_spill] sm:$0xff] %v5388_v48 }
 0x334   : > { %v5370_v49 = vpop.f32.mrf.mxu0  ;;  %v5392_v32 = vpop.f32.mrf.mxu1 }
 0x335   : > { %6026 = vst [vmem:[#allocation16_spill] sm:$0xff] %v5392_v32 }
 0x336   : > { %v5374_v37 = vpop.f32.mrf.mxu0  ;;  %v5396_v56 = vpop.f32.mrf.mxu1 }
 0x337   : > { %6028 = vst [vmem:[#allocation18_spill] sm:$0xff] %v5396_v56  ;;  %v5483_v56 = vpop.permute.xlu0 %2696 }
 0x338   : > { %v5378_v63 = vpop.f32.mrf.mxu0  ;;  %v5400_v9 = vpop.f32.mrf.mxu1 }
 0x339   : > { %6030 = vst [vmem:[#allocation20_spill] sm:$0xff] %v5400_v9 }
 0x33a   : > { %v5382_v14 = vpop.f32.mrf.mxu0  ;;  %v5406_v22 = vpop.f32.mrf.mxu1 }
 0x33b   : > { %6021 = vst [vmem:[#allocation11_spill] sm:$0xff] %v5382_v14  ;;  %6032 = vst [vmem:[#allocation22_spill] sm:$0xff] %v5406_v22 }
 0x33c   : > { %v5386_v57 = vpop.f32.mrf.mxu0  ;;  %v5412_v5 = vpop.f32.mrf.mxu1 }
 0x33d   : > { %6023 = vst [vmem:[#allocation13_spill] sm:$0xff] %v5386_v57  ;;  %6034 = vst [vmem:[#allocation24_spill] sm:$0xff] %v5412_v5  ;;  %v2553_v57 = vmul.f32 %v5424_v7, %v4379_v40 }
 0x33e   : > { %v5390_v45 = vpop.f32.mrf.mxu0  ;;  %v5420_v23 = vpop.f32.mrf.mxu1 }
 0x33f   : > { %6025 = vst [vmem:[#allocation15_spill] sm:$0xff] %v5390_v45  ;;  %6036 = vst [vmem:[#allocation26_spill] sm:$0xff] %v5420_v23  ;;  %v2034_v23 = vmul.f32 %v5404_v28, %v4392_v50  ;;  %v2231_v45 = vadd.f32 %v2230_v2, %v2031_v24  ;;  %v5467_v2 = vpop.permute.xlu1 %2477 }
 0x340   : > { %v5394_v42 = vpop.f32.mrf.mxu0  ;;  %v5426_v15 = vpop.f32.mrf.mxu1 }
 0x341   : > { %6027 = vst [vmem:[#allocation17_spill] sm:$0xff] %v5394_v42  ;;  %6038 = vst [vmem:[#allocation28_spill] sm:$0xff] %v5426_v15  ;;  %v2621_v22 = vadd.f32 %v2553_v57, %v2231_v45 }
 0x342   : > { %v5398_v51 = vpop.f32.mrf.mxu0  ;;  %v5432_v3 = vpop.f32.mrf.mxu1 }
 0x343   : > { %6029 = vst [vmem:[#allocation19_spill] sm:$0xff] %v5398_v51  ;;  %6040 = vst [vmem:[#allocation30_spill] sm:$0xff] %v5432_v3  ;;  %v2030_v3 = vmul.f32 %v5408_v25, %v4392_v50  ;;  %v2556_v51 = vmul.f32 %v5414_v55, %v4383_v43  ;;  %v2774_v14 = vadd.f32 %v5483_v56, %v2621_v22  ;;  %v5492_v57 = vpop.permute.xlu1 %2691 }
 0x344   : > { %v5402_v59 = vpop.f32.mrf.mxu0  ;;  %v5446_v15 = vpop.f32.mrf.mxu1 }
 0x345   : > { %6031 = vst [vmem:[#allocation21_spill] sm:$0xff] %v5402_v59  ;;  %6042 = vst [vmem:[#allocation32_spill] sm:$0xff] %v5446_v15  ;;  %v2035_v15 = vmul.f32 %v5404_v28, %v4385_v44  ;;  %v2023_v59 = vmul.f32 %v5430_v60, %v4385_v44 }
 0x346   : > { %v5410_v11 = vpop.f32.mrf.mxu0  ;;  %v5475_v5 = vpop.f32.mrf.mxu1 }
 0x347   : > { %6033 = vst [vmem:[#allocation23_spill] sm:$0xff] %v5410_v11  ;;  %v2229_v11 = vadd.f32 %v5346_v33, %v2030_v3  ;;  %v2237_v24 = vadd.f32 %v5350_v16, %v2035_v15  ;;  %6043 = vst [vmem:[#allocation33_spill] sm:$0xff] %v5475_v5  ;;  %v2219_v33 = vadd.f32 %v5340_v1, %v2023_v59 }
 0x348   : > { %v5416_v52 = vpop.f32.mrf.mxu0  ;;  %v2545_v3 = vmul.f32 %v5467_v2, %v4379_v40  ;;  %v2544_v5 = vmul.f32 %v5467_v2, %v4383_v43  ;;  %v5488_v27 = vpop.f32.mrf.mxu1 }
 0x349   : > { %6035 = vst [vmem:[#allocation25_spill] sm:$0xff] %v5416_v52  ;;  %v2026_v52 = vmul.f32 %v5418_v21, %v4392_v50  ;;  %v2620_v9 = vadd.f32 %v2552_v0, %v2229_v11  ;;  %v2625_v38 = vadd.f32 %v2557_v47, %v2237_v24 }
 0x34a   : > { %v5422_v18 = vpop.f32.mrf.mxu0  ;;  %v5497_v0 = vpop.f32.mrf.mxu1 }
 0x34b   : > { %6037 = vst [vmem:[#allocation27_spill] sm:$0xff] %v5422_v18  ;;  %v2235_v18 = vadd.f32 %v2234_v61, %v2034_v23  ;;  %v2549_v23 = vmul.f32 %v5436_v58, %v4379_v40  ;;  %v2223_v32 = vadd.f32 %v5342_v19, %v2026_v52  ;;  %v2613_v19 = vadd.f32 %v2545_v3, %v2219_v33 }
 0x34c   : > { %v5428_v12 = vpop.f32.mrf.mxu0 }
 0x34d   : > { %6039 = vst [vmem:[#allocation29_spill] sm:$0xff] %v5428_v12  ;;  %v2022_v12 = vmul.f32 %v5430_v60, %v4392_v50  ;;  %v2624_v16 = vadd.f32 %v2556_v51, %v2235_v18  ;;  %v5495_v18 = vpop.permute.xlu0 %2686 }
 0x34e   : > { %v5434_v8 = vpop.f32.mrf.mxu0  ;;  %v2766_v22 = vadd.f32 %v5495_v18, %v2613_v19 }
 0x34f   : > { %6041 = vst [vmem:[#allocation31_spill] sm:$0xff] %v5434_v8  ;;  %v2027_v8 = vmul.f32 %v5418_v21, %v4385_v44  ;;  %v2217_v15 = vadd.f32 %v5338_v46, %v2022_v12  ;;  %v2777_v41 = vadd.f32 %v5440_v4, %v2624_v16  ;;  %v2773_v46 = vadd.f32 %v5483_v56, %v2620_v9 }
 0x351   : > { %v2225_v61 = vadd.f32 %v5344_v26, %v2027_v8  ;;  %v2548_v26 = vmul.f32 %v5436_v58, %v4383_v43  ;;  %v2612_v45 = vadd.f32 %v2544_v5, %v2217_v15  ;;  %v5504_v15 = vpop.f32.mrf.mxu1 }
 0x353   : > { %v2617_v59 = vadd.f32 %v2549_v23, %v2225_v61  ;;  %v2616_v52 = vadd.f32 %v2548_v26, %v2223_v32  ;;  %v2778_v32 = vadd.f32 %v5440_v4, %v2625_v38  ;;  %v2765_v9 = vadd.f32 %v5495_v18, %v2612_v45 }
 0x355   : > { %v2770_v47 = vadd.f32 %v5492_v57, %v2617_v59  ;;  %v2769_v61 = vadd.f32 %v5492_v57, %v2616_v52 }
 0x3c3   : > { %v5438_v29 = vpop.f32.mrf.mxu0 }
 0x3c4   : > { %v2949_v38 = vadd.f32 %v5438_v29, %v2765_v9  ;;  %v2032_v9 = vmul.f32 %v5408_v25, %v6012_v35 }
 0x3c5   : > { %v2950_v42 = vpop.f32.mrf.mxu0 }
 0x3c6   : > { %v2951_v3 = vadd.f32 %v2950_v42, %v2766_v22  ;;  %v3076_v45 = vmul.f32 0.01, %v2949_v38  ;;  %vm3060_vm13 = vcmp.gt.f32.partialorder %v2949_v38, 0.0 }
 0x3c7   : > { %v2954_v48 = vpop.f32.mrf.mxu0 }
 0x3c8   : > { %v2955_v26 = vadd.f32 %v2954_v48, %v2769_v61  ;;  %v3077_v48 = vmul.f32 0.01, %v2951_v3  ;;  %vm3061_vm14 = vcmp.gt.f32.partialorder %v2951_v3, 0.0  ;;  %v2025_v61 = vmul.f32 %v5430_v60, %v6013_v30 }
 0x3c9   : > { %v2956_v8 = vpop.f32.mrf.mxu0 }
 0x3ca   : > { %v2957_v5 = vadd.f32 %v2956_v8, %v2770_v47  ;;  %v3080_v19 = vmul.f32 0.01, %v2955_v26  ;;  %vm3064_vm12 = vcmp.gt.f32.partialorder %v2955_v26, 0.0  ;;  %v3093_v22 = vsel %vm3061_vm14, %v2951_v3, %v3077_v48 }
 0x3cb   : > { %v2960_v1 = vpop.f32.mrf.mxu0  ;;  %v2555_v3 = vmul.f32 %v5424_v7, %v6014_v20 }
 0x3cc   : > { %v2961_v23 = vadd.f32 %v2960_v1, %v2773_v46  ;;  %v3081_v1 = vmul.f32 0.01, %v2957_v5  ;;  %vm3065_vm11 = vcmp.gt.f32.partialorder %v2957_v5, 0.0  ;;  %v3096_v47 = vsel %vm3064_vm12, %v2955_v26, %v3080_v19 }
 0x3cd   : > { %v2962_v39 = vpop.f32.mrf.mxu0 }
 0x3ce   : > { %v2963_v11 = vadd.f32 %v2962_v39, %v2774_v14  ;;  %v5507_v14 = vpop.f32.mrf.mxu1  ;;  %vm3068_vm9 = vcmp.gt.f32.partialorder %v2961_v23, 0.0 }
 0x3cf   : > { %v2966_v51 = vpop.f32.mrf.mxu0 }
 0x3d0   : > { %v2967_v12 = vadd.f32 %v2966_v51, %v2777_v41  ;;  %v3085_v59 = vmul.f32 0.01, %v2963_v11  ;;  %v3084_v41 = vmul.f32 0.01, %v2961_v23  ;;  %vm3069_vm8 = vcmp.gt.f32.partialorder %v2963_v11, 0.0  ;;  %v5509_v29 = vpop.f32.mrf.mxu1 }
 0x3d1   : > { %v2968_v24 = vpop.f32.mrf.mxu0  ;;  %v3097_v51 = vsel %vm3065_vm11, %v2957_v5, %v3081_v1  ;;  %v3092_v5 = vsel %vm3060_vm13, %v2949_v38, %v3076_v45  ;;  %v2396_v38 = vadd.f32 %v5364_v34, %v2032_v9  ;;  %v2559_v34 = vmul.f32 %v5414_v55, %v6014_v20 }
 0x3d2   : > { %v2969_v33 = vadd.f32 %v2968_v24, %v2778_v32  ;;  %v3088_v16 = vmul.f32 0.01, %v2967_v12  ;;  %vm3072_vm6 = vcmp.gt.f32.partialorder %v2967_v12, 0.0  ;;  %v3101_v52 = vsel %vm3069_vm8, %v2963_v11, %v3085_v59  ;;  %v5518_v11 = vld [vmem:[%s5973_s8] sm:$0xff] }
 0x3d3   : > { %v3100_v46 = vsel %vm3068_vm9, %v2961_v23, %v3084_v41  ;;  %v2024_v32 = vmul.f32 %v5430_v60, %v6012_v35  ;;  %v2033_v23 = vmul.f32 %v5408_v25, %v6013_v30  ;;  %v2036_v24 = vmul.f32 %v5404_v28, %v6012_v35 }
 0x3d4   : > { %v3089_v39 = vmul.f32 0.01, %v2969_v33  ;;  %vm3073_vm7 = vcmp.gt.f32.partialorder %v2969_v33, 0.0  ;;  %v3104_v42 = vsel %vm3072_vm6, %v2967_v12, %v3088_v16  ;;  %v2558_v60 = vmul.f32 %v5414_v55, %v6015_v6 }
 0x3d5   : > { %v2398_v16 = vadd.f32 %v5368_v10, %v2033_v23  ;;  %v2402_v59 = vadd.f32 %v5372_v13, %v2036_v24  ;;  %v2028_v25 = vmul.f32 %v5418_v21, %v6012_v35  ;;  %v2554_v41 = vmul.f32 %v5424_v7, %v6015_v6  ;;  %v5551_v10 = vld [vmem:[%s5973_s8 + $0x8] sm:$0xff] }
 0x3d6   : > { %v3105_v8 = vsel %vm3073_vm7, %v2969_v33, %v3089_v39  ;;  %v2029_v33 = vmul.f32 %v5418_v21, %v6013_v30  ;;  %v2037_v39 = vmul.f32 %v5404_v28, %v6013_v30  ;;  %v2551_v28 = vmul.f32 %v5436_v58, %v6014_v20 }
 0x3d7   : > { %3148 = vmatprep.subr.mxu0 %v3105_v8  ;;  %v2386_v7 = vadd.f32 %v5352_v36, %v2025_v61  ;;  %v2390_v19 = vadd.f32 %v5356_v53, %v2028_v25  ;;  %v2623_v48 = vadd.f32 %v2555_v3, %v2398_v16  ;;  %v2626_v45 = vadd.f32 %v2558_v60, %v2402_v59  ;;  %v5574_v53 = vld [vmem:[%s5973_s8 + $0x10] sm:$0xff] }
 0x3d8   : > { %3149 = vmatpush1.msra.mxu0 %v3104_v42  ;;  %v2392_v13 = vadd.f32 %v5360_v54, %v2029_v33  ;;  %v2404_v21 = vadd.f32 %v5376_v31, %v2037_v39  ;;  %v2384_v31 = vadd.f32 %v5348_v62, %v2024_v32  ;;  %v2546_v36 = vmul.f32 %v5467_v2, %v6015_v6 }
 0x3d9   : > { %3150 = vmatprep.subr.mxu0 %v3101_v52  ;;  %v2622_v55 = vadd.f32 %v2554_v41, %v2396_v38  ;;  %v2776_v62 = vadd.f32 %v5483_v56, %v2623_v48 }
 0x3da   : > { %3151 = vmatpush1.msra.mxu0 %v3100_v46 }
 0x3db   : > { %3152 = vmatprep.subr.mxu0 %v3097_v51  ;;  %v2775_v32 = vadd.f32 %v5483_v56, %v2622_v55 }
 0x3dc   : > { %v5513_v12 = vpop.f32.mrf.mxu1  ;;  %3153 = vmatpush1.msra.mxu0 %v3096_v47 }
 0x3dd   : > { %3154 = vmatprep.subr.mxu0 %v3093_v22 }
 0x3de   : > { %v5534_v26 = vpop.f32.mrf.mxu1  ;;  %3155 = vmatpush1.msra.mxu0 %v3092_v5 }
 0x3df   : > { %3971 = vmatmul.mubr.msk.f32.vlgmr.msra.gmra.mxu0 %vm2074_vm10, %v5518_v11  ;;  %3382 = vmatprep.subr.mxu0 %v3105_v8  ;;  %v2547_v8 = vmul.f32 %v5467_v2, %v6014_v20  ;;  %v2779_v2 = vadd.f32 %v5440_v4, %v2626_v45 }
 0x3e0   : > { %v3043_v1 = vpop.f32.mrf.mxu1  ;;  %3383 = vmatpush1.msra.mxu0 %v3104_v42  ;;  %3194 = vmatprep.mubr.f32.mxu0 %v6011_v17  ;;  %v2550_v42 = vmul.f32 %v5436_v58, %v6015_v6  ;;  %v2619_v58 = vadd.f32 %v2551_v28, %v2392_v13 }
 0x3e1   : > { %3384 = vmatprep.subr.mxu0 %v3101_v52  ;;  %v2615_v61 = vadd.f32 %v2547_v8, %v2386_v7 }
 0x3e2   : > { %v3045_v54 = vpop.f32.mrf.mxu1  ;;  %3385 = vmatpush1.msra.mxu0 %v3100_v46  ;;  %v2627_v46 = vadd.f32 %v2559_v34, %v2404_v21 }
 0x3e3   : > { %3972 = vmatmul.mubr.msk.f32.gmra.mxu0 %vm2074_vm10, %v5551_v10  ;;  %3386 = vmatprep.subr.mxu0 %v3097_v51  ;;  %v2618_v51 = vadd.f32 %v2550_v42, %v2390_v19  ;;  %v2768_v60 = vadd.f32 %v5495_v18, %v2615_v61 }
 0x3e4   : > { %v3049_v52 = vpop.f32.mrf.mxu1  ;;  %3387 = vmatpush1.msra.mxu0 %v3096_v47  ;;  %3200 = vmatprep.mubr.f32.mxu0 %v6011_v17  ;;  %v2614_v47 = vadd.f32 %v2546_v36, %v2384_v31  ;;  %v2780_v3 = vadd.f32 %v5440_v4, %v2627_v46  ;;  %v5611_v36 = vpop.permute.xlu0 %1973 }
 0x3e5   : > { %3388 = vmatprep.subr.mxu0 %v3093_v22  ;;  %v5585_v22 = vld [vmem:[%s5973_s8 + $0x18] sm:$0xff]  ;;  %v2771_v16 = vadd.f32 %v5492_v57, %v2618_v51  ;;  %v3050_v59 = vadd.f32 %v3049_v52, %v2775_v32  ;;  %v3040_v41 = vadd.f32 %v5534_v26, %v2768_v60  ;;  %v2046_v32 = vmul.f32 %v5611_v36, %v4392_v50 }
 0x3e6   : > { %v3051_v23 = vpop.f32.mrf.mxu1  ;;  %3389 = vmatpush1.msra.mxu0 %v3092_v5  ;;  %v2772_v5 = vadd.f32 %v5492_v57, %v2619_v58  ;;  %v2767_v38 = vadd.f32 %v5495_v18, %v2614_v47 }
 0x3e7   : > { %3973 = vmatmul.mubr.msk.f32.gmra.mxu0 %vm2074_vm10, %v5574_v53  ;;  %v3052_v33 = vadd.f32 %v3051_v23, %v2776_v62  ;;  %v3044_v13 = vadd.f32 %v3043_v1, %v2771_v16  ;;  %v3086_v34 = vmul.f32 0.01, %v3050_v59  ;;  %vm3070_vm2 = vcmp.gt.f32.partialorder %v3050_v59, 0.0 }
 0x3e8   : > { %v3055_v24 = vpop.f32.mrf.mxu1  ;;  %3206 = vmatprep.mubr.f32.mxu0 %v6011_v17  ;;  %v3046_v39 = vadd.f32 %v3045_v54, %v2772_v5  ;;  %v3038_v57 = vadd.f32 %v5513_v12, %v2767_v38  ;;  %v3079_v26 = vmul.f32 0.01, %v3040_v41  ;;  %vm3063_vm5 = vcmp.gt.f32.partialorder %v3040_v41, 0.0  ;;  %v5615_v55 = vpop.permute.xlu0 %1968  ;;  %v6045_v38 = vld [vmem:[#allocation11_spill] sm:$0xff] }
 0x3e9   : > { %v3056_v9 = vadd.f32 %v3055_v24, %v2779_v2  ;;  %v3087_v4 = vmul.f32 0.01, %v3052_v33  ;;  %vm3071_vm1 = vcmp.gt.f32.partialorder %v3052_v33, 0.0  ;;  %v3082_v19 = vmul.f32 0.01, %v3044_v13 }
 0x3ea   : > { %v3057_v56 = vpop.f32.mrf.mxu1  ;;  %v3083_v7 = vmul.f32 0.01, %v3046_v39  ;;  %vm3067_vm3 = vcmp.gt.f32.partialorder %v3046_v39, 0.0  ;;  %vm3066_vm4 = vcmp.gt.f32.partialorder %v3044_v13, 0.0  ;;  %v3078_v42 = vmul.f32 0.01, %v3038_v57 }
 0x3eb   : > { %v3058_v25 = vadd.f32 %v3057_v56, %v2780_v3  ;;  %3974 = vmatmul.mubr.msk.f32.gmra.mxu0 %vm2074_vm10, %v5585_v22  ;;  %v3090_v28 = vmul.f32 0.01, %v3056_v9  ;;  %vm3074_vm15 = vcmp.gt.f32.partialorder %v3056_v9, 0.0  ;;  %v3103_v1 = vsel %vm3071_vm1, %v3052_v33, %v3087_v4 }
 0x3ec   : > { %3430 = vmatprep.mubr.f32.mxu0 %v6011_v17  ;;  %v3102_v54 = vsel %vm3070_vm2, %v3050_v59, %v3086_v34  ;;  %vm3062_vm6 = vcmp.gt.f32.partialorder %v3038_v57, 0.0  ;;  %v3099_v12 = vsel %vm3067_vm3, %v3046_v39, %v3083_v7  ;;  %v3098_v48 = vsel %vm3066_vm4, %v3044_v13, %v3082_v19  ;;  %v5619_v58 = vpop.permute.xlu0 %1963  ;;  %v6044_v39 = vld [vmem:[#allocation8_spill] sm:$0xff] }
 0x3ed   : > { %v3091_v21 = vmul.f32 0.01, %v3058_v25  ;;  %vm3075_vm0 = vcmp.gt.f32.partialorder %v3058_v25, 0.0  ;;  %v3106_v18 = vsel %vm3074_vm15, %v3056_v9, %v3090_v28  ;;  %v3095_v45 = vsel %vm3063_vm5, %v3040_v41, %v3079_v26  ;;  %v6046_v28 = vld [vmem:[#allocation7_spill] sm:$0xff]  ;;  %v6048_v26 = vld [vmem:[#allocation9_spill] sm:$0xff] }
 0x3ee   : > { %v3094_v31 = vsel %vm3062_vm6, %v3038_v57, %v3078_v42  ;;  %v2047_v23 = vmul.f32 %v5611_v36, %v4385_v44  ;;  %v2038_v2 = vmul.f32 %v5619_v58, %v4392_v50  ;;  %v2043_v47 = vmul.f32 %v5615_v55, %v4385_v44 }
 0x3ef   : > { %v3107_v8 = vsel %vm3075_vm0, %v3058_v25, %v3091_v21  ;;  %v2039_v3 = vmul.f32 %v5619_v58, %v4385_v44  ;;  %v2042_v60 = vmul.f32 %v5615_v55, %v4392_v50  ;;  %v2253_v16 = vadd.f32 %v5370_v49, %v2046_v32  ;;  %v6047_v21 = vld [vmem:[#allocation6_spill] sm:$0xff] }
 0x3f0   : > { %3237 = vmatprep.subr.mxu1 %v3107_v8  ;;  %v5627_v51 = vpop.permute.xlu0 %2721  ;;  %v2249_v25 = vadd.f32 %v6044_v39, %v2043_v47 }
 0x3f1   : > { %3238 = vmatpush1.msra.mxu1 %v3106_v18  ;;  %v2243_v4 = vadd.f32 %v6046_v28, %v2039_v3  ;;  %v2247_v57 = vadd.f32 %v6047_v21, %v2042_v60 }
 0x3f2   : > { %3239 = vmatprep.subr.mxu1 %v3103_v1 }
 0x3f3   : > { %3240 = vmatpush1.msra.mxu1 %v3102_v54 }
 0x3f4   : > { %3241 = vmatprep.subr.mxu1 %v3099_v12 }
 0x3f5   : > { %3242 = vmatpush1.msra.mxu1 %v3098_v48 }
 0x3f6   : > { %3243 = vmatprep.subr.mxu1 %v3095_v45 }
 0x3f7   : > { %3244 = vmatpush1.msra.mxu1 %v3094_v31 }
 0x3f8   : > { %3975 = vmatmul.mubr.msk.f32.vlgmr.msra.gmra.mxu1 %vm2074_vm10, %v5518_v11  ;;  %3471 = vmatprep.subr.mxu1 %v3107_v8  ;;  %v5609_v11 = vpop.permute.xlu1 %1978  ;;  %v5666_v8 = vpop.permute.xlu0 %2716 }
 0x3f9   : > { %3472 = vmatpush1.msra.mxu1 %v3106_v18  ;;  %3283 = vmatprep.mubr.f32.mxu1 %v6011_v17  ;;  %v2050_v46 = vmul.f32 %v5609_v11, %v4392_v50  ;;  %v2051_v62 = vmul.f32 %v5609_v11, %v4385_v44 }
 0x3fa   : > { %3473 = vmatprep.subr.mxu1 %v3103_v1  ;;  %v2241_v1 = vadd.f32 %v6048_v26, %v2038_v2 }
 0x3fb   : > { %3474 = vmatpush1.msra.mxu1 %v3102_v54  ;;  %v2259_v33 = vadd.f32 %v5378_v63, %v2050_v46  ;;  %v2261_v41 = vadd.f32 %v6045_v38, %v2051_v62 }
 0x3fc   : > { %3976 = vmatmul.mubr.msk.f32.gmra.mxu1 %vm2074_vm10, %v5551_v10  ;;  %3475 = vmatprep.subr.mxu1 %v3099_v12  ;;  %v5613_v10 = vpop.permute.xlu1 %2505 }
 0x3fd   : > { %3476 = vmatpush1.msra.mxu1 %v3098_v48  ;;  %3289 = vmatprep.mubr.f32.mxu1 %v6011_v17  ;;  %v2572_v9 = vmul.f32 %v5613_v10, %v4383_v43  ;;  %v2573_v13 = vmul.f32 %v5613_v10, %v4379_v40 }
 0x3fe   : > { %3477 = vmatprep.subr.mxu1 %v3095_v45 }
 0x3ff   : > { %3478 = vmatpush1.msra.mxu1 %v3094_v31  ;;  %v2640_v18 = vadd.f32 %v2572_v9, %v2259_v33  ;;  %v2641_v45 = vadd.f32 %v2573_v13, %v2261_v41  ;;  %v5676_v33 = vpop.permute.xlu0 %2706 }
 0x400   : > { %3977 = vmatmul.mubr.msk.f32.gmra.mxu1 %vm2074_vm10, %v5574_v53  ;;  %v5617_v52 = vpop.permute.xlu1 %2501 }
 0x401   : > { %3295 = vmatprep.mubr.f32.mxu1 %v6011_v17  ;;  %v2569_v5 = vmul.f32 %v5617_v52, %v4379_v40  ;;  %v2568_v59 = vmul.f32 %v5617_v52, %v4383_v43  ;;  %v2793_v47 = vadd.f32 %v5627_v51, %v2640_v18 }
 0x403   : > { %v2636_v54 = vadd.f32 %v2568_v59, %v2253_v16  ;;  %v2794_v16 = vadd.f32 %v5627_v51, %v2641_v45 }
 0x404   : > { %3978 = vmatmul.mubr.msk.f32.gmra.mxu1 %vm2074_vm10, %v5585_v22  ;;  %v5621_v53 = vpop.permute.xlu1 %2497  ;;  %v2255_v22 = vadd.f32 %v5374_v37, %v2047_v23 }
 0x405   : > { %3519 = vmatprep.mubr.f32.mxu1 %v6011_v17  ;;  %v2565_v63 = vmul.f32 %v5621_v53, %v4379_v40  ;;  %v2564_v34 = vmul.f32 %v5621_v53, %v4383_v43 }
 0x406   : > { %v2637_v19 = vadd.f32 %v2569_v5, %v2255_v22  ;;  %v2789_v5 = vadd.f32 %v5666_v8, %v2636_v54 }
 0x407   : > { %v2633_v48 = vadd.f32 %v2565_v63, %v2249_v25  ;;  %v2632_v46 = vadd.f32 %v2564_v34, %v2247_v57 }
 0x408   : > { %v5652_v56 = vpop.permute.xlu1 %2493  ;;  %v2790_v62 = vadd.f32 %v5666_v8, %v2637_v19 }
 0x409   : > { %v2561_v49 = vmul.f32 %v5652_v56, %v4379_v40  ;;  %v2560_v42 = vmul.f32 %v5652_v56, %v4383_v43 }
 0x40b   : > { %v2629_v31 = vadd.f32 %v2561_v49, %v2243_v4  ;;  %v2628_v22 = vadd.f32 %v2560_v42, %v2241_v1 }
 0x40c   : > { %v5673_v32 = vpop.permute.xlu1 %2711 }
 0x40d   : > { %v2786_v9 = vadd.f32 %v5673_v32, %v2633_v48  ;;  %v2782_v59 = vadd.f32 %v5676_v33, %v2629_v31  ;;  %v2785_v39 = vadd.f32 %v5673_v32, %v2632_v46  ;;  %v2781_v13 = vadd.f32 %v5676_v33, %v2628_v22  ;;  %v5691_v46 = vld [vmem:[%s5974_s9] sm:$0xff] }
 0x49f   : > { %v5625_v61 = vpop.f32.mrf.mxu0 }
 0x4a0   : > { %v3191_v34 = vadd.f32 %v5625_v61, %v2781_v13  ;;  %v5724_v13 = vld [vmem:[%s5974_s9 + $0x8] sm:$0xff] }
 0x4a1   : > { %v3192_v24 = vpop.f32.mrf.mxu0 }
 0x4a2   : > { %v3193_v28 = vadd.f32 %v3192_v24, %v2782_v59  ;;  %vm3302_vm15 = vcmp.gt.f32.partialorder %v3191_v34, 0.0 }
 0x4a3   : > { %v3196_v37 = vpop.f32.mrf.mxu0 }
 0x4a4   : > { %v3197_v4 = vadd.f32 %v3196_v37, %v2785_v39  ;;  %v3319_v42 = vmul.f32 0.01, %v3193_v28  ;;  %v3318_v37 = vmul.f32 0.01, %v3191_v34  ;;  %vm3303_vm13 = vcmp.gt.f32.partialorder %v3193_v28, 0.0 }
 0x4a5   : > { %v3198_v7 = vpop.f32.mrf.mxu0 }
 0x4a6   : > { %v3199_v38 = vadd.f32 %v3198_v7, %v2786_v9  ;;  %v3322_v1 = vmul.f32 0.01, %v3197_v4  ;;  %vm3306_vm14 = vcmp.gt.f32.partialorder %v3197_v4, 0.0  ;;  %v3335_v31 = vsel %vm3303_vm13, %v3193_v28, %v3319_v42  ;;  %v6052_v28 = vld [vmem:[#allocation16_spill] sm:$0xff] }
 0x4a7   : > { %v3202_v12 = vpop.f32.mrf.mxu0  ;;  %v3334_v22 = vsel %vm3302_vm15, %v3191_v34, %v3318_v37  ;;  %v2048_v9 = vmul.f32 %v5611_v36, %v6012_v35 }
 0x4a8   : > { %v3203_v25 = vadd.f32 %v3202_v12, %v2789_v5  ;;  %v3323_v18 = vmul.f32 0.01, %v3199_v38  ;;  %vm3307_vm12 = vcmp.gt.f32.partialorder %v3199_v38, 0.0  ;;  %v2052_v12 = vmul.f32 %v5609_v11, %v6012_v35 }
 0x4a9   : > { %v3204_v23 = vpop.f32.mrf.mxu0  ;;  %v3338_v48 = vsel %vm3306_vm14, %v3197_v4, %v3322_v1  ;;  %v2041_v5 = vmul.f32 %v5619_v58, %v6013_v30  ;;  %v2566_v1 = vmul.f32 %v5621_v53, %v6015_v6 }
 0x4aa   : > { %v3205_v3 = vadd.f32 %v3204_v23, %v2790_v62  ;;  %v3326_v19 = vmul.f32 0.01, %v3203_v25  ;;  %vm3310_vm11 = vcmp.gt.f32.partialorder %v3203_v25, 0.0  ;;  %v3339_v61 = vsel %vm3307_vm12, %v3199_v38, %v3323_v18  ;;  %v6055_v18 = vld [vmem:[#allocation14_spill] sm:$0xff] }
 0x4ab   : > { %v3208_v2 = vpop.f32.mrf.mxu0  ;;  %v2040_v23 = vmul.f32 %v5619_v58, %v6012_v35  ;;  %v2049_v62 = vmul.f32 %v5611_v36, %v6013_v30  ;;  %v2044_v36 = vmul.f32 %v5615_v55, %v6012_v35  ;;  %v6051_v58 = vld [vmem:[#allocation18_spill] sm:$0xff]  ;;  %v2570_v38 = vmul.f32 %v5617_v52, %v6015_v6 }
 0x4ac   : > { %v3209_v60 = vadd.f32 %v3208_v2, %v2793_v47  ;;  %v3327_v21 = vmul.f32 0.01, %v3205_v3  ;;  %vm3311_vm9 = vcmp.gt.f32.partialorder %v3205_v3, 0.0  ;;  %v3342_v54 = vsel %vm3310_vm11, %v3203_v25, %v3326_v19 }
 0x4ad   : > { %v3210_v63 = vpop.f32.mrf.mxu0  ;;  %v2053_v47 = vmul.f32 %v5609_v11, %v6013_v30  ;;  %v2045_v2 = vmul.f32 %v5615_v55, %v6013_v30  ;;  %v6050_v11 = vld [vmem:[#allocation22_spill] sm:$0xff]  ;;  %v2574_v25 = vmul.f32 %v5613_v10, %v6015_v6  ;;  %v6053_v55 = vld [vmem:[#allocation24_spill] sm:$0xff]  ;;  %v2563_v19 = vmul.f32 %v5652_v56, %v6014_v20 }
 0x4ae   : > { %v3211_v41 = vadd.f32 %v3210_v63, %v2794_v16  ;;  %v3330_v49 = vmul.f32 0.01, %v3209_v60  ;;  %vm3314_vm7 = vcmp.gt.f32.partialorder %v3209_v60, 0.0  ;;  %v3343_v24 = vsel %vm3311_vm9, %v3205_v3, %v3327_v21  ;;  %v6049_v16 = vld [vmem:[#allocation20_spill] sm:$0xff] }
 0x4af   : > { %v2571_v3 = vmul.f32 %v5617_v52, %v6014_v20  ;;  %v2422_v59 = vadd.f32 %v6049_v16, %v2049_v62  ;;  %v2426_v39 = vadd.f32 %v6050_v11, %v2052_v12  ;;  %v2420_v63 = vadd.f32 %v6051_v58, %v2048_v9  ;;  %v6054_v52 = vld [vmem:[#allocation12_spill] sm:$0xff] }
 0x4b0   : > { %v3331_v57 = vmul.f32 0.01, %v3211_v41  ;;  %vm3315_vm8 = vcmp.gt.f32.partialorder %v3211_v41, 0.0  ;;  %v3346_v7 = vsel %vm3314_vm7, %v3209_v60, %v3330_v49  ;;  %v2416_v4 = vadd.f32 %v6052_v28, %v2045_v2 }
 0x4b1   : > { %v2567_v49 = vmul.f32 %v5621_v53, %v6014_v20  ;;  %v2428_v21 = vadd.f32 %v6053_v55, %v2053_v47  ;;  %v2410_v34 = vadd.f32 %v6054_v52, %v2041_v5  ;;  %v2639_v42 = vadd.f32 %v2571_v3, %v2422_v59  ;;  %v5747_v53 = vld [vmem:[%s5974_s9 + $0x10] sm:$0xff] }
 0x4b2   : > { %v3347_v26 = vsel %vm3315_vm8, %v3211_v41, %v3331_v57  ;;  %v2575_v57 = vmul.f32 %v5613_v10, %v6014_v20  ;;  %v2642_v37 = vadd.f32 %v2574_v25, %v2426_v39  ;;  %v6056_v10 = vld [vmem:[#allocation10_spill] sm:$0xff]  ;;  %v2562_v12 = vmul.f32 %v5652_v56, %v6015_v6 }
 0x4b3   : > { %3390 = vmatprep.subr.mxu0 %v3347_v26  ;;  %v2638_v62 = vadd.f32 %v2570_v38, %v2420_v63  ;;  %v2631_v2 = vadd.f32 %v2563_v19, %v2410_v34 }
 0x4b4   : > { %3391 = vmatpush1.msra.mxu0 %v3346_v7  ;;  %v2643_v5 = vadd.f32 %v2575_v57, %v2428_v21  ;;  %v2795_v56 = vadd.f32 %v5627_v51, %v2642_v37  ;;  %v5784_v37 = vpop.permute.xlu0 %1993 }
 0x4b5   : > { %3392 = vmatprep.subr.mxu0 %v3343_v24  ;;  %v2791_v3 = vadd.f32 %v5666_v8, %v2638_v62  ;;  %v2784_v25 = vadd.f32 %v5676_v33, %v2631_v2 }
 0x4b6   : > { %3393 = vmatpush1.msra.mxu0 %v3342_v54  ;;  %v2796_v39 = vadd.f32 %v5627_v51, %v2643_v5 }
 0x4b7   : > { %3394 = vmatprep.subr.mxu0 %v3339_v61 }
 0x4b8   : > { %v5686_v45 = vpop.f32.mrf.mxu1  ;;  %3395 = vmatpush1.msra.mxu0 %v3338_v48 }
 0x4b9   : > { %3396 = vmatprep.subr.mxu0 %v3335_v31 }
 0x4ba   : > { %v5707_v60 = vpop.f32.mrf.mxu1  ;;  %3397 = vmatpush1.msra.mxu0 %v3334_v22 }
 0x4bb   : > { %3979 = vmatmul.mubr.msk.f32.vlgmr.msra.gmra.mxu0 %vm2074_vm10, %v5691_v46  ;;  %3612 = vmatprep.subr.mxu0 %v3347_v26  ;;  %v2414_v26 = vadd.f32 %v6055_v18, %v2044_v36 }
 0x4bc   : > { %v3285_v41 = vpop.f32.mrf.mxu1  ;;  %3613 = vmatpush1.msra.mxu0 %v3346_v7  ;;  %3436 = vmatprep.mubr.f32.mxu0 %v6011_v17 }
 0x4bd   : > { %3614 = vmatprep.subr.mxu0 %v3343_v24  ;;  %v2408_v24 = vadd.f32 %v6056_v10, %v2040_v23  ;;  %v2792_v23 = vadd.f32 %v5666_v8, %v2639_v42  ;;  %v5788_v10 = vpop.permute.xlu0 %1988 }
 0x4be   : > { %v3287_v7 = vpop.f32.mrf.mxu1  ;;  %3615 = vmatpush1.msra.mxu0 %v3342_v54  ;;  %v2635_v54 = vadd.f32 %v2567_v49, %v2416_v4  ;;  %v3282_v4 = vadd.f32 %v5707_v60, %v2784_v25 }
 0x4bf   : > { %3980 = vmatmul.mubr.msk.f32.gmra.mxu0 %vm2074_vm10, %v5724_v13  ;;  %3616 = vmatprep.subr.mxu0 %v3339_v61  ;;  %v2634_v61 = vadd.f32 %v2566_v1, %v2414_v26 }
 0x4c0   : > { %v3291_v47 = vpop.f32.mrf.mxu1  ;;  %3617 = vmatpush1.msra.mxu0 %v3338_v48  ;;  %3442 = vmatprep.mubr.f32.mxu0 %v6011_v17  ;;  %v2630_v48 = vadd.f32 %v2562_v12, %v2408_v24  ;;  %v3321_v60 = vmul.f32 0.01, %v3282_v4  ;;  %vm3305_vm6 = vcmp.gt.f32.partialorder %v3282_v4, 0.0 }
 0x4c1   : > { %3618 = vmatprep.subr.mxu0 %v3335_v31  ;;  %v5758_v31 = vld [vmem:[%s5974_s9 + $0x18] sm:$0xff]  ;;  %v2787_v36 = vadd.f32 %v5673_v32, %v2634_v61  ;;  %v3292_v58 = vadd.f32 %v3291_v47, %v2791_v3  ;;  %v5792_v12 = vpop.permute.xlu0 %1983  ;;  %v2059_v61 = vmul.f32 %v5788_v10, %v4385_v44 }
 0x4c2   : > { %v3293_v9 = vpop.f32.mrf.mxu1  ;;  %3619 = vmatpush1.msra.mxu0 %v3334_v22  ;;  %v2788_v22 = vadd.f32 %v5673_v32, %v2635_v54  ;;  %v2783_v28 = vadd.f32 %v5676_v33, %v2630_v48  ;;  %v2063_v54 = vmul.f32 %v5784_v37, %v4385_v44  ;;  %v2054_v2 = vmul.f32 %v5792_v12, %v4392_v50 }
 0x4c3   : > { %3981 = vmatmul.mubr.msk.f32.gmra.mxu0 %vm2074_vm10, %v5747_v53  ;;  %v3294_v59 = vadd.f32 %v3293_v9, %v2792_v23  ;;  %v3286_v49 = vadd.f32 %v3285_v41, %v2787_v36  ;;  %v3328_v57 = vmul.f32 0.01, %v3292_v58  ;;  %vm3312_vm3 = vcmp.gt.f32.partialorder %v3292_v58, 0.0 }
 0x4c4   : > { %v3297_v16 = vpop.f32.mrf.mxu1  ;;  %3448 = vmatprep.mubr.f32.mxu0 %v6011_v17  ;;  %v3288_v63 = vadd.f32 %v3287_v7, %v2788_v22  ;;  %v3280_v32 = vadd.f32 %v5686_v45, %v2783_v28  ;;  %v3337_v7 = vsel %vm3305_vm6, %v3282_v4, %v3321_v60  ;;  %v2062_v9 = vmul.f32 %v5784_v37, %v4392_v50  ;;  %v6061_v4 = vld [vmem:[#allocation27_spill] sm:$0xff] }
 0x4c5   : > { %v3298_v11 = vadd.f32 %v3297_v16, %v2795_v56  ;;  %v3329_v51 = vmul.f32 0.01, %v3294_v59  ;;  %vm3313_vm2 = vcmp.gt.f32.partialorder %v3294_v59, 0.0  ;;  %v3324_v19 = vmul.f32 0.01, %v3286_v49  ;;  %v6057_v56 = vld [vmem:[#allocation23_spill] sm:$0xff] }
 0x4c6   : > { %v3299_v8 = vpop.f32.mrf.mxu1  ;;  %v3325_v52 = vmul.f32 0.01, %v3288_v63  ;;  %vm3309_vm4 = vcmp.gt.f32.partialorder %v3288_v63, 0.0  ;;  %vm3308_vm5 = vcmp.gt.f32.partialorder %v3286_v49, 0.0  ;;  %v3320_v18 = vmul.f32 0.01, %v3280_v32 }
 0x4c7   : > { %v3300_v38 = vadd.f32 %v3299_v8, %v2796_v39  ;;  %3982 = vmatmul.mubr.msk.f32.gmra.mxu0 %vm2074_vm10, %v5758_v31  ;;  %v3332_v55 = vmul.f32 0.01, %v3298_v11  ;;  %vm3316_vm0 = vcmp.gt.f32.partialorder %v3298_v11, 0.0  ;;  %v3345_v41 = vsel %vm3313_vm2, %v3294_v59, %v3329_v51  ;;  %v6058_v16 = vld [vmem:[#allocation25_spill] sm:$0xff]  ;;  %v6062_v51 = vld [vmem:[#allocation15_spill] sm:$0xff] }
 0x4c8   : > { %3660 = vmatprep.mubr.f32.mxu0 %v6011_v17  ;;  %v3344_v26 = vsel %vm3312_vm3, %v3292_v58, %v3328_v57  ;;  %vm3304_vm7 = vcmp.gt.f32.partialorder %v3280_v32, 0.0  ;;  %v3341_v45 = vsel %vm3309_vm4, %v3288_v63, %v3325_v52  ;;  %v3340_v1 = vsel %vm3308_vm5, %v3286_v49, %v3324_v19  ;;  %v6059_v39 = vld [vmem:[#allocation21_spill] sm:$0xff]  ;;  %v6060_v63 = vld [vmem:[#allocation19_spill] sm:$0xff] }
 0x4c9   : > { %v3333_v21 = vmul.f32 0.01, %v3300_v38  ;;  %vm3317_vm1 = vcmp.gt.f32.partialorder %v3300_v38, 0.0  ;;  %v3348_v33 = vsel %vm3316_vm0, %v3298_v11, %v3332_v55  ;;  %v3336_v42 = vsel %vm3304_vm7, %v3280_v32, %v3320_v18  ;;  %v6063_v57 = vld [vmem:[#allocation17_spill] sm:$0xff] }
 0x4ca   : > { %v2279_v48 = vadd.f32 %v6057_v56, %v2063_v54  ;;  %v2055_v59 = vmul.f32 %v5792_v12, %v4385_v44  ;;  %v2058_v11 = vmul.f32 %v5788_v10, %v4392_v50  ;;  %v2277_v25 = vadd.f32 %v6059_v39, %v2062_v9  ;;  %v6064_v18 = vld [vmem:[#allocation13_spill] sm:$0xff] }
 0x4cb   : > { %v3349_v34 = vsel %vm3317_vm1, %v3300_v38, %v3333_v21  ;;  %v2273_v38 = vadd.f32 %v6060_v63, %v2059_v61 }
 0x4cc   : > { %3479 = vmatprep.subr.mxu1 %v3349_v34  ;;  %v2267_v21 = vadd.f32 %v6062_v51, %v2055_v59  ;;  %v2271_v52 = vadd.f32 %v6063_v57, %v2058_v11 }
 0x4cd   : > { %3480 = vmatpush1.msra.mxu1 %v3348_v33 }
 0x4ce   : > { %3481 = vmatprep.subr.mxu1 %v3345_v41 }
 0x4cf   : > { %3482 = vmatpush1.msra.mxu1 %v3344_v26 }
 0x4d0   : > { %3483 = vmatprep.subr.mxu1 %v3341_v45 }
 0x4d1   : > { %3484 = vmatpush1.msra.mxu1 %v3340_v1 }
 0x4d2   : > { %3485 = vmatprep.subr.mxu1 %v3337_v7 }
 0x4d3   : > { %3486 = vmatpush1.msra.mxu1 %v3336_v42 }
 0x4d4   : > { %3983 = vmatmul.mubr.msk.f32.vlgmr.msra.gmra.mxu1 %vm2074_vm10, %v5691_v46  ;;  %3683 = vmatprep.subr.mxu1 %v3349_v34  ;;  %v5782_v46 = vpop.permute.xlu1 %1998 }
 0x4d5   : > { %3684 = vmatpush1.msra.mxu1 %v3348_v33  ;;  %3525 = vmatprep.mubr.f32.mxu1 %v6011_v17  ;;  %v2066_v47 = vmul.f32 %v5782_v46, %v4392_v50  ;;  %v2067_v5 = vmul.f32 %v5782_v46, %v4385_v44 }
 0x4d6   : > { %3685 = vmatprep.subr.mxu1 %v3345_v41 }
 0x4d7   : > { %3686 = vmatpush1.msra.mxu1 %v3344_v26  ;;  %v2285_v49 = vadd.f32 %v6061_v4, %v2067_v5  ;;  %v2265_v26 = vadd.f32 %v6064_v18, %v2054_v2 }
 0x4d8   : > { %3984 = vmatmul.mubr.msk.f32.gmra.mxu1 %vm2074_vm10, %v5724_v13  ;;  %3687 = vmatprep.subr.mxu1 %v3341_v45  ;;  %v5786_v13 = vpop.permute.xlu1 %2521 }
 0x4d9   : > { %3688 = vmatpush1.msra.mxu1 %v3340_v1  ;;  %3531 = vmatprep.mubr.f32.mxu1 %v6011_v17  ;;  %v2588_v22 = vmul.f32 %v5786_v13, %v4383_v43  ;;  %v2589_v55 = vmul.f32 %v5786_v13, %v4379_v40 }
 0x4da   : > { %3689 = vmatprep.subr.mxu1 %v3337_v7 }
 0x4db   : > { %3690 = vmatpush1.msra.mxu1 %v3336_v42 }
 0x4dc   : > { %3985 = vmatmul.mubr.msk.f32.gmra.mxu1 %vm2074_vm10, %v5747_v53  ;;  %v5790_v24 = vpop.permute.xlu1 %2517 }
 0x4dd   : > { %3537 = vmatprep.mubr.f32.mxu1 %v6011_v17  ;;  %v2585_v3 = vmul.f32 %v5790_v24, %v4379_v40  ;;  %v2584_v36 = vmul.f32 %v5790_v24, %v4383_v43 }
 0x4df   : > { %v2653_v60 = vadd.f32 %v2585_v3, %v2279_v48  ;;  %v2652_v1 = vadd.f32 %v2584_v36, %v2277_v25 }
 0x4e0   : > { %3986 = vmatmul.mubr.msk.f32.gmra.mxu1 %vm2074_vm10, %v5758_v31  ;;  %v5794_v62 = vpop.permute.xlu1 %2513  ;;  %v2283_v31 = vadd.f32 %v6058_v16, %v2066_v47  ;;  %v2657_v47 = vadd.f32 %v2589_v55, %v2285_v49 }
 0x4e1   : > { %3731 = vmatprep.mubr.f32.mxu1 %v6011_v17  ;;  %v5800_v17 = vpop.permute.xlu0 %2741  ;;  %v2581_v28 = vmul.f32 %v5794_v62, %v4379_v40  ;;  %v2580_v34 = vmul.f32 %v5794_v62, %v4383_v43 }
 0x4e2   : > { %v2656_v41 = vadd.f32 %v2588_v22, %v2283_v31  ;;  %v2810_v39 = vadd.f32 %v5800_v17, %v2657_v47 }
 0x4e3   : > { %v2649_v42 = vadd.f32 %v2581_v28, %v2273_v38  ;;  %v2648_v5 = vadd.f32 %v2580_v34, %v2271_v52 }
 0x4e4   : > { %v5825_v8 = vpop.permute.xlu1 %2509  ;;  %v2809_v16 = vadd.f32 %v5800_v17, %v2656_v41 }
 0x4e5   : > { %v2577_v32 = vmul.f32 %v5825_v8, %v4379_v40  ;;  %v5839_v33 = vpop.permute.xlu0 %2736  ;;  %v2576_v45 = vmul.f32 %v5825_v8, %v4383_v43 }
 0x4e6   : > { %v2806_v56 = vadd.f32 %v5839_v33, %v2653_v60  ;;  %v2805_v3 = vadd.f32 %v5839_v33, %v2652_v1  ;;  %v2068_v1 = vmul.f32 %v5782_v46, %v6012_v35 }
 0x4e7   : > { %v2645_v54 = vadd.f32 %v2577_v32, %v2267_v21  ;;  %v2644_v48 = vadd.f32 %v2576_v45, %v2265_v26 }
 0x4e8   : > { %v5844_v9 = vpop.permute.xlu1 %2731 }
 0x4e9   : > { %v5849_v31 = vpop.permute.xlu0 %2726  ;;  %v2802_v22 = vadd.f32 %v5844_v9, %v2649_v42  ;;  %v2801_v36 = vadd.f32 %v5844_v9, %v2648_v5  ;;  %v2065_v5 = vmul.f32 %v5784_v37, %v6013_v30 }
 0x4ea   : > { %v2798_v25 = vadd.f32 %v5849_v31, %v2645_v54  ;;  %v2797_v49 = vadd.f32 %v5849_v31, %v2644_v48  ;;  %v5864_v54 = vld [vmem:[%s5975_s10] sm:$0x1]  ;;  %v2061_v48 = vmul.f32 %v5788_v10, %v6013_v30 }
 0x57b   : > { %v5798_v53 = vpop.f32.mrf.mxu0 }
 0x57c   : > { %v3433_v52 = vadd.f32 %v5798_v53, %v2797_v49  ;;  %v2591_v49 = vmul.f32 %v5786_v13, %v6014_v20 }
 0x57d   : > { %v3434_v23 = vpop.f32.mrf.mxu0 }
 0x57e   : > { %v3435_v55 = vadd.f32 %v3434_v23, %v2798_v25  ;;  %vm3544_vm0 = vcmp.gt.f32.partialorder %v3433_v52, 0.0  ;;  %v6065_v25 = vld [vmem:[#allocation33_spill] sm:$0xff] }
 0x57f   : > { %v3438_v58 = vpop.f32.mrf.mxu0 }
 0x580   : > { %v3439_v51 = vadd.f32 %v3438_v58, %v2801_v36  ;;  %v3561_v26 = vmul.f32 0.01, %v3435_v55  ;;  %v3560_v58 = vmul.f32 0.01, %v3433_v52  ;;  %vm3545_vm15 = vcmp.gt.f32.partialorder %v3435_v55, 0.0 }
 0x581   : > { %v3440_v19 = vpop.f32.mrf.mxu0 }
 0x582   : > { %v3441_v28 = vadd.f32 %v3440_v19, %v2802_v22  ;;  %v3564_v18 = vmul.f32 0.01, %v3439_v51  ;;  %vm3548_vm13 = vcmp.gt.f32.partialorder %v3439_v51, 0.0  ;;  %v3577_v47 = vsel %vm3545_vm15, %v3435_v55, %v3561_v26 }
 0x583   : > { %v3444_v7 = vpop.f32.mrf.mxu0  ;;  %v2446_v22 = vadd.f32 %v5488_v27, %v2065_v5  ;;  %v2586_v27 = vmul.f32 %v5790_v24, %v6015_v6 }
 0x584   : > { %v3445_v63 = vadd.f32 %v3444_v7, %v2805_v3  ;;  %v3565_v60 = vmul.f32 0.01, %v3441_v28  ;;  %vm3549_vm14 = vcmp.gt.f32.partialorder %v3441_v28, 0.0  ;;  %v3580_v7 = vsel %vm3548_vm13, %v3439_v51, %v3564_v18  ;;  %v6068_v51 = vld [vmem:[#allocation30_spill] sm:$0xff] }
 0x585   : > { %v3446_v61 = vpop.f32.mrf.mxu0  ;;  %v2064_v3 = vmul.f32 %v5784_v37, %v6012_v35  ;;  %v2060_v37 = vmul.f32 %v5788_v10, %v6012_v35  ;;  %v2579_v10 = vmul.f32 %v5825_v8, %v6014_v20 }
 0x586   : > { %v3447_v59 = vadd.f32 %v3446_v61, %v2806_v56  ;;  %v3568_v34 = vmul.f32 0.01, %v3445_v63  ;;  %vm3552_vm12 = vcmp.gt.f32.partialorder %v3445_v63, 0.0  ;;  %v3581_v53 = vsel %vm3549_vm14, %v3441_v28, %v3565_v60 }
 0x587   : > { %v3450_v2 = vpop.f32.mrf.mxu0  ;;  %v2069_v61 = vmul.f32 %v5782_v46, %v6013_v30  ;;  %v3576_v56 = vsel %vm3544_vm0, %v3433_v52, %v3560_v58  ;;  %v2450_v46 = vadd.f32 %v5497_v0, %v2068_v1  ;;  %v2444_v36 = vadd.f32 %v6065_v25, %v2064_v3 }
 0x588   : > { %v3451_v11 = vadd.f32 %v3450_v2, %v2809_v16  ;;  %v3569_v32 = vmul.f32 0.01, %v3447_v59  ;;  %vm3553_vm11 = vcmp.gt.f32.partialorder %v3447_v59, 0.0  ;;  %v3584_v45 = vsel %vm3552_vm12, %v3445_v63, %v3568_v34  ;;  %v6069_v34 = vld [vmem:[#allocation26_spill] sm:$0xff] }
 0x589   : > { %v3452_v38 = vpop.f32.mrf.mxu0  ;;  %v2056_v16 = vmul.f32 %v5792_v12, %v6012_v35  ;;  %v2583_v28 = vmul.f32 %v5794_v62, %v6014_v20 }
 0x58a   : > { %v3453_v4 = vadd.f32 %v3452_v38, %v2810_v39  ;;  %v3572_v21 = vmul.f32 0.01, %v3451_v11  ;;  %vm3556_vm8 = vcmp.gt.f32.partialorder %v3451_v11, 0.0  ;;  %v3585_v23 = vsel %vm3553_vm11, %v3447_v59, %v3569_v32  ;;  %v6066_v38 = vld [vmem:[#allocation32_spill] sm:$0xff] }
 0x58b   : > { %v2587_v59 = vmul.f32 %v5790_v24, %v6014_v20  ;;  %v2057_v39 = vmul.f32 %v5792_v12, %v6013_v30  ;;  %v2440_v0 = vadd.f32 %v6066_v38, %v2061_v48  ;;  %v6067_v12 = vld [vmem:[#allocation28_spill] sm:$0xff]  ;;  %v2582_v24 = vmul.f32 %v5794_v62, %v6015_v6 }
 0x58c   : > { %v3573_v57 = vmul.f32 0.01, %v3453_v4  ;;  %vm3557_vm9 = vcmp.gt.f32.partialorder %v3453_v4, 0.0  ;;  %v3588_v19 = vsel %vm3556_vm8, %v3451_v11, %v3572_v21  ;;  %v2590_v11 = vmul.f32 %v5786_v13, %v6015_v6 }
 0x58d   : > { %v2434_v55 = vadd.f32 %v6067_v12, %v2057_v39  ;;  %v2438_v21 = vadd.f32 %v6068_v51, %v2060_v37  ;;  %v2432_v60 = vadd.f32 %v6069_v34, %v2056_v16  ;;  %v2651_v18 = vadd.f32 %v2583_v28, %v2440_v0  ;;  %v2526_v51 = vpop.permute.xlu0 %2525  ;;  %v6071_v34 = vld [vmem:[#allocation29_spill] sm:$0xff] }
 0x58e   : > { %v3589_v41 = vsel %vm3557_vm9, %v3453_v4, %v3573_v57  ;;  %v2452_v4 = vadd.f32 %v5504_v15, %v2069_v61  ;;  %v2655_v57 = vadd.f32 %v2587_v59, %v2446_v22  ;;  %v2658_v52 = vadd.f32 %v2590_v11, %v2450_v46 }
 0x58f   : > { %3620 = vmatprep.subr.mxu0 %v3589_v41  ;;  %v2578_v15 = vmul.f32 %v5825_v8, %v6015_v6  ;;  %v2654_v41 = vadd.f32 %v2586_v27, %v2444_v36  ;;  %v2647_v26 = vadd.f32 %v2579_v10, %v2434_v55  ;;  %v2004_v55 = vpop.permute.xlu1 %2003 }
 0x590   : > { %3621 = vmatpush1.msra.mxu0 %v3588_v19  ;;  %v2659_v19 = vadd.f32 %v2591_v49, %v2452_v4  ;;  %v2071_v10 = vmul.f32 %v2004_v55, %v4385_v44  ;;  %v2073_v44 = vmul.f32 %v2004_v55, %v6013_v30 }
 0x591   : > { %3622 = vmatprep.subr.mxu0 %v3585_v23  ;;  %v2650_v23 = vadd.f32 %v2582_v24, %v2438_v21  ;;  %v2646_v62 = vadd.f32 %v2578_v15, %v2432_v60  ;;  %v2807_v1 = vadd.f32 %v5839_v33, %v2654_v41  ;;  %v2070_v21 = vmul.f32 %v2004_v55, %v4392_v50 }
 0x592   : > { %3623 = vmatpush1.msra.mxu0 %v3584_v45  ;;  %v2808_v45 = vadd.f32 %v5839_v33, %v2655_v57  ;;  %v2812_v8 = vadd.f32 %v5800_v17, %v2659_v19  ;;  %v2593_v24 = vmul.f32 %v2526_v51, %v4379_v40  ;;  %v2594_v50 = vmul.f32 %v2526_v51, %v6015_v6 }
 0x593   : > { %3624 = vmatprep.subr.mxu0 %v3581_v53  ;;  %v2811_v53 = vadd.f32 %v5800_v17, %v2658_v52  ;;  %v2803_v16 = vadd.f32 %v5844_v9, %v2650_v23  ;;  %v2799_v46 = vadd.f32 %v5849_v31, %v2646_v62  ;;  %v2592_v52 = vmul.f32 %v2526_v51, %v4383_v43 }
 0x594   : > { %v5859_v42 = vpop.f32.mrf.mxu1  ;;  %3625 = vmatpush1.msra.mxu0 %v3580_v7  ;;  %v2289_v60 = vadd.f32 %v6071_v34, %v2070_v21  ;;  %v2595_v43 = vmul.f32 %v2526_v51, %v6014_v20  ;;  %v4179_v20 = vmov 1966171168  }
 0x595   : > { %3626 = vmatprep.subr.mxu0 %v3577_v47  ;;  %v2804_v47 = vadd.f32 %v5844_v9, %v2651_v18  ;;  %v3522_v36 = vadd.f32 %v5859_v42, %v2799_v46  ;;  %v2072_v18 = vmul.f32 %v2004_v55, %v6012_v35 }
 0x596   : > { %v3523_v2 = vpop.f32.mrf.mxu1  ;;  %3627 = vmatpush1.msra.mxu0 %v3576_v56  ;;  %v2800_v56 = vadd.f32 %v5849_v31, %v2647_v26 }
 0x597   : > { %3987 = vmatmul.mubr.msk.f32.vlgmr.msra.gmra.mxu0 %vm2074_vm10, %v5864_v54  ;;  %vm3546_vm8 = vcmp.gt.f32.partialorder %v3522_v36, 0.0  ;;  %v2456_v40 = vadd.f32 %v5507_v14, %v2072_v18 }
 0x598   : > { %v3527_v63 = vpop.f32.mrf.mxu1  ;;  %v3524_v11 = vadd.f32 %v3523_v2, %v2800_v56  ;;  %v3562_v2 = vmul.f32 0.01, %v3522_v36  ;;  %v3757_v56 = vunpack.c.l.s4 %v4179_v20 }
 0x599   : > { %v3528_v39 = vadd.f32 %v3527_v63, %v2803_v16  ;;  %v2662_v62 = vadd.f32 %v2594_v50, %v2456_v40 }
 0x59a   : > { %v3529_v32 = vpop.f32.mrf.mxu1  ;;  %v3563_v28 = vmul.f32 0.01, %v3524_v11  ;;  %vm3547_vm7 = vcmp.gt.f32.partialorder %v3524_v11, 0.0  ;;  %v3578_v12 = vsel %vm3546_vm8, %v3522_v36, %v3562_v2 }
 0x59b   : > { %v3530_v22 = vadd.f32 %v3529_v32, %v2804_v47  ;;  %v3566_v38 = vmul.f32 0.01, %v3528_v39  ;;  %vm3550_vm6 = vcmp.gt.f32.partialorder %v3528_v39, 0.0  ;;  %v6070_v32 = vld [vmem:[#allocation31_spill] sm:$0xff] }
 0x59c   : > { %v3533_v13 = vpop.f32.mrf.mxu1  ;;  %v3579_v49 = vsel %vm3547_vm7, %v3524_v11, %v3563_v28  ;;  %v2291_v57 = vadd.f32 %v6070_v32, %v2071_v10 }
 0x59d   : > { %v3534_v48 = vadd.f32 %v3533_v13, %v2807_v1  ;;  %v3567_v27 = vmul.f32 0.01, %v3530_v22  ;;  %vm3551_vm5 = vcmp.gt.f32.partialorder %v3530_v22, 0.0  ;;  %v3582_v4 = vsel %vm3550_vm6, %v3528_v39, %v3566_v38  ;;  %v2747_v13 = vpop.permute.xlu1 %2746  ;;  %v6072_v39 = vld [vmem:[#allocation5_spill] sm:$0xff] }
 0x59e   : > { %v3535_v58 = vpop.f32.mrf.mxu1  ;;  %v2661_v41 = vadd.f32 %v2593_v24, %v2291_v57  ;;  %v2815_v1 = vadd.f32 %v2747_v13, %v2662_v62 }
 0x59f   : > { %v3536_v5 = vadd.f32 %v3535_v58, %v2808_v45  ;;  %v3570_v17 = vmul.f32 0.01, %v3534_v48  ;;  %vm3554_vm4 = vcmp.gt.f32.partialorder %v3534_v48, 0.0  ;;  %v3583_v42 = vsel %vm3551_vm5, %v3530_v22, %v3567_v27 }
 0x5a0   : > { %v3539_v7 = vpop.f32.mrf.mxu1  ;;  %v2814_v26 = vadd.f32 %v2747_v13, %v2661_v41 }
 0x5a1   : > { %v3540_v61 = vadd.f32 %v3539_v7, %v2811_v53  ;;  %v3571_v37 = vmul.f32 0.01, %v3536_v5  ;;  %vm3555_vm3 = vcmp.gt.f32.partialorder %v3536_v5, 0.0  ;;  %v3586_v63 = vsel %vm3554_vm4, %v3534_v48, %v3570_v17 }
 0x5a2   : > { %v3541_v3 = vpop.f32.mrf.mxu1  ;;  %v2458_v53 = vadd.f32 %v5509_v29, %v2073_v44  ;;  %v3758_v48 = vunpack.c.0.s8 %v3757_v56 }
 0x5a3   : > { %v3542_v59 = vadd.f32 %v3541_v3, %v2812_v8  ;;  %v3574_v33 = vmul.f32 0.01, %v3540_v61  ;;  %vm3558_vm1 = vcmp.gt.f32.partialorder %v3540_v61, 0.0  ;;  %v3587_v31 = vsel %vm3555_vm3, %v3536_v5, %v3571_v37 }
 0x5a4   : > { %v2663_v35 = vadd.f32 %v2595_v43, %v2458_v53 }
 0x5a5   : > { %v3575_v25 = vmul.f32 0.01, %v3542_v59  ;;  %vm3559_vm2 = vcmp.gt.f32.partialorder %v3542_v59, 0.0  ;;  %v3590_v0 = vsel %vm3558_vm1, %v3540_v61, %v3574_v33  ;;  %v3761_v33 = vsub.s32 %v3758_v48, %v6072_v39 }
 0x5a6   : > { %v2816_v30 = vadd.f32 %v2747_v13, %v2663_v35 }
 0x5a7   : > { %v3591_v9 = vsel %vm3559_vm2, %v3542_v59, %v3575_v25 }
 0x5a8   : > { %3691 = vmatprep.subr.mxu1 %v3591_v9 }
 0x5a9   : > { %3692 = vmatpush1.msra.mxu1 %v3590_v0  ;;  %v6073_v0 = vlaneseq }
 0x5aa   : > { %3693 = vmatprep.subr.mxu1 %v3587_v31 }
 0x5ab   : > { %3694 = vmatpush1.msra.mxu1 %v3586_v63 }
 0x5ac   : > { %3695 = vmatprep.subr.mxu1 %v3583_v42 }
 0x5ad   : > { %3696 = vmatpush1.msra.mxu1 %v3582_v4 }
 0x5ae   : > { %3697 = vmatprep.subr.mxu1 %v3579_v49 }
 0x5af   : > { %3698 = vmatpush1.msra.mxu1 %v3578_v12 }
 0x5b0   : > { %3988 = vmatmul.mubr.msk.f32.vlgmr.msra.gmra.mxu1 %vm2074_vm10, %v5864_v54  ;;  %v2660_v54 = vadd.f32 %v2592_v52, %v2289_v60  ;;  %vm3781_vm10 = vcmp.lt.s32.totalorder %v6073_v0, 512 }
 0x5b2   : > { %v2813_v23 = vadd.f32 %v2747_v13, %v2660_v54 }
 0x657   : > { %v3662_v15 = vpop.f32.mrf.mxu0 }
 0x658   : > { %v3663_v45 = vadd.f32 %v3662_v15, %v2813_v23 }
 0x659   : > { %v3664_v19 = vpop.f32.mrf.mxu0 }
 0x65a   : > { %v3665_v58 = vadd.f32 %v3664_v19, %v2814_v26 }
 0x65c   : > { %4088 = vtanh.f32 %v3665_v58 }
 0x65d   : > { %4090 = vtanh.f32 %v3663_v45 }
 0x669   : > { %v4089_v14 = vpop.eup %4088 }
 0x66a   : > { %v4091_v61 = vpop.eup %4090  ;;  %v3743_v8 = vadd.f32 1.0, %v4089_v14 }
 0x66b   : > { %v3742_v16 = vadd.f32 1.0, %v4091_v61 }
 0x66c   : > { %v3747_v29 = vmul.f32 0.5, %v3743_v8 }
 0x66d   : > { %v3746_v22 = vmul.f32 0.5, %v3742_v16 }
 0x66f   : > { %v3754_v11 = vcombine.low %v3746_v22, %v3747_v29 }
 0x670   : > { %v3733_v7 = vpop.f32.mrf.mxu1 }
 0x671   : > { %v3734_v47 = vadd.f32 %v3733_v7, %v2815_v1  ;;  %v3762_v17 = vrot.slane %v3754_v11, %v3761_v33 }
 0x672   : > { %v3735_v5 = vpop.f32.mrf.mxu1 }
 0x673   : > { %4092 = vtanh.f32 %v3734_v47  ;;  %v3736_v6 = vadd.f32 %v3735_v5, %v2816_v30 }
 0x675   : > { %4094 = vtanh.f32 %v3736_v6 }
 0x680   : > { %v4093_v3 = vpop.eup %4092 }
 0x681   : > { %v3744_v59 = vadd.f32 1.0, %v4093_v3 }
 0x682   : > { %v4095_v46 = vpop.eup %4094 }
 0x683   : > { %v3745_v37 = vadd.f32 1.0, %v4095_v46  ;;  %v3748_v25 = vmul.f32 0.5, %v3744_v59 }
 0x685   : > { %v3749_v36 = vmul.f32 0.5, %v3745_v37 }
 0x687   : > { %v3755_v27 = vcombine.low %v3748_v25, %v3749_v36 }
 0x689   : > { %v3769_v9 = vrot.slane %v3755_v27, %v3761_v33 }
 0x68b   : > { %v3770_v38 = vcombine.low %v3762_v17, %v3769_v9 }
 0x68d   : > { %v3777_v28 = vrot.slane %v3770_v38, %v3761_v33 }
 0x68f   : > { %3783 = vst.msk [vmem:[%s380_s14] sm:$0xf] %vm3781_vm10, %v3777_v28 }
 0x690   : > { %4121 = shalt.err (!%p4118_p3)
}
 0x691   : > { %s4122_s1 = scalar_lea.hbm %s3797_s24, 64  ;;  %s4126_s14 = scalar_lea.hbm %s5976_s11, 256 }
 0x692   : > { %p4123_p4 = scmp.ne.s32.totalorder %s3797_s24, %s4122_s1  ;;  %p4127_p9 = scmp.lt.s32.totalorder %s3797_s24, %s5976_s11 }
 0x693   : > { %p4128_p10 = scmp.lt.s32.totalorder %s4126_s14, %s4122_s1 }
 0x694   : > { %p4124_p7 = pnand %p4123_p4, %p4279_p5 }
 0x695   : > { %p4129_p11 = por %p4128_p10, %p4127_p9 }
 0x696   : > { %p4125_p8 = pneg %p4124_p7 }
 0x698   : > { %p4130_p12 = pnand %p4129_p11, %p4125_p8 }
 0x69a   : > { %4133 = shalt.err (!%p4130_p12)
}
 0x69b   : > { %4011 = dma.vmem_to_hbm [thread:$0]  (%p4279_p5), %s3800_s15, 64, %s3797_s24, %s3785_s25  }
 0x69c PF: > { %p4017_p13 = scmp.ge.s32.totalorder %s4168_s20, 2  ;;  %s3811_s0 = sand.u32 1, %s4156_s17  }
 0x69d   : > { %s3812_s29 = scalar_lea.sflag [#allocation3], %s3811_s0 }
 0x69e   : > { %p4014_p0 = pnand %p4017_p13, %p4283_p6 }
 0x6a0   : > { %p4015_p1 = pneg %p4014_p0 }
 0x6a2   : > { %4151 = dma.done.wait (%p4015_p1), %s3812_s29, 64  }
 0x6a3   : > { %4153 = vsyncadd (%p4015_p1), %s3812_s29, 4294967232  ;;  %p21_p2 = scmp.ge.s32.totalorder %s4266_s23, 6   ;;  %s6074_s17 = smov %s4160_s18 }
 0x6a4   : > { %s6075_s18 = smov %s4164_s19  ;;  %s6076_s19 = smov %s4277_s26 }
 0x6a5   : > { %s6077_s20 = smov %s4266_s23  ;;  %23 = sbr.rel (!%p21_p2) target bundleno = 6 (0x6), region = 99 }
 0x6aa   :  { %3817 = vsyncpa [#allocation3], 1 }
 0x6ab   :  { %3819 = vsyncpa [#allocation3 + $0x1], 1 }

</bundles_post_ra>
